<compile_context>
chip_gen: v7x
topology: tpu7x:2x2x1
jax: 0.10.0
libtpu: 0.0.40
codegen_flags: <defaults>
</compile_context>

<pallas_src>
import jax
import jax.numpy as jnp
from jax import lax
from jax.experimental import pallas as pl
from jax.experimental.pallas import tpu as pltpu

IN_FEATURES = 3 * 64 * 64   # 12288
H1 = 512
H2 = 256
OUT = 1
TK = 4096                   # K-tile for the first (large) matmul -> 3 K-steps


def _leaky_relu(x, slope=0.2):
    return jnp.where(x > 0, x, slope * x)


def _round_up(n, m):
    return ((n + m - 1) // m) * m


def _tile_budget():
    """Pick (max batch tile, scoped VMEM limit) from the chip's VMEM capacity.

    128 MiB parts (v5e/v6e): TM=1024 / 96 MiB limit  (~44 MiB working set).
    64 MiB parts (v7x):      TM=512  / 48 MiB limit  (~27 MiB working set,
                             keeps headroom and lets n_m >= 2 span both TCs).
    """
    try:
        vmem_cap = int(pltpu.get_tpu_info().vmem_capacity_bytes)
    except Exception:
        vmem_cap = 64 << 20   # conservative default (v7x per-TensorCore)
    if vmem_cap >= (100 << 20):
        return 1024, 96 << 20
    return 512, 48 << 20


def discriminator_kernel(x_ref, w1_ref, b1_ref, w2_ref, b2_ref, w3t_ref, b3_ref,
                         out_ref, acc_ref):
    """Grid = (batch tiles [parallel], K chunks of layer-1 [reduction]).

    acc_ref accumulates x @ W1 in f32. On the last K step the small layers
    are computed entirely in VMEM and the sigmoid output is written.
    """
    k = pl.program_id(1)

    @pl.when(k == 0)
    def _():
        acc_ref[...] = jnp.zeros_like(acc_ref)

    # Hot path: (TM, TK) x (TK, 512) bf16 matmul on the MXU, f32 accumulation.
    # x arrives as f32 (single HBM pass) and is cast to bf16 in-register; W1
    # was quantized to bf16 once at parameter-preparation time.
    acc_ref[...] += jnp.dot(x_ref[...].astype(jnp.bfloat16), w1_ref[...],
                            preferred_element_type=jnp.float32)

    @pl.when(k == pl.num_programs(1) - 1)
    def _():
        h1 = _leaky_relu(acc_ref[...] + b1_ref[...])
        h2 = jnp.dot(h1, w2_ref[...], preferred_element_type=jnp.float32) + b2_ref[...]
        h2 = _leaky_relu(h2)
        # (H2 -> 1) projection as VPU multiply + lane reduction (avoids an
        # N=1 MXU matmul).  w3t_ref is the transposed weight row (1, H2).
        logits = jnp.sum(h2 * w3t_ref[...], axis=-1, keepdims=True) + b3_ref[...]
        # exp goes to the EUP slot; the remaining divide is negligible here.
        out_ref[...] = (1.0 / (1.0 + jnp.exp(-logits))).astype(out_ref.dtype)


def prepare_params(params):
    """One-time conversion to the kernel's layout.

    Hoists the per-call W1 f32->bf16 cast out of the forward path and
    pre-transposes W3 to the (1, H2) row the VPU reduction expects.
    """
    w1, b1, w2, b2, w3, b3 = params
    return (w1.astype(jnp.bfloat16), b1, w2, b2, w3.T, b3)


def discriminator_forward(img, kernel_params):
    """img: (B, 3, 64, 64) float32 NCHW. kernel_params: from prepare_params.

    Returns (B, 1) validity in [0, 1].
    """
    w1_bf16, b1, w2, b2, w3t, b3 = kernel_params
    B = img.shape[0]
    x = img.reshape(B, -1).astype(jnp.float32)  # same ordering as torch .view
    assert x.shape[1] == IN_FEATURES

    max_tm, vmem_limit = _tile_budget()
    # Round the batch tile to 16 rows so the in-kernel bf16 operand is fully
    # sublane-packed (bf16 packs 16 rows per vreg).
    TM = min(max_tm, _round_up(B, 16))
    Bp = _round_up(B, TM)
    if Bp != B:
        x = jnp.pad(x, ((0, Bp - B), (0, 0)))
    n_m = Bp // TM
    n_k = IN_FEATURES // TK

    # Advisory cost for XLA's scheduler around the custom call.
    cost = pl.CostEstimate(
        flops=2 * Bp * (IN_FEATURES * H1 + H1 * H2 + H2 * OUT),
        transcendentals=Bp,  # one exp per row (sigmoid)
        bytes_accessed=(n_m * IN_FEATURES * H1 * 2    # W1 bf16, streamed per batch tile
                        + Bp * IN_FEATURES * 4        # x f32, one pass
                        + H1 * H2 * 4                 # resident W2
                        + Bp * OUT * 4),              # output
    )

    out = pl.pallas_call(
        discriminator_kernel,
        out_shape=jax.ShapeDtypeStruct((Bp, OUT), jnp.float32),
        grid_spec=pltpu.PrefetchScalarGridSpec(
            num_scalar_prefetch=0,
            grid=(n_m, n_k),                               # K (reduction) innermost
            in_specs=[
                pl.BlockSpec((TM, TK), lambda m, k: (m, k)),    # x tile (f32)
                pl.BlockSpec((TK, H1), lambda m, k: (k, 0)),    # W1 K-chunk (bf16)
                pl.BlockSpec((1, H1), lambda m, k: (0, 0)),     # b1 (resident)
                pl.BlockSpec((H1, H2), lambda m, k: (0, 0)),    # W2 (resident)
                pl.BlockSpec((1, H2), lambda m, k: (0, 0)),     # b2
                pl.BlockSpec((1, H2), lambda m, k: (0, 0)),     # W3^T row
                pl.BlockSpec((1, OUT), lambda m, k: (0, 0)),    # b3
            ],
            out_specs=pl.BlockSpec((TM, OUT), lambda m, k: (m, 0)),
            scratch_shapes=[pltpu.VMEM((TM, H1), jnp.float32)],
        ),
        compiler_params=pltpu.CompilerParams(
            # batch tiles are independent (megacore); K is a reduction.
            dimension_semantics=("parallel", "arbitrary"),
            vmem_limit_bytes=vmem_limit,
        ),
        cost_estimate=cost,
    )(x, w1_bf16, b1, w2, b2, w3t, b3)

    # NOTE: rows >= B of `out` are padding garbage; always slice before use.
    return out[:B]


def init_params(key):
    """Deterministic synthetic parameters (shapes match the nn.Linear layers)."""
    ks = jax.random.split(key, 6)

    def linear(kw, kb, fan_in, fan_out):
        bound = 1.0 / jnp.sqrt(fan_in)
        # stored as (in, out) so the kernel does x @ W + b
        w = jax.random.uniform(kw, (fan_in, fan_out), jnp.float32, -bound, bound)
        b = jax.random.uniform(kb, (1, fan_out), jnp.float32, -bound, bound)
        return w, b

    w1, b1 = linear(ks[0], ks[1], IN_FEATURES, H1)
    w2, b2 = linear(ks[2], ks[3], H1, H2)
    w3, b3 = linear(ks[4], ks[5], H2, OUT)
    return (w1, b1, w2, b2, w3, b3)


def reference_forward(img, params, *, cast_bf16=False):
    """Pure-JAX reference. cast_bf16=True applies the same x/W1 quantization
    the kernel uses, so it can be compared at tight tolerance."""
    w1, b1, w2, b2, w3, b3 = params
    x = img.reshape(img.shape[0], -1)
    if cast_bf16:
        x = x.astype(jnp.bfloat16).astype(jnp.float32)
        w1 = w1.astype(jnp.bfloat16).astype(jnp.float32)
    hp = lax.Precision.HIGHEST
    h = _leaky_relu(jnp.dot(x, w1, precision=hp) + b1)
    h = _leaky_relu(jnp.dot(h, w2, precision=hp) + b2)
    return jax.nn.sigmoid(jnp.dot(h, w3, precision=hp) + b3)


if __name__ == "__main__":
    key = jax.random.PRNGKey(0)
    k_img, k_par = jax.random.split(key)

    B = 8  # small smoke-test batch
    img = jax.random.normal(k_img, (B, 3, 64, 64), dtype=jnp.float32)
    params = init_params(k_par)
    kparams = prepare_params(params)   # one-time: W1 -> bf16, W3 -> (1, H2) row

    out = discriminator_forward(img, kparams)
    out = jax.block_until_ready(out)
    assert out.shape == (B, OUT)

    # Tight check vs a reference that applies the same bf16 quantization of
    # x / W1 (verifies the kernel math itself).
    ref_q = reference_forward(img, params, cast_bf16=True)
    assert jnp.allclose(out, ref_q, atol=1e-4, rtol=1e-4), "mismatch vs bf16-quantized reference"

    # Loose check vs the full-f32 reference (intentional bf16 streaming
    # quantization of the 12288-wide first layer).
    ref_f32 = reference_forward(img, params)
    assert jnp.allclose(out, ref_f32, atol=2e-2, rtol=2e-2), "mismatch vs f32 reference"

    print("KERNEL_OK")
</pallas_src>

<mosaic_0001>
module attributes {stable_mosaic.version = 11 : i64} {
  func.func @discriminator_kernel(%arg0: i32, %arg1: i32, %arg2: memref<16x4096xf32, #tpu.memory_space<vmem>>, %arg3: memref<4096x512xbf16, #tpu.memory_space<vmem>>, %arg4: memref<1x512xf32, #tpu.memory_space<vmem>>, %arg5: memref<512x256xf32, #tpu.memory_space<vmem>>, %arg6: memref<1x256xf32, #tpu.memory_space<vmem>>, %arg7: memref<1x256xf32, #tpu.memory_space<vmem>>, %arg8: memref<1x1xf32, #tpu.memory_space<vmem>>, %arg9: memref<16x1xf32, #tpu.memory_space<vmem>>, %arg10: memref<16x512xf32, #tpu.memory_space<vmem>>) attributes {dimension_semantics = [#tpu.dimension_semantics<parallel>, #tpu.dimension_semantics<arbitrary>], iteration_bounds = array<i64: 1, 3>, scalar_prefetch = 0 : i64, scratch_operands = 1 : i64, tpu.core_type = #tpu.core_type<tc>, window_params = [{transform_indices = @transform_0, window_bounds = array<i64: 16, 4096>}, {transform_indices = @transform_1, window_bounds = array<i64: 4096, 512>}, {pipeline_mode = #tpu.pipeline_mode<synchronous>, transform_indices = @transform_2, window_bounds = array<i64: 1, 512>}, {pipeline_mode = #tpu.pipeline_mode<synchronous>, transform_indices = @transform_3, window_bounds = array<i64: 512, 256>}, {pipeline_mode = #tpu.pipeline_mode<synchronous>, transform_indices = @transform_4, window_bounds = array<i64: 1, 256>}, {pipeline_mode = #tpu.pipeline_mode<synchronous>, transform_indices = @transform_5, window_bounds = array<i64: 1, 256>}, {pipeline_mode = #tpu.pipeline_mode<synchronous>, transform_indices = @transform_6, window_bounds = array<i64: 1, 1>}, {transform_indices = @transform_7, window_bounds = array<i64: 16, 1>}]} {
    %c0_i32 = arith.constant 0 : i32
    %0 = arith.cmpi eq, %arg1, %c0_i32 : i32
    %1 = arith.extui %0 : i1 to i32
    %c0_i32_0 = arith.constant 0 : i32
    %2 = arith.cmpi ne, %1, %c0_i32_0 : i32
    scf.if %2 {
      %cst_9 = arith.constant 0.000000e+00 : f32
      %13 = vector.broadcast %cst_9 : f32 to vector<16x512xf32>
      %c0_10 = arith.constant 0 : index
      %c0_11 = arith.constant 0 : index
      %14 = vector.load %arg10[%c0_10, %c0_11] : memref<16x512xf32, #tpu.memory_space<vmem>>, vector<16x512xf32>
      tpu.vector_store %arg10[%c0_10, %c0_11], %13 {strides = array<i32>} : memref<16x512xf32, #tpu.memory_space<vmem>>, vector<16x512xf32>,
    } else {
    }
    %c0 = arith.constant 0 : index
    %c0_1 = arith.constant 0 : index
    %3 = vector.load %arg10[%c0, %c0_1] : memref<16x512xf32, #tpu.memory_space<vmem>>, vector<16x512xf32>
    %c0_2 = arith.constant 0 : index
    %c0_3 = arith.constant 0 : index
    %4 = vector.load %arg2[%c0_2, %c0_3] : memref<16x4096xf32, #tpu.memory_space<vmem>>, vector<16x4096xf32>
    %5 = arith.truncf %4 : vector<16x4096xf32> to vector<16x4096xbf16>
    %c0_4 = arith.constant 0 : index
    %c0_5 = arith.constant 0 : index
    %6 = vector.load %arg3[%c0_4, %c0_5] : memref<4096x512xbf16, #tpu.memory_space<vmem>>, vector<4096x512xbf16>
    %cst = arith.constant dense<0.000000e+00> : vector<16x512xf32>
    %7 = tpu.matmul %5, %6, %cst {dimension_numbers = #tpu.dot_dimension_numbers<[1], [0], [0], [1], [0, 0, 1, 1], [], []>} : vector<16x4096xbf16>, vector<4096x512xbf16>, vector<16x512xf32> -> vector<16x512xf32>
    %8 = arith.addf %3, %7 : vector<16x512xf32>
    %c0_6 = arith.constant 0 : index
    %c0_7 = arith.constant 0 : index
    %9 = vector.load %arg10[%c0_6, %c0_7] : memref<16x512xf32, #tpu.memory_space<vmem>>, vector<16x512xf32>
    tpu.vector_store %arg10[%c0_6, %c0_7], %8 {strides = array<i32>} : memref<16x512xf32, #tpu.memory_space<vmem>>, vector<16x512xf32>,
    %c2_i32 = arith.constant 2 : i32
    %10 = arith.cmpi eq, %arg1, %c2_i32 : i32
    %11 = arith.extui %10 : i1 to i32
    %c0_i32_8 = arith.constant 0 : i32
    %12 = arith.cmpi ne, %11, %c0_i32_8 : i32
    scf.if %12 {
      %c0_9 = arith.constant 0 : index
      %c0_10 = arith.constant 0 : index
      %13 = vector.load %arg10[%c0_9, %c0_10] : memref<16x512xf32, #tpu.memory_space<vmem>>, vector<16x512xf32>
      %c0_11 = arith.constant 0 : index
      %c0_12 = arith.constant 0 : index
      %14 = vector.load %arg4[%c0_11, %c0_12] : memref<1x512xf32, #tpu.memory_space<vmem>>, vector<1x512xf32>
      %15 = vector.broadcast %14 : vector<1x512xf32> to vector<16x512xf32>
      %16 = arith.addf %13, %15 : vector<16x512xf32>
      %cst_13 = arith.constant 0.000000e+00 : f32
      %17 = vector.broadcast %cst_13 : f32 to vector<16x512xf32>
      %18 = arith.cmpf ogt, %16, %17 : vector<16x512xf32>
      %cst_14 = arith.constant 2.000000e-01 : f32
      %19 = vector.broadcast %cst_14 : f32 to vector<16x512xf32>
      %20 = arith.mulf %19, %16 : vector<16x512xf32>
      %21 = arith.select %18, %16, %20 : vector<16x512xi1>, vector<16x512xf32>
      %c0_15 = arith.constant 0 : index
      %c0_16 = arith.constant 0 : index
      %22 = vector.load %arg5[%c0_15, %c0_16] : memref<512x256xf32, #tpu.memory_space<vmem>>, vector<512x256xf32>
      %cst_17 = arith.constant dense<0.000000e+00> : vector<16x256xf32>
      %23 = tpu.matmul %21, %22, %cst_17 {dimension_numbers = #tpu.dot_dimension_numbers<[1], [0], [0], [1], [0, 0, 1, 1], [], []>} : vector<16x512xf32>, vector<512x256xf32>, vector<16x256xf32> -> vector<16x256xf32>
      %c0_18 = arith.constant 0 : index
      %c0_19 = arith.constant 0 : index
      %24 = vector.load %arg6[%c0_18, %c0_19] : memref<1x256xf32, #tpu.memory_space<vmem>>, vector<1x256xf32>
      %25 = vector.broadcast %24 : vector<1x256xf32> to vector<16x256xf32>
      %26 = arith.addf %23, %25 : vector<16x256xf32>
      %cst_20 = arith.constant 0.000000e+00 : f32
      %27 = vector.broadcast %cst_20 : f32 to vector<16x256xf32>
      %28 = arith.cmpf ogt, %26, %27 : vector<16x256xf32>
      %cst_21 = arith.constant 2.000000e-01 : f32
      %29 = vector.broadcast %cst_21 : f32 to vector<16x256xf32>
      %30 = arith.mulf %29, %26 : vector<16x256xf32>
      %31 = arith.select %28, %26, %30 : vector<16x256xi1>, vector<16x256xf32>
      %c0_22 = arith.constant 0 : index
      %c0_23 = arith.constant 0 : index
      %32 = vector.load %arg7[%c0_22, %c0_23] : memref<1x256xf32, #tpu.memory_space<vmem>>, vector<1x256xf32>
      %33 = vector.broadcast %32 : vector<1x256xf32> to vector<16x256xf32>
      %34 = arith.mulf %31, %33 : vector<16x256xf32>
      %cst_24 = arith.constant dense<0.000000e+00> : vector<16xf32>
      %35 = vector.multi_reduction <add>, %34, %cst_24 [1] : vector<16x256xf32> to vector<16xf32>
      %36 = vector.shape_cast %35 : vector<16xf32> to vector<16x1xf32>
      %c0_25 = arith.constant 0 : index
      %c0_26 = arith.constant 0 : index
      %37 = vector.load %arg8[%c0_25, %c0_26] : memref<1x1xf32, #tpu.memory_space<vmem>>, vector<1x1xf32>
      %38 = vector.broadcast %37 : vector<1x1xf32> to vector<16x1xf32>
      %39 = arith.addf %36, %38 : vector<16x1xf32>
      %cst_27 = arith.constant 0.000000e+00 : f32
      %40 = vector.broadcast %cst_27 : f32 to vector<16x1xf32>
      %41 = arith.subf %40, %39 : vector<16x1xf32>
      %42 = math.exp %41 : vector<16x1xf32>
      %cst_28 = arith.constant 1.000000e+00 : f32
      %43 = vector.broadcast %cst_28 : f32 to vector<16x1xf32>
      %44 = arith.addf %43, %42 : vector<16x1xf32>
      %cst_29 = arith.constant 1.000000e+00 : f32
      %45 = vector.broadcast %cst_29 : f32 to vector<16x1xf32>
      %46 = arith.divf %45, %44 : vector<16x1xf32>
      %c0_30 = arith.constant 0 : index
      %c0_31 = arith.constant 0 : index
      %47 = vector.load %arg9[%c0_30, %c0_31] : memref<16x1xf32, #tpu.memory_space<vmem>>, vector<16x1xf32>
      tpu.vector_store %arg9[%c0_30, %c0_31], %46 {strides = array<i32>} : memref<16x1xf32, #tpu.memory_space<vmem>>, vector<16x1xf32>,
    } else {
    }
    return
  }
  func.func @transform_0(%arg0: i32, %arg1: i32) -> (i32, i32) {
    %c0_i32 = arith.constant 0 : i32
    return %arg0, %arg1 : i32, i32
  }
  func.func @transform_1(%arg0: i32, %arg1: i32) -> (i32, i32) {
    %c0_i32 = arith.constant 0 : i32
    %c0_i32_0 = arith.constant 0 : i32
    return %arg1, %c0_i32 : i32, i32
  }
  func.func @transform_2(%arg0: i32, %arg1: i32) -> (i32, i32) {
    %c0_i32 = arith.constant 0 : i32
    %c0_i32_0 = arith.constant 0 : i32
    %c0_i32_1 = arith.constant 0 : i32
    return %c0_i32, %c0_i32_0 : i32, i32
  }
  func.func @transform_3(%arg0: i32, %arg1: i32) -> (i32, i32) {
    %c0_i32 = arith.constant 0 : i32
    %c0_i32_0 = arith.constant 0 : i32
    %c0_i32_1 = arith.constant 0 : i32
    return %c0_i32, %c0_i32_0 : i32, i32
  }
  func.func @transform_4(%arg0: i32, %arg1: i32) -> (i32, i32) {
    %c0_i32 = arith.constant 0 : i32
    %c0_i32_0 = arith.constant 0 : i32
    %c0_i32_1 = arith.constant 0 : i32
    return %c0_i32, %c0_i32_0 : i32, i32
  }
  func.func @transform_5(%arg0: i32, %arg1: i32) -> (i32, i32) {
    %c0_i32 = arith.constant 0 : i32
    %c0_i32_0 = arith.constant 0 : i32
    %c0_i32_1 = arith.constant 0 : i32
    return %c0_i32, %c0_i32_0 : i32, i32
  }
  func.func @transform_6(%arg0: i32, %arg1: i32) -> (i32, i32) {
    %c0_i32 = arith.constant 0 : i32
    %c0_i32_0 = arith.constant 0 : i32
    %c0_i32_1 = arith.constant 0 : i32
    return %c0_i32, %c0_i32_0 : i32, i32
  }
  func.func @transform_7(%arg0: i32, %arg1: i32) -> (i32, i32) {
    %c0_i32 = arith.constant 0 : i32
    %c0_i32_0 = arith.constant 0 : i32
    return %arg0, %c0_i32 : i32, i32
  }
}

</mosaic_0001>

<bundles_post_ra>
// kernel: tpu_custom_call.1
= control target key start
LH: loop header
LB: loop body
LE: loop exit
PB: predicated region body
PF: predicated region fallthrough
CT: control target
= control target key end

     0   :  { %s13293_s0 = inlined_call_operand.hbm [shape: f32[16,12288], index: 0, kind: input, shape index: {}]   ;;  %s13294_s1 = inlined_call_operand.hbm [shape: bf16[12288,512], index: 1, kind: input, shape index: {}]   ;;  %s13295_s2 = inlined_call_operand.hbm [shape: f32[1,512], index: 2, kind: input, shape index: {}]   ;;  %s13296_s3 = inlined_call_operand.hbm [shape: f32[512,256], index: 3, kind: input, shape index: {}]   ;;  %s13297_s4 = inlined_call_operand.hbm [shape: f32[1,256], index: 4, kind: input, shape index: {}]   ;;  %s13298_s5 = inlined_call_operand.hbm [shape: f32[1,256], index: 5, kind: input, shape index: {}]   ;;  %s13299_s6 = inlined_call_operand.<no memory space> [shape: f32[1,1], index: 6, kind: input, shape index: {}]   ;;  %s13300_s7 = inlined_call_operand.vmem [shape: f32[16,1], index: 7, kind: output, shape index: {}]  }
   0x1   :  { %13307 = sst [smem:[#allocation19_spill]] %s13293_s0  ;;  %v12_v0 = vstv %s13299_s6 }
   0x2   :  { %13308 = sst [smem:[#allocation20_spill]] %s13295_s2  ;;  %13 = vst [vmem:[#allocation3] sm:$0x1] %v12_v0 }
   0x3   :  { %13309 = sst [smem:[#allocation21_spill]] %s13296_s3 }
   0x4   :  { %13310 = sst [smem:[#allocation22_spill]] %s13297_s4 }
   0x5   :  { %14 = vsyncpa [#allocation5], 0 }
   0x6   :  { %16 = vsyncpa [#allocation5 + $0x1], 0 }
   0x7   :  { %17 = vsyncpa [#allocation7], 0 }
   0x8   :  { %19 = vsyncpa [#allocation7 + $0x1], 0 }
   0x9   :  { %20 = vsyncpa [#allocation10], 0 }
   0xa   :  { %21 = vsyncpa [#allocation13], 0  ;;  %s11877_s26 = smov 0   ;;  %s11879_s27 = smov 0  }
   0xb   :  { %s11881_s28 = smov 0   ;;  %s11883_s29 = smov 0  }
   0xc   :  { %s11885_s30 = smov 0   ;;  %s11887_s8 = smov 0  }
   0xd LB: > { %s13305_s6 = sadd.s32 4294967295, %s11821_s8   ;;  %p61_p0 = scmp.ne.s32.totalorder %s11805_s27, %s11801_s26  ;;  %s11821_s8 = sphi %s11887_s8, %s27_s8   ;;  %s11817_s30 = sphi %s11885_s30, %s13331_s30   ;;  %s11813_s29 = sphi %s11883_s29, %s13330_s29   ;;  %s11809_s28 = sphi %s11881_s28, %s13329_s28   ;;  %s11805_s27 = sphi %s11879_s27, %s13328_s27   ;;  %s11801_s26 = sphi %s11877_s26, %s13327_s26  }
   0xe   : > { %p11909_p1 = scmp.eq.s32.totalorder %s13305_s6, 0  ;;  %p8623_p2 = scmp.ge.s32.totalorder %s11821_s8, 1 }
   0xf   : > { %p229_p3 = scmp.lt.s32.totalorder %s11821_s8, 4  ;;  %s11823_s12 = smov [#allocation8]  }
  0x10   : > { %s13311_s9 = scalar_select %p11909_p1, 1, 0 }
  0x11   : > { %p11917_p4 = por %p11909_p1, %p61_p0  ;;  %p11921_p5 = pnand %p8623_p2, %p229_p3 }
  0x12   : > { %s242_s13 = sshll.u32 %s11823_s12, 4  ;;  %s11824_s14 = smov [#allocation9]   ;;  %s243_s13 = int_to_ptr.vmem [resolvable:$true] %s242_s13 }
  0x13   : > { %s13312_s10 = scalar_select %p11917_p4, 1, 0 }
  0x14   : > { %s13313_s11 = scalar_select %p11921_p5, 1, 0 }
  0x15   : > { %p9953_p6 = pneg %p11921_p5  ;;  %s252_s15 = sshll.u32 %s11824_s14, 4  ;;  %s11933_s15 = int_to_ptr.vmem [resolvable:$true] %s252_s15 }
  0x16   : > { %s11825_s17 = smov [#allocation11]   ;;  %s13315_s2 = sld [smem:[#allocation20_spill]] }
  0x17   : > { %p11929_p7 = pnand %p9953_p6, %p11909_p1  ;;  %s11935_s18 = sshll.u32 %s11825_s17, 4  ;;  %s267_s18 = int_to_ptr.vmem [resolvable:$true] %s11935_s18 }
  0x19   : > { %p11945_p9 = pneg %p11929_p7 }
  0x1c   : > { %s11583_s21 = scalar_lea.hbm %s13315_s2, 64 }
  0x1d   : > { %p11584_p8 = scmp.ne.s32.totalorder %s13315_s2, %s11583_s21  ;;  %p11590_p12 = scmp.lt.u32.totalorder %s11583_s21, %s13315_s2 }
  0x1f   : > { %p11586_p10 = pnand %p11945_p9, %p11584_p8 }
  0x21   : > { %p11587_p11 = pneg %p11586_p10 }
  0x23   : > { %p11592_p13 = pnand %p11590_p12, %p11587_p11 }
  0x25   : > { %11595 = shalt.err (!%p11592_p13)
}
  0x26   : > { %s11596_s12 = scalar_lea.vmem %s243_s13, 64  ;;  %p11604_p6 = scmp.lt.s32.totalorder %s243_s13, %s243_s13 }
  0x27   : > { %p11597_p0 = scmp.ne.s32.totalorder %s243_s13, %s11596_s12  ;;  %p11605_p1 = scmp.lt.s32.totalorder %s11596_s12, %s11596_s12 }
  0x29   : > { %p11599_p2 = pnand %p11597_p0, %p11945_p9  ;;  %p11606_p4 = por %p11605_p1, %p11604_p6 }
  0x2b   : > { %p11600_p3 = pneg %p11599_p2 }
  0x2d   : > { %p11607_p5 = pnand %p11606_p4, %p11600_p3 }
  0x2f   : > { %11610 = shalt.err (!%p11607_p5)
}
  0x30   : > { %9956 = dma.hbm_to_vmem [thread:$0]  (!%p11929_p7), %s13315_s2, 64, %s243_s13, [#allocation7]  }
  0x31   : > { %s13317_s3 = sld [smem:[#allocation21_spill]] }
  0x37   : > { %s11611_s21 = scalar_lea.hbm %s13317_s3, 16384 }
  0x38   : > { %p11612_p8 = scmp.ne.s32.totalorder %s13317_s3, %s11611_s21  ;;  %p11618_p4 = scmp.lt.u32.totalorder %s11611_s21, %s13317_s3 }
  0x3a   : > { %p11614_p10 = pnand %p11612_p8, %p11945_p9 }
  0x3c   : > { %p11615_p1 = pneg %p11614_p10 }
  0x3e   : > { %p11620_p5 = pnand %p11618_p4, %p11615_p1 }
  0x40   : > { %11623 = shalt.err (!%p11620_p5)
}
  0x41   : > { %s11624_s13 = scalar_lea.vmem %s11933_s15, 16384  ;;  %p11632_p0 = scmp.lt.s32.totalorder %s11933_s15, %s11933_s15 }
  0x42   : > { %p11625_p11 = scmp.ne.s32.totalorder %s11933_s15, %s11624_s13  ;;  %p11633_p2 = scmp.lt.s32.totalorder %s11624_s13, %s11624_s13 }
  0x44   : > { %p11627_p12 = pnand %p11625_p11, %p11945_p9  ;;  %p11634_p3 = por %p11633_p2, %p11632_p0 }
  0x46   : > { %p11628_p13 = pneg %p11627_p12 }
  0x48   : > { %p11635_p6 = pnand %p11634_p3, %p11628_p13 }
  0x4a   : > { %11638 = shalt.err (!%p11635_p6)
}
  0x4b   : > { %s11826_s12 = smov 256   ;;  %s13306_s14 = smov 16  }
  0x4c   : > { %9959 = dma.hbm_to_vmem [thread:$0]  (!%p11929_p7), %s13317_s3, 16384, %s11933_s15, [#allocation10], %s11826_s12, %s11826_s12, %s13306_s14  }
  0x4d   : > { %s13318_s4 = sld [smem:[#allocation22_spill]] }
  0x53   : > { %s11639_s22 = scalar_lea.hbm %s13318_s4, 32 }
  0x54   : > { %p11640_p8 = scmp.ne.s32.totalorder %s13318_s4, %s11639_s22  ;;  %p11646_p4 = scmp.lt.u32.totalorder %s11639_s22, %s13318_s4 }
  0x56   : > { %p11642_p10 = pnand %p11640_p8, %p11945_p9 }
  0x58   : > { %p11643_p1 = pneg %p11642_p10 }
  0x5a   : > { %p11648_p5 = pnand %p11646_p4, %p11643_p1 }
  0x5c   : > { %11651 = shalt.err (!%p11648_p5)
}
  0x5d   : > { %s11652_s17 = scalar_lea.vmem %s267_s18, 32  ;;  %p11660_p0 = scmp.lt.s32.totalorder %s267_s18, %s267_s18 }
  0x5e   : > { %p11653_p11 = scmp.ne.s32.totalorder %s267_s18, %s11652_s17  ;;  %p11661_p2 = scmp.lt.s32.totalorder %s11652_s17, %s11652_s17 }
  0x60   : > { %p11655_p12 = pnand %p11653_p11, %p11945_p9  ;;  %p11662_p3 = por %p11661_p2, %p11660_p0 }
  0x62   : > { %p11656_p13 = pneg %p11655_p12 }
  0x64   : > { %p11663_p6 = pnand %p11662_p3, %p11656_p13 }
  0x66   : > { %11666 = shalt.err (!%p11663_p6)
}
  0x67   : > { %9962 = dma.hbm_to_vmem [thread:$0]  (!%p11929_p7), %s13318_s4, 32, %s267_s18, [#allocation10]  }
  0x68   : > { %s11828_s20 = smov [#allocation12]   ;;  %s11667_s25 = scalar_lea.hbm %s13298_s5, 32 }
  0x69   : > { %s277_s21 = sshll.u32 %s11828_s20, 4  ;;  %p11668_p8 = scmp.ne.s32.totalorder %s13298_s5, %s11667_s25  ;;  %s278_s21 = int_to_ptr.vmem [resolvable:$true] %s277_s21 }
  0x6a   : > { %p11674_p4 = scmp.lt.u32.totalorder %s11667_s25, %s13298_s5 }
  0x6b   : > { %p11670_p10 = pnand %p11668_p8, %p11945_p9 }
  0x6d   : > { %p11671_p1 = pneg %p11670_p10 }
  0x6f   : > { %p11676_p5 = pnand %p11674_p4, %p11671_p1 }
  0x71   : > { %11679 = shalt.err (!%p11676_p5)
}
  0x72   : > { %s11680_s18 = scalar_lea.vmem %s278_s21, 32  ;;  %p11688_p0 = scmp.lt.s32.totalorder %s278_s21, %s278_s21 }
  0x73   : > { %p11681_p11 = scmp.ne.s32.totalorder %s278_s21, %s11680_s18  ;;  %p11689_p2 = scmp.lt.s32.totalorder %s11680_s18, %s11680_s18 }
  0x75   : > { %p11683_p12 = pnand %p11681_p11, %p11945_p9  ;;  %p11690_p3 = por %p11689_p2, %p11688_p0 }
  0x77   : > { %p11684_p13 = pneg %p11683_p12 }
  0x79   : > { %p11691_p6 = pnand %p11690_p3, %p11684_p13 }
  0x7b   : > { %11694 = shalt.err (!%p11691_p6)
}
  0x7c   : > { %9965 = dma.hbm_to_vmem [thread:$0]  (!%p11929_p7), %s13298_s5, 32, %s278_s21, [#allocation13]  }
  0x7d   : > { %s36_s6 = sadd.s32 1, %s11817_s30  ;;  %s48_s24 = sadd.s32 1, %s11809_s28 }
  0x7e   : > { %p37_p9 = scmp.ge.s32.totalorder %s36_s6, 3  ;;  %p55_p8 = scmp.ne.s32.totalorder %s11809_s28, %s11805_s27 }
  0x7f   : > { %p56_p10 = scmp.eq.s32.totalorder %s11821_s8, 0  ;;  %p9977_p1 = scmp.lt.s32.totalorder %s11821_s8, 3 }
  0x80   : > { %s13333_s6 = smov (%p37_p9, %s36_s6), 0  ;;  %s12033_s16 = sand.u32 1, %s11809_s28  }
  0x81   : > { %p57_p4 = por %p56_p10, %p55_p8  ;;  %s44_s20 = ssub.s32 %s11817_s30, %s13333_s6 }
  0x82   : > { %p46_p5 = scmp.eq.s32.totalorder %s44_s20, 0  ;;  %s8629_s22 = sshll.u32 %s12033_s16, 9 }
  0x83   : > { %s9674_s21 = sshll.u32 %s11817_s30, 12  ;;  %s13319_s0 = sld [smem:[#allocation19_spill]] }
  0x84   : > { %s12040_s23 = scalar_select %p46_p5, %s11809_s28, %s48_s24  }
  0x85   : > { %s295_s17 = scalar_lea.vmem [#allocation4], %s8629_s22  ;;  %p12051_p7 = pnand %p9977_p1, %p57_p4 }
  0x86   : > { %s305_s18 = sshll.u32 %s295_s17, 4  ;;  %s292_s24 = scalar_lea.sflag [#allocation5], %s12033_s16  ;;  %s12047_s18 = int_to_ptr.vmem [resolvable:$true] %s305_s18 }
  0x87   : > { %p11697_p12 = pneg %p12051_p7 }
  0x89   : > { %s12045_s13 = scalar_lea.hbm %s13319_s0, %s9674_s21  ;;  %s11700_s25 = scalar_lea.hbm %s13319_s0, 24576 }
  0x8a   : > { %s11695_s20 = scalar_lea.hbm %s12045_s13, 8192  ;;  %p11701_p2 = scmp.lt.u32.totalorder %s12045_s13, %s13319_s0 }
  0x8b   : > { %p11696_p11 = scmp.ne.s32.totalorder %s12045_s13, %s11695_s20  ;;  %p11702_p3 = scmp.lt.u32.totalorder %s11700_s25, %s11695_s20 }
  0x8c   : > { %p11704_p9 = scmp.lt.u32.totalorder %s11695_s20, %s12045_s13 }
  0x8d   : > { %p11698_p13 = pnand %p11697_p12, %p11696_p11  ;;  %p11703_p6 = por %p11702_p3, %p11701_p2 }
  0x8f   : > { %p11699_p0 = pneg %p11698_p13  ;;  %p11705_p8 = por %p11704_p9, %p11703_p6 }
  0x91   : > { %p11706_p10 = pnand %p11705_p8, %p11699_p0 }
  0x93   : > { %11709 = shalt.err (!%p11706_p10)
}
  0x94   : > { %s11710_s14 = scalar_lea.vmem %s12047_s18, 8192  ;;  %s11829_s22 = smov [#allocation4]  }
  0x95   : > { %p11711_p1 = scmp.ne.s32.totalorder %s12047_s18, %s11710_s14  ;;  %s11715_s21 = sshll.u32 %s11829_s22, 4  ;;  %s11716_s21 = int_to_ptr.vmem [resolvable:$false] %s11715_s21 }
  0x96   : > { %s11717_s26 = scalar_lea.vmem %s11716_s21, 16384  ;;  %p11718_p11 = scmp.lt.s32.totalorder %s12047_s18, %s11716_s21 }
  0x97   : > { %p11713_p4 = pnand %p11711_p1, %p11697_p12  ;;  %p11719_p13 = scmp.lt.s32.totalorder %s11717_s26, %s11710_s14 }
  0x99   : > { %p11714_p5 = pneg %p11713_p4  ;;  %p11720_p2 = por %p11719_p13, %p11718_p11 }
  0x9b   : > { %p11721_p3 = pnand %p11720_p2, %p11714_p5 }
  0x9d   : > { %11724 = shalt.err (!%p11721_p3)
}
  0x9e   : > { %s11830_s20 = smov 12288   ;;  %s11831_s25 = smov 4096  }
  0x9f   : > { %9969 = dma.hbm_to_vmem [thread:$0]  (!%p12051_p7), %s12045_s13, 8192, %s12047_s18, %s292_s24, %s11830_s20, %s11831_s25, %s11826_s12  }
  0xa0   : > { %s8632_s17 = sshll.u32 %s12033_s16, 13  ;;  %s9676_s22 = sshll.u32 %s11817_s30, 17 }
  0xa1   : > { %s12090_s26 = scalar_lea.hbm %s13294_s1, %s9676_s22  ;;  %s319_s19 = scalar_lea.vmem [#allocation6], %s8632_s17 }
  0xa2   : > { %s327_s0 = sshll.u32 %s319_s19, 4  ;;  %s13321_s2 = sand.u32 1, %s11821_s8   ;;  %s12092_s0 = int_to_ptr.vmem [resolvable:$true] %s327_s0 }
  0xa3   : > { %s12096_s3 = scalar_lea.sflag [#allocation7], %s13321_s2  ;;  %s11725_s4 = scalar_lea.hbm %s12090_s26, 131072 }
  0xa4   : > { %p11726_p0 = scmp.ne.s32.totalorder %s12090_s26, %s11725_s4  ;;  %s11730_s18 = scalar_lea.hbm %s13294_s1, 393216 }
  0xa5   : > { %p11731_p8 = scmp.lt.u32.totalorder %s12090_s26, %s13294_s1  ;;  %p11732_p10 = scmp.lt.u32.totalorder %s11730_s18, %s11725_s4 }
  0xa6   : > { %p11728_p6 = pnand %p11726_p0, %p11697_p12  ;;  %p11734_p4 = scmp.lt.u32.totalorder %s11725_s4, %s12090_s26 }
  0xa7   : > { %p11733_p1 = por %p11732_p10, %p11731_p8 }
  0xa8   : > { %p11729_p9 = pneg %p11728_p6 }
  0xa9   : > { %p11735_p5 = por %p11734_p4, %p11733_p1 }
  0xab   : > { %p11736_p11 = pnand %p11735_p5, %p11729_p9 }
  0xad   : > { %11739 = shalt.err (!%p11736_p11)
}
  0xae   : > { %s11740_s2 = scalar_lea.vmem %s12092_s0, 131072  ;;  %s11832_s19 = smov [#allocation6]  }
  0xaf   : > { %p11741_p13 = scmp.ne.s32.totalorder %s12092_s0, %s11740_s2  ;;  %s11745_s25 = sshll.u32 %s11832_s19, 4  ;;  %s11746_s25 = int_to_ptr.vmem [resolvable:$false] %s11745_s25 }
  0xb0   : > { %s11747_s17 = scalar_lea.vmem %s11746_s25, 262144  ;;  %p11748_p0 = scmp.lt.s32.totalorder %s12092_s0, %s11746_s25 }
  0xb1   : > { %p11743_p2 = pnand %p11741_p13, %p11697_p12  ;;  %p11749_p6 = scmp.lt.s32.totalorder %s11747_s17, %s11740_s2 }
  0xb3   : > { %p11744_p3 = pneg %p11743_p2  ;;  %p11750_p8 = por %p11749_p6, %p11748_p0 }
  0xb5   : > { %p11751_p10 = pnand %p11750_p8, %p11744_p3 }
  0xb7   : > { %11754 = shalt.err (!%p11751_p10)
}
  0xb8   : > { %s13322_s4 = smov 16   ;;  %p13323_p12 = scmp.ne.s32.totalorder %s13313_s11, 0 }
  0xb9   : > { %9972 = dma.hbm_to_vmem [thread:$0]  (!%p12051_p7), %s12090_s26, 131072, %s12092_s0, %s12096_s3, %s11826_s12, %s11826_s12, %s13322_s4  }
  0xba   : > { %339 = sbr.rel (%p13323_p12) target bundleno = 1908 (0x774), region = 48  ;;  %s341_s22 = sand.u32 (!%p13323_p12), 1, %s11805_s27  }
  0xbb   : > { %s8637_s14 = sshll.u32 (!%p13323_p12), %s341_s22, 9  ;;  %s342_s21 = scalar_lea.sflag (!%p13323_p12), [#allocation5], %s341_s22 }
  0xbc   : > { %s12128_s16 = scalar_lea.vmem (!%p13323_p12), [#allocation4], %s8637_s14  ;;  %p13324_p9 = scmp.ne.s32.totalorder (!%p13323_p12), %s13312_s10, 0 }
  0xc1   : > { %11780 = dma.done.wait (%p13324_p9), %s342_s21, 8192  }
  0xc2   : > { %11782 = vsyncadd (%p13324_p9), %s342_s21, 4294959104  ;;  %s13325_s15 = sadd.s32 4294967295, %s11821_s8   ;;  %s8638_s0 = sshll.u32 %s341_s22, 13 }
  0xc3   : > { %s350_s13 = sand.u32 1, %s13325_s15   ;;  %s12136_s11 = scalar_lea.vmem [#allocation6], %s8638_s0 }
  0xc4   : > { %s351_s3 = scalar_lea.sflag [#allocation7], %s350_s13 }
  0xc5   : > { %11784 = dma.done.wait (%p13324_p9), %s351_s3, 131072  }
  0xc6   : > { %11786 = vsyncadd (%p13324_p9), %s351_s3, 4294836224  ;;  %p13326_p7 = scmp.ne.s32.totalorder %s13311_s9, 0 }
  0xc8   : > { %11788 = dma.done.wait (%p13326_p7), [#allocation7], 64  }
  0xc9   : > { %11790 = vsyncadd (%p13326_p7), [#allocation7], 4294967232 }
  0xca   : > { %11792 = dma.done.wait (%p13326_p7), [#allocation10], 16416  }
  0xcb   : > { %11794 = vsyncadd (%p13326_p7), [#allocation10], 4294950880 }
  0xcc   : > { %11796 = dma.done.wait (%p13326_p7), [#allocation13], 32  }
  0xcd   : > { %11798 = vsyncadd (%p13326_p7), [#allocation13], 4294967264  ;;  %p8643_p1 = scmp.ne.s32.totalorder %s11813_s29, 0 }
  0xce   : > { %v11833_v1 = vmov (!%p8643_p1), 0.0  }
  0xcf   : > { %418 = sbr.rel (%p8643_p1) target bundleno = 214 (0xd6), region = 76  ;;  %419 = vst [vmem:[#allocation2] sm:$0xff] (!%p8643_p1), %v11833_v1  ;;  %420 = vst [vmem:[#allocation2 + $0x8] sm:$0xff] (!%p8643_p1), %v11833_v1 }
  0xd0   : > { %421 = vst [vmem:[#allocation2 + $0x10] sm:$0xff] (!%p8643_p1), %v11833_v1  ;;  %422 = vst [vmem:[#allocation2 + $0x18] sm:$0xff] (!%p8643_p1), %v11833_v1 }
  0xd1   : > { %423 = vst [vmem:[#allocation2 + $0x20] sm:$0xff] (!%p8643_p1), %v11833_v1  ;;  %424 = vst [vmem:[#allocation2 + $0x28] sm:$0xff] (!%p8643_p1), %v11833_v1 }
  0xd2   : > { %425 = vst [vmem:[#allocation2 + $0x30] sm:$0xff] (!%p8643_p1), %v11833_v1  ;;  %426 = vst [vmem:[#allocation2 + $0x38] sm:$0xff] (!%p8643_p1), %v11833_v1 }
  0xd6 PF: > { %v10039_v2 = vld [vmem:[%s12136_s11 + $0x4] ss:$16 sps:$4 sm:$0xff]   ;;  %v10041_v3 = vld [vmem:[%s12136_s11 + $0xc] ss:$16 sps:$4 sm:$0xff]   ;;  %v10043_v4 = vld [vmem:[%s12136_s11] ss:$16 sps:$4 sm:$0xff]  }
  0xd7   : > { %6675 = vmatprep.subr.bf16.mxu0 %v10039_v2  ;;  %v10044_v5 = vld [vmem:[%s12136_s11 + $0x8] ss:$16 sps:$4 sm:$0xff]   ;;  %7363 = vmatprep.subr.bf16.mxu1 %v10041_v3  ;;  %v10045_v6 = vld [vmem:[%s12136_s11 + $0x24] ss:$16 sps:$4 sm:$0xff]   ;;  %v10047_v7 = vld [vmem:[%s12136_s11 + $0x2c] ss:$16 sps:$4 sm:$0xff]  }
  0xd8   : > { %6676 = vmatpush1.bf16.msra.mxu0 %v10043_v4  ;;  %7364 = vmatpush1.bf16.msra.mxu1 %v10044_v5  ;;  %v10049_v8 = vld [vmem:[%s12136_s11 + $0x20] ss:$16 sps:$4 sm:$0xff]   ;;  %v10050_v9 = vld [vmem:[%s12136_s11 + $0x28] ss:$16 sps:$4 sm:$0xff]   ;;  %v10051_v10 = vld [vmem:[%s12136_s11 + $0x44] ss:$16 sps:$4 sm:$0xff]  }
  0xd9   : > { %6677 = vmatprep.subr.bf16.mxu0 %v10045_v6  ;;  %7365 = vmatprep.subr.bf16.mxu1 %v10047_v7  ;;  %v10053_v11 = vld [vmem:[%s12136_s11 + $0x4c] ss:$16 sps:$4 sm:$0xff]   ;;  %v10055_v12 = vld [vmem:[%s12136_s11 + $0x40] ss:$16 sps:$4 sm:$0xff]   ;;  %v10056_v13 = vld [vmem:[%s12136_s11 + $0x48] ss:$16 sps:$4 sm:$0xff]  }
  0xda   : > { %v10057_v14 = vld [vmem:[%s12136_s11 + $0x64] ss:$16 sps:$4 sm:$0xff]   ;;  %v10059_v15 = vld [vmem:[%s12136_s11 + $0x6c] ss:$16 sps:$4 sm:$0xff]   ;;  %v10061_v16 = vld [vmem:[%s12136_s11 + $0x60] ss:$16 sps:$4 sm:$0xff]  }
  0xdb   : > { %v10062_v17 = vld [vmem:[%s12136_s11 + $0x68] ss:$16 sps:$4 sm:$0xff]   ;;  %v10063_v18 = vld [vmem:[%s12136_s11 + $0x84] ss:$16 sps:$4 sm:$0xff]   ;;  %v10065_v19 = vld [vmem:[%s12136_s11 + $0x8c] ss:$16 sps:$4 sm:$0xff]  }
  0xdc   : > { %6678 = vmatpush1.bf16.msra.mxu0 %v10049_v8  ;;  %7366 = vmatpush1.bf16.msra.mxu1 %v10050_v9  ;;  %v10067_v20 = vld [vmem:[%s12136_s11 + $0x80] ss:$16 sps:$4 sm:$0xff]   ;;  %v10068_v21 = vld [vmem:[%s12136_s11 + $0x88] ss:$16 sps:$4 sm:$0xff]   ;;  %v10069_v22 = vld [vmem:[%s12136_s11 + $0xa4] ss:$16 sps:$4 sm:$0xff]  }
  0xdd   : > { %6679 = vmatprep.subr.bf16.mxu0 %v10051_v10  ;;  %7367 = vmatprep.subr.bf16.mxu1 %v10053_v11  ;;  %v10071_v23 = vld [vmem:[%s12136_s11 + $0xac] ss:$16 sps:$4 sm:$0xff]   ;;  %v10073_v24 = vld [vmem:[%s12136_s11 + $0xa0] ss:$16 sps:$4 sm:$0xff]   ;;  %v10074_v25 = vld [vmem:[%s12136_s11 + $0xa8] ss:$16 sps:$4 sm:$0xff]  }
  0xde   : > { %v10075_v26 = vld [vmem:[%s12136_s11 + $0xc4] ss:$16 sps:$4 sm:$0xff]   ;;  %v10077_v27 = vld [vmem:[%s12136_s11 + $0xcc] ss:$16 sps:$4 sm:$0xff]   ;;  %v10079_v28 = vld [vmem:[%s12136_s11 + $0xc0] ss:$16 sps:$4 sm:$0xff]  }
  0xdf   : > { %v10080_v29 = vld [vmem:[%s12136_s11 + $0xc8] ss:$16 sps:$4 sm:$0xff]   ;;  %v10081_v30 = vld [vmem:[%s12136_s11 + $0xe4] ss:$16 sps:$4 sm:$0xff]   ;;  %v10083_v31 = vld [vmem:[%s12136_s11 + $0xec] ss:$16 sps:$4 sm:$0xff]  }
  0xe0   : > { %6680 = vmatpush1.bf16.msra.mxu0 %v10055_v12  ;;  %7368 = vmatpush1.bf16.msra.mxu1 %v10056_v13  ;;  %v10085_v32 = vld [vmem:[%s12136_s11 + $0xe0] ss:$16 sps:$4 sm:$0xff]   ;;  %v10086_v33 = vld [vmem:[%s12136_s11 + $0xe8] ss:$16 sps:$4 sm:$0xff]   ;;  %v10087_v34 = vld [vmem:[%s12136_s11 + $0x104] ss:$16 sps:$4 sm:$0xff]  }
  0xe1   : > { %6681 = vmatprep.subr.bf16.mxu0 %v10057_v14  ;;  %7369 = vmatprep.subr.bf16.mxu1 %v10059_v15  ;;  %v10089_v35 = vld [vmem:[%s12136_s11 + $0x10c] ss:$16 sps:$4 sm:$0xff]   ;;  %v10091_v36 = vld [vmem:[%s12136_s11 + $0x100] ss:$16 sps:$4 sm:$0xff]   ;;  %v10092_v37 = vld [vmem:[%s12136_s11 + $0x108] ss:$16 sps:$4 sm:$0xff]  }
  0xe2   : > { %v10093_v38 = vld [vmem:[%s12136_s11 + $0x124] ss:$16 sps:$4 sm:$0xff]   ;;  %v10095_v39 = vld [vmem:[%s12136_s11 + $0x12c] ss:$16 sps:$4 sm:$0xff]   ;;  %v10097_v40 = vld [vmem:[%s12136_s11 + $0x120] ss:$16 sps:$4 sm:$0xff]  }
  0xe3   : > { %v10098_v41 = vld [vmem:[%s12136_s11 + $0x128] ss:$16 sps:$4 sm:$0xff]   ;;  %v10099_v42 = vld [vmem:[%s12136_s11 + $0x144] ss:$16 sps:$4 sm:$0xff]   ;;  %v10101_v43 = vld [vmem:[%s12136_s11 + $0x14c] ss:$16 sps:$4 sm:$0xff]  }
  0xe4   : > { %6682 = vmatpush1.bf16.msra.mxu0 %v10061_v16  ;;  %7370 = vmatpush1.bf16.msra.mxu1 %v10062_v17  ;;  %v10103_v44 = vld [vmem:[%s12136_s11 + $0x140] ss:$16 sps:$4 sm:$0xff]   ;;  %v10104_v45 = vld [vmem:[%s12136_s11 + $0x148] ss:$16 sps:$4 sm:$0xff]   ;;  %v10105_v46 = vld [vmem:[%s12136_s11 + $0x164] ss:$16 sps:$4 sm:$0xff]  }
  0xe5   : > { %6683 = vmatprep.subr.bf16.mxu0 %v10063_v18  ;;  %7371 = vmatprep.subr.bf16.mxu1 %v10065_v19  ;;  %v10107_v47 = vld [vmem:[%s12136_s11 + $0x16c] ss:$16 sps:$4 sm:$0xff]   ;;  %v10109_v50 = vld [vmem:[%s12136_s11 + $0x160] ss:$16 sps:$4 sm:$0xff]   ;;  %v10110_v51 = vld [vmem:[%s12136_s11 + $0x168] ss:$16 sps:$4 sm:$0xff]  }
  0xe6   : > { %v436_v48 = vld [vmem:[%s12128_s16 + $0x8] sm:$0xff]  ;;  %v10111_v53 = vld [vmem:[%s12136_s11 + $0x184] ss:$16 sps:$4 sm:$0xff]   ;;  %v10115_v55 = vld [vmem:[%s12136_s11 + $0x180] ss:$16 sps:$4 sm:$0xff]   ;;  %p9668_p4 = scmp.ne.s32.totalorder %s11813_s29, 2 }
  0xe7   : > { %v468_v49 = vld [vmem:[%s12128_s16 + $0x108] sm:$0xff]  ;;  %v10117_v57 = vld [vmem:[%s12136_s11 + $0x1a4] ss:$16 sps:$4 sm:$0xff]   ;;  %v10121_v59 = vld [vmem:[%s12136_s11 + $0x1a0] ss:$16 sps:$4 sm:$0xff]   ;;  %vm8482_vm12 = vcmask (!%p9668_p4), 7168  }
  0xe8   : > { %6684 = vmatpush1.bf16.msra.mxu0 %v10067_v20  ;;  %7372 = vmatpush1.bf16.msra.mxu1 %v10068_v21  ;;  %v500_v52 = vpack.c.bf16 %v468_v49, %v436_v48  ;;  %v10113_v54 = vld [vmem:[%s12136_s11 + $0x18c] ss:$16 sps:$4 sm:$0xff]   ;;  %v10116_v56 = vld [vmem:[%s12136_s11 + $0x188] ss:$16 sps:$4 sm:$0xff]   ;;  %v10123_v61 = vld [vmem:[%s12136_s11 + $0x1c4] ss:$16 sps:$4 sm:$0xff]  }
  0xe9   : > { %6685 = vmatprep.subr.bf16.mxu0 %v10069_v22  ;;  %7373 = vmatprep.subr.bf16.mxu1 %v10071_v23  ;;  %v10119_v58 = vld [vmem:[%s12136_s11 + $0x1ac] ss:$16 sps:$4 sm:$0xff]   ;;  %v10122_v60 = vld [vmem:[%s12136_s11 + $0x1a8] ss:$16 sps:$4 sm:$0xff]   ;;  %v10127_v63 = vld [vmem:[%s12136_s11 + $0x1c0] ss:$16 sps:$4 sm:$0xff]  }
  0xea   : > { %6707 = vmatprep.mubr.bf16.mxu0 %v500_v52  ;;  %7395 = vmatprep.mubr.bf16.mxu1 %v500_v52  ;;  %v10125_v62 = vld [vmem:[%s12136_s11 + $0x1cc] ss:$16 sps:$4 sm:$0xff]   ;;  %v10128_v0 = vld [vmem:[%s12136_s11 + $0x1c8] ss:$16 sps:$4 sm:$0xff]   ;;  %v10129_v1 = vld [vmem:[%s12136_s11 + $0x1e4] ss:$16 sps:$4 sm:$0xff]  }
  0xeb   : > { %v10131_v2 = vld [vmem:[%s12136_s11 + $0x1ec] ss:$16 sps:$4 sm:$0xff]   ;;  %v10133_v3 = vld [vmem:[%s12136_s11 + $0x1e0] ss:$16 sps:$4 sm:$0xff]   ;;  %v10134_v4 = vld [vmem:[%s12136_s11 + $0x1e8] ss:$16 sps:$4 sm:$0xff]  }
  0xec   : > { %6686 = vmatpush1.bf16.msra.mxu0 %v10073_v24  ;;  %7374 = vmatpush1.bf16.msra.mxu1 %v10074_v25  ;;  %v10137_v5 = vld [vmem:[%s12136_s11 + $0x204] ss:$16 sps:$4 sm:$0xff]   ;;  %v10140_v8 = vld [vmem:[%s12136_s11 + $0x20c] ss:$16 sps:$4 sm:$0xff]   ;;  %v10135_v9 = vld [vmem:[%s12136_s11 + $0x200] ss:$16 sps:$4 sm:$0xff]  }
  0xed   : > { %6687 = vmatprep.subr.bf16.mxu0 %v10075_v26  ;;  %7375 = vmatprep.subr.bf16.mxu1 %v10077_v27  ;;  %v435_v6 = vld [vmem:[%s12128_s16] sm:$0xff]  ;;  %v10138_v10 = vld [vmem:[%s12136_s11 + $0x208] ss:$16 sps:$4 sm:$0xff]   ;;  %v10146_v13 = vld [vmem:[%s12136_s11 + $0x22c] ss:$16 sps:$4 sm:$0xff]  }
  0xee   : > { %v467_v7 = vld [vmem:[%s12128_s16 + $0x100] sm:$0xff]  ;;  %v10144_v15 = vld [vmem:[%s12136_s11 + $0x228] ss:$16 sps:$4 sm:$0xff]   ;;  %v10152_v17 = vld [vmem:[%s12136_s11 + $0x24c] ss:$16 sps:$4 sm:$0xff]  }
  0xef   : > { %v499_v11 = vpack.c.bf16 %v467_v7, %v435_v6  ;;  %v10143_v12 = vld [vmem:[%s12136_s11 + $0x224] ss:$16 sps:$4 sm:$0xff]   ;;  %v10141_v14 = vld [vmem:[%s12136_s11 + $0x220] ss:$16 sps:$4 sm:$0xff]   ;;  %v10150_v19 = vld [vmem:[%s12136_s11 + $0x248] ss:$16 sps:$4 sm:$0xff]  }
  0xf0   : > { %6688 = vmatpush1.bf16.msra.mxu0 %v10079_v28  ;;  %7376 = vmatpush1.bf16.msra.mxu1 %v10080_v29  ;;  %v10149_v16 = vld [vmem:[%s12136_s11 + $0x244] ss:$16 sps:$4 sm:$0xff]   ;;  %v10147_v18 = vld [vmem:[%s12136_s11 + $0x240] ss:$16 sps:$4 sm:$0xff]   ;;  %v10158_v21 = vld [vmem:[%s12136_s11 + $0x26c] ss:$16 sps:$4 sm:$0xff]  }
  0xf1   : > { %6689 = vmatprep.subr.bf16.mxu0 %v10081_v30  ;;  %7377 = vmatprep.subr.bf16.mxu1 %v10083_v31  ;;  %v10155_v20 = vld [vmem:[%s12136_s11 + $0x264] ss:$16 sps:$4 sm:$0xff]   ;;  %v10153_v22 = vld [vmem:[%s12136_s11 + $0x260] ss:$16 sps:$4 sm:$0xff]   ;;  %v10156_v23 = vld [vmem:[%s12136_s11 + $0x268] ss:$16 sps:$4 sm:$0xff]  }
  0xf2   : > { %v10161_v24 = vld [vmem:[%s12136_s11 + $0x284] ss:$16 sps:$4 sm:$0xff]   ;;  %v10164_v25 = vld [vmem:[%s12136_s11 + $0x28c] ss:$16 sps:$4 sm:$0xff]   ;;  %v10159_v26 = vld [vmem:[%s12136_s11 + $0x280] ss:$16 sps:$4 sm:$0xff]  }
  0xf3   : > { %v10162_v27 = vld [vmem:[%s12136_s11 + $0x288] ss:$16 sps:$4 sm:$0xff]   ;;  %v10167_v28 = vld [vmem:[%s12136_s11 + $0x2a4] ss:$16 sps:$4 sm:$0xff]   ;;  %v10170_v29 = vld [vmem:[%s12136_s11 + $0x2ac] ss:$16 sps:$4 sm:$0xff]  }
  0xf4   : > { %6690 = vmatpush1.bf16.msra.mxu0 %v10085_v32  ;;  %7378 = vmatpush1.bf16.msra.mxu1 %v10086_v33  ;;  %v10165_v30 = vld [vmem:[%s12136_s11 + $0x2a0] ss:$16 sps:$4 sm:$0xff]   ;;  %v10168_v31 = vld [vmem:[%s12136_s11 + $0x2a8] ss:$16 sps:$4 sm:$0xff]   ;;  %v10173_v32 = vld [vmem:[%s12136_s11 + $0x2c4] ss:$16 sps:$4 sm:$0xff]  }
  0xf5   : > { %6691 = vmatprep.subr.bf16.mxu0 %v10087_v34  ;;  %7379 = vmatprep.subr.bf16.mxu1 %v10089_v35  ;;  %v10176_v33 = vld [vmem:[%s12136_s11 + $0x2cc] ss:$16 sps:$4 sm:$0xff]   ;;  %v10189_v49 = vld [vmem:[%s12136_s11 + $0x320] ss:$16 sps:$4 sm:$0xff]   ;;  %v10222_v6 = vld [vmem:[%s12136_s11 + $0x3c8] ss:$16 sps:$4 sm:$0xff]  }
  0xf6   : > { %v438_v34 = vld [vmem:[%s12128_s16 + $0x18] sm:$0xff]  ;;  %v10227_v7 = vld [vmem:[%s12136_s11 + $0x3e4] ss:$16 sps:$4 sm:$0xff]  }
  0xf7   : > { %v470_v35 = vld [vmem:[%s12128_s16 + $0x118] sm:$0xff] }
  0xf8   : > { %6692 = vmatpush1.bf16.msra.mxu0 %v10091_v36  ;;  %7380 = vmatpush1.bf16.msra.mxu1 %v10092_v37  ;;  %v10171_v36 = vld [vmem:[%s12136_s11 + $0x2c0] ss:$16 sps:$4 sm:$0xff]   ;;  %v10174_v37 = vld [vmem:[%s12136_s11 + $0x2c8] ss:$16 sps:$4 sm:$0xff]   ;;  %v10194_v48 = vld [vmem:[%s12136_s11 + $0x32c] ss:$16 sps:$4 sm:$0xff]  }
  0xf9   : > { %6693 = vmatprep.subr.bf16.mxu0 %v10093_v38  ;;  %7381 = vmatprep.subr.bf16.mxu1 %v10095_v39  ;;  %v502_v38 = vpack.c.bf16 %v470_v35, %v438_v34  ;;  %v10179_v39 = vld [vmem:[%s12136_s11 + $0x2e4] ss:$16 sps:$4 sm:$0xff]   ;;  %v10200_v52 = vld [vmem:[%s12136_s11 + $0x34c] ss:$16 sps:$4 sm:$0xff]   ;;  %v10255_v35 = vld [vmem:[%s12136_s11 + $0x480] ss:$16 sps:$4 sm:$0xff]  }
  0xfa   : > { %v10260_v34 = vld [vmem:[%s12136_s11 + $0x48c] ss:$16 sps:$4 sm:$0xff]  }
  0xfc   : > { %6694 = vmatpush1.bf16.msra.mxu0 %v10097_v40  ;;  %7382 = vmatpush1.bf16.msra.mxu1 %v10098_v41  ;;  %v10182_v40 = vld [vmem:[%s12136_s11 + $0x2ec] ss:$16 sps:$4 sm:$0xff]   ;;  %v10177_v41 = vld [vmem:[%s12136_s11 + $0x2e0] ss:$16 sps:$4 sm:$0xff]  }
  0xfd   : > { %6695 = vmatprep.subr.bf16.mxu0 %v10099_v42  ;;  %7383 = vmatprep.subr.bf16.mxu1 %v10101_v43  ;;  %v10180_v42 = vld [vmem:[%s12136_s11 + $0x2e8] ss:$16 sps:$4 sm:$0xff]   ;;  %v10185_v43 = vld [vmem:[%s12136_s11 + $0x304] ss:$16 sps:$4 sm:$0xff]  }
 0x100   : > { %6696 = vmatpush1.bf16.msra.mxu0 %v10103_v44  ;;  %7384 = vmatpush1.bf16.msra.mxu1 %v10104_v45  ;;  %v10188_v44 = vld [vmem:[%s12136_s11 + $0x30c] ss:$16 sps:$4 sm:$0xff]   ;;  %v10183_v45 = vld [vmem:[%s12136_s11 + $0x300] ss:$16 sps:$4 sm:$0xff]  }
 0x101   : > { %6697 = vmatprep.subr.bf16.mxu0 %v10105_v46  ;;  %7385 = vmatprep.subr.bf16.mxu1 %v10107_v47  ;;  %v10186_v46 = vld [vmem:[%s12136_s11 + $0x308] ss:$16 sps:$4 sm:$0xff]   ;;  %v10191_v47 = vld [vmem:[%s12136_s11 + $0x324] ss:$16 sps:$4 sm:$0xff]  }
 0x104   : > { %6698 = vmatpush1.bf16.msra.mxu0 %v10109_v50  ;;  %7386 = vmatpush1.bf16.msra.mxu1 %v10110_v51  ;;  %v10192_v50 = vld [vmem:[%s12136_s11 + $0x328] ss:$16 sps:$4 sm:$0xff]   ;;  %v10197_v51 = vld [vmem:[%s12136_s11 + $0x344] ss:$16 sps:$4 sm:$0xff]  }
 0x105   : > { %6699 = vmatprep.subr.bf16.mxu0 %v10111_v53  ;;  %7387 = vmatprep.subr.bf16.mxu1 %v10113_v54  ;;  %v10195_v53 = vld [vmem:[%s12136_s11 + $0x340] ss:$16 sps:$4 sm:$0xff]   ;;  %v10198_v54 = vld [vmem:[%s12136_s11 + $0x348] ss:$16 sps:$4 sm:$0xff]  }
 0x108   : > { %6700 = vmatpush1.bf16.msra.mxu0 %v10115_v55  ;;  %7388 = vmatpush1.bf16.msra.mxu1 %v10116_v56  ;;  %v10203_v55 = vld [vmem:[%s12136_s11 + $0x364] ss:$16 sps:$4 sm:$0xff]   ;;  %v10206_v56 = vld [vmem:[%s12136_s11 + $0x36c] ss:$16 sps:$4 sm:$0xff]  }
 0x109   : > { %6701 = vmatprep.subr.bf16.mxu0 %v10117_v57  ;;  %7389 = vmatprep.subr.bf16.mxu1 %v10119_v58  ;;  %v10201_v57 = vld [vmem:[%s12136_s11 + $0x360] ss:$16 sps:$4 sm:$0xff]   ;;  %v10204_v58 = vld [vmem:[%s12136_s11 + $0x368] ss:$16 sps:$4 sm:$0xff]  }
 0x10c   : > { %6702 = vmatpush1.bf16.msra.mxu0 %v10121_v59  ;;  %7390 = vmatpush1.bf16.msra.mxu1 %v10122_v60  ;;  %v10209_v59 = vld [vmem:[%s12136_s11 + $0x384] ss:$16 sps:$4 sm:$0xff]   ;;  %v10212_v60 = vld [vmem:[%s12136_s11 + $0x38c] ss:$16 sps:$4 sm:$0xff]  }
 0x10d   : > { %6703 = vmatprep.subr.bf16.mxu0 %v10123_v61  ;;  %7391 = vmatprep.subr.bf16.mxu1 %v10125_v62  ;;  %v10207_v61 = vld [vmem:[%s12136_s11 + $0x380] ss:$16 sps:$4 sm:$0xff]   ;;  %v10210_v62 = vld [vmem:[%s12136_s11 + $0x388] ss:$16 sps:$4 sm:$0xff]  }
 0x110   : > { %6704 = vmatpush1.bf16.msra.mxu0 %v10127_v63  ;;  %7392 = vmatpush1.bf16.msra.mxu1 %v10128_v0  ;;  %v10215_v63 = vld [vmem:[%s12136_s11 + $0x3a4] ss:$16 sps:$4 sm:$0xff]   ;;  %v10218_v0 = vld [vmem:[%s12136_s11 + $0x3ac] ss:$16 sps:$4 sm:$0xff]  }
 0x111   : > { %6705 = vmatprep.subr.bf16.mxu0 %v10129_v1  ;;  %7393 = vmatprep.subr.bf16.mxu1 %v10131_v2  ;;  %v10213_v1 = vld [vmem:[%s12136_s11 + $0x3a0] ss:$16 sps:$4 sm:$0xff]   ;;  %v10216_v2 = vld [vmem:[%s12136_s11 + $0x3a8] ss:$16 sps:$4 sm:$0xff]  }
 0x114   : > { %6706 = vmatpush1.bf16.msra.mxu0 %v10133_v3  ;;  %7394 = vmatpush1.bf16.msra.mxu1 %v10134_v4  ;;  %v10221_v3 = vld [vmem:[%s12136_s11 + $0x3c4] ss:$16 sps:$4 sm:$0xff]   ;;  %v10224_v4 = vld [vmem:[%s12136_s11 + $0x3cc] ss:$16 sps:$4 sm:$0xff]  }
 0x115   : > { %6718 = vmatprep.subr.bf16.mxu0 %v10137_v5  ;;  %7406 = vmatprep.subr.bf16.mxu1 %v10140_v8  ;;  %v10219_v5 = vld [vmem:[%s12136_s11 + $0x3c0] ss:$16 sps:$4 sm:$0xff]   ;;  %v10230_v8 = vld [vmem:[%s12136_s11 + $0x3ec] ss:$16 sps:$4 sm:$0xff]  }
 0x117   : > { %6708 = vmatmul.mubr.bf16.vlgmr.msra.gmra.mrb[0].mxu0 %v499_v11  ;;  %7396 = vmatmul.mubr.bf16.vlgmr.msra.gmra.mrb[0].mxu1 %v499_v11  ;;  %v10233_v11 = vld [vmem:[%s12136_s11 + $0x404] ss:$16 sps:$4 sm:$0xff]  }
 0x118   : > { %6719 = vmatpush1.bf16.msra.mxu0 %v10135_v9  ;;  %7407 = vmatpush1.bf16.msra.mxu1 %v10138_v10  ;;  %v10225_v9 = vld [vmem:[%s12136_s11 + $0x3e0] ss:$16 sps:$4 sm:$0xff]   ;;  %v10228_v10 = vld [vmem:[%s12136_s11 + $0x3e8] ss:$16 sps:$4 sm:$0xff]  }
 0x119   : > { %6720 = vmatprep.subr.bf16.mxu0 %v10143_v12  ;;  %7408 = vmatprep.subr.bf16.mxu1 %v10146_v13  ;;  %v437_v12 = vld [vmem:[%s12128_s16 + $0x10] sm:$0xff] }
 0x11a   : > { %6750 = vmatprep.mubr.bf16.mxu0 %v502_v38  ;;  %7438 = vmatprep.mubr.bf16.mxu1 %v502_v38  ;;  %v469_v13 = vld [vmem:[%s12128_s16 + $0x110] sm:$0xff]  ;;  %v10266_v38 = vld [vmem:[%s12136_s11 + $0x4ac] ss:$16 sps:$4 sm:$0xff]  }
 0x11c   : > { %6721 = vmatpush1.bf16.msra.mxu0 %v10141_v14  ;;  %7409 = vmatpush1.bf16.msra.mxu1 %v10144_v15  ;;  %v10236_v14 = vld [vmem:[%s12136_s11 + $0x40c] ss:$16 sps:$4 sm:$0xff]   ;;  %v10231_v15 = vld [vmem:[%s12136_s11 + $0x400] ss:$16 sps:$4 sm:$0xff]  }
 0x11d   : > { %6722 = vmatprep.subr.bf16.mxu0 %v10149_v16  ;;  %7410 = vmatprep.subr.bf16.mxu1 %v10152_v17  ;;  %v10234_v16 = vld [vmem:[%s12136_s11 + $0x408] ss:$16 sps:$4 sm:$0xff]   ;;  %v501_v17 = vpack.c.bf16 %v469_v13, %v437_v12  ;;  %v10323_v13 = vld [vmem:[%s12136_s11 + $0x5e4] ss:$16 sps:$4 sm:$0xff]  }
 0x11e   : > { %v10318_v12 = vld [vmem:[%s12136_s11 + $0x5c8] ss:$16 sps:$4 sm:$0xff]  }
 0x120   : > { %6723 = vmatpush1.bf16.msra.mxu0 %v10147_v18  ;;  %7411 = vmatpush1.bf16.msra.mxu1 %v10150_v19  ;;  %v10239_v18 = vld [vmem:[%s12136_s11 + $0x424] ss:$16 sps:$4 sm:$0xff]   ;;  %v10242_v19 = vld [vmem:[%s12136_s11 + $0x42c] ss:$16 sps:$4 sm:$0xff]  }
 0x121   : > { %6724 = vmatprep.subr.bf16.mxu0 %v10155_v20  ;;  %7412 = vmatprep.subr.bf16.mxu1 %v10158_v21  ;;  %v440_v20 = vld [vmem:[%s12128_s16 + $0x28] sm:$0xff] }
 0x122   : > { %v472_v21 = vld [vmem:[%s12128_s16 + $0x128] sm:$0xff] }
 0x124   : > { %6725 = vmatpush1.bf16.msra.mxu0 %v10153_v22  ;;  %7413 = vmatpush1.bf16.msra.mxu1 %v10156_v23  ;;  %v10237_v22 = vld [vmem:[%s12136_s11 + $0x420] ss:$16 sps:$4 sm:$0xff]   ;;  %v10240_v23 = vld [vmem:[%s12136_s11 + $0x428] ss:$16 sps:$4 sm:$0xff]  }
 0x125   : > { %6726 = vmatprep.subr.bf16.mxu0 %v10161_v24  ;;  %7414 = vmatprep.subr.bf16.mxu1 %v10164_v25  ;;  %v504_v24 = vpack.c.bf16 %v472_v21, %v440_v20  ;;  %v10245_v25 = vld [vmem:[%s12136_s11 + $0x444] ss:$16 sps:$4 sm:$0xff]   ;;  %v10332_v20 = vld [vmem:[%s12136_s11 + $0x60c] ss:$16 sps:$4 sm:$0xff]   ;;  %v10327_v21 = vld [vmem:[%s12136_s11 + $0x600] ss:$16 sps:$4 sm:$0xff]  }
 0x128   : > { %6727 = vmatpush1.bf16.msra.mxu0 %v10159_v26  ;;  %7415 = vmatpush1.bf16.msra.mxu1 %v10162_v27  ;;  %v10248_v26 = vld [vmem:[%s12136_s11 + $0x44c] ss:$16 sps:$4 sm:$0xff]   ;;  %v10243_v27 = vld [vmem:[%s12136_s11 + $0x440] ss:$16 sps:$4 sm:$0xff]  }
 0x129   : > { %6728 = vmatprep.subr.bf16.mxu0 %v10167_v28  ;;  %7416 = vmatprep.subr.bf16.mxu1 %v10170_v29  ;;  %v10246_v28 = vld [vmem:[%s12136_s11 + $0x448] ss:$16 sps:$4 sm:$0xff]   ;;  %v10251_v29 = vld [vmem:[%s12136_s11 + $0x464] ss:$16 sps:$4 sm:$0xff]  }
 0x12c   : > { %6729 = vmatpush1.bf16.msra.mxu0 %v10165_v30  ;;  %7417 = vmatpush1.bf16.msra.mxu1 %v10168_v31  ;;  %v10254_v30 = vld [vmem:[%s12136_s11 + $0x46c] ss:$16 sps:$4 sm:$0xff]   ;;  %v10249_v31 = vld [vmem:[%s12136_s11 + $0x460] ss:$16 sps:$4 sm:$0xff]  }
 0x12d   : > { %6730 = vmatprep.subr.bf16.mxu0 %v10173_v32  ;;  %7418 = vmatprep.subr.bf16.mxu1 %v10176_v33  ;;  %v10252_v32 = vld [vmem:[%s12136_s11 + $0x468] ss:$16 sps:$4 sm:$0xff]   ;;  %v10257_v33 = vld [vmem:[%s12136_s11 + $0x484] ss:$16 sps:$4 sm:$0xff]  }
 0x130   : > { %6731 = vmatpush1.bf16.msra.mxu0 %v10171_v36  ;;  %7419 = vmatpush1.bf16.msra.mxu1 %v10174_v37  ;;  %v10258_v36 = vld [vmem:[%s12136_s11 + $0x488] ss:$16 sps:$4 sm:$0xff]   ;;  %v10263_v37 = vld [vmem:[%s12136_s11 + $0x4a4] ss:$16 sps:$4 sm:$0xff]  }
 0x131   : > { %6732 = vmatprep.subr.bf16.mxu0 %v10179_v39  ;;  %7420 = vmatprep.subr.bf16.mxu1 %v10182_v40  ;;  %v10261_v39 = vld [vmem:[%s12136_s11 + $0x4a0] ss:$16 sps:$4 sm:$0xff]   ;;  %v10264_v40 = vld [vmem:[%s12136_s11 + $0x4a8] ss:$16 sps:$4 sm:$0xff]  }
 0x134   : > { %6733 = vmatpush1.bf16.msra.mxu0 %v10177_v41  ;;  %7421 = vmatpush1.bf16.msra.mxu1 %v10180_v42  ;;  %v10269_v41 = vld [vmem:[%s12136_s11 + $0x4c4] ss:$16 sps:$4 sm:$0xff]   ;;  %v10272_v42 = vld [vmem:[%s12136_s11 + $0x4cc] ss:$16 sps:$4 sm:$0xff]  }
 0x135   : > { %6734 = vmatprep.subr.bf16.mxu0 %v10185_v43  ;;  %7422 = vmatprep.subr.bf16.mxu1 %v10188_v44  ;;  %v10267_v43 = vld [vmem:[%s12136_s11 + $0x4c0] ss:$16 sps:$4 sm:$0xff]   ;;  %v10270_v44 = vld [vmem:[%s12136_s11 + $0x4c8] ss:$16 sps:$4 sm:$0xff]  }
 0x138   : > { %6735 = vmatpush1.bf16.msra.mxu0 %v10183_v45  ;;  %7423 = vmatpush1.bf16.msra.mxu1 %v10186_v46  ;;  %v10275_v45 = vld [vmem:[%s12136_s11 + $0x4e4] ss:$16 sps:$4 sm:$0xff]   ;;  %v10278_v46 = vld [vmem:[%s12136_s11 + $0x4ec] ss:$16 sps:$4 sm:$0xff]  }
 0x139   : > { %6736 = vmatprep.subr.bf16.mxu0 %v10191_v47  ;;  %7424 = vmatprep.subr.bf16.mxu1 %v10194_v48  ;;  %v10273_v47 = vld [vmem:[%s12136_s11 + $0x4e0] ss:$16 sps:$4 sm:$0xff]   ;;  %v10276_v48 = vld [vmem:[%s12136_s11 + $0x4e8] ss:$16 sps:$4 sm:$0xff]  }
 0x13c   : > { %6737 = vmatpush1.bf16.msra.mxu0 %v10189_v49  ;;  %7425 = vmatpush1.bf16.msra.mxu1 %v10192_v50  ;;  %v10281_v49 = vld [vmem:[%s12136_s11 + $0x504] ss:$16 sps:$4 sm:$0xff]   ;;  %v10284_v50 = vld [vmem:[%s12136_s11 + $0x50c] ss:$16 sps:$4 sm:$0xff]  }
 0x13d   : > { %6738 = vmatprep.subr.bf16.mxu0 %v10197_v51  ;;  %7426 = vmatprep.subr.bf16.mxu1 %v10200_v52  ;;  %v10279_v51 = vld [vmem:[%s12136_s11 + $0x500] ss:$16 sps:$4 sm:$0xff]   ;;  %v10282_v52 = vld [vmem:[%s12136_s11 + $0x508] ss:$16 sps:$4 sm:$0xff]  }
 0x140   : > { %6739 = vmatpush1.bf16.msra.mxu0 %v10195_v53  ;;  %7427 = vmatpush1.bf16.msra.mxu1 %v10198_v54  ;;  %v10287_v53 = vld [vmem:[%s12136_s11 + $0x524] ss:$16 sps:$4 sm:$0xff]   ;;  %v10290_v54 = vld [vmem:[%s12136_s11 + $0x52c] ss:$16 sps:$4 sm:$0xff]  }
 0x141   : > { %6740 = vmatprep.subr.bf16.mxu0 %v10203_v55  ;;  %7428 = vmatprep.subr.bf16.mxu1 %v10206_v56  ;;  %v10285_v55 = vld [vmem:[%s12136_s11 + $0x520] ss:$16 sps:$4 sm:$0xff]   ;;  %v10288_v56 = vld [vmem:[%s12136_s11 + $0x528] ss:$16 sps:$4 sm:$0xff]  }
 0x144   : > { %6741 = vmatpush1.bf16.msra.mxu0 %v10201_v57  ;;  %7429 = vmatpush1.bf16.msra.mxu1 %v10204_v58  ;;  %v10293_v57 = vld [vmem:[%s12136_s11 + $0x544] ss:$16 sps:$4 sm:$0xff]   ;;  %v10296_v58 = vld [vmem:[%s12136_s11 + $0x54c] ss:$16 sps:$4 sm:$0xff]  }
 0x145   : > { %6742 = vmatprep.subr.bf16.mxu0 %v10209_v59  ;;  %7430 = vmatprep.subr.bf16.mxu1 %v10212_v60  ;;  %v10291_v59 = vld [vmem:[%s12136_s11 + $0x540] ss:$16 sps:$4 sm:$0xff]   ;;  %v10294_v60 = vld [vmem:[%s12136_s11 + $0x548] ss:$16 sps:$4 sm:$0xff]  }
 0x148   : > { %6743 = vmatpush1.bf16.msra.mxu0 %v10207_v61  ;;  %7431 = vmatpush1.bf16.msra.mxu1 %v10210_v62  ;;  %v10299_v61 = vld [vmem:[%s12136_s11 + $0x564] ss:$16 sps:$4 sm:$0xff]   ;;  %v10302_v62 = vld [vmem:[%s12136_s11 + $0x56c] ss:$16 sps:$4 sm:$0xff]  }
 0x149   : > { %6744 = vmatprep.subr.bf16.mxu0 %v10215_v63  ;;  %7432 = vmatprep.subr.bf16.mxu1 %v10218_v0  ;;  %v10297_v63 = vld [vmem:[%s12136_s11 + $0x560] ss:$16 sps:$4 sm:$0xff]   ;;  %v10300_v0 = vld [vmem:[%s12136_s11 + $0x568] ss:$16 sps:$4 sm:$0xff]  }
 0x14c   : > { %6745 = vmatpush1.bf16.msra.mxu0 %v10213_v1  ;;  %7433 = vmatpush1.bf16.msra.mxu1 %v10216_v2  ;;  %v10305_v1 = vld [vmem:[%s12136_s11 + $0x584] ss:$16 sps:$4 sm:$0xff]   ;;  %v10308_v2 = vld [vmem:[%s12136_s11 + $0x58c] ss:$16 sps:$4 sm:$0xff]  }
 0x14d   : > { %6746 = vmatprep.subr.bf16.mxu0 %v10221_v3  ;;  %7434 = vmatprep.subr.bf16.mxu1 %v10224_v4  ;;  %v10303_v3 = vld [vmem:[%s12136_s11 + $0x580] ss:$16 sps:$4 sm:$0xff]   ;;  %v10306_v4 = vld [vmem:[%s12136_s11 + $0x588] ss:$16 sps:$4 sm:$0xff]  }
 0x150   : > { %6747 = vmatpush1.bf16.msra.mxu0 %v10219_v5  ;;  %7435 = vmatpush1.bf16.msra.mxu1 %v10222_v6  ;;  %v10311_v5 = vld [vmem:[%s12136_s11 + $0x5a4] ss:$16 sps:$4 sm:$0xff]   ;;  %v10314_v6 = vld [vmem:[%s12136_s11 + $0x5ac] ss:$16 sps:$4 sm:$0xff]  }
 0x151   : > { %6748 = vmatprep.subr.bf16.mxu0 %v10227_v7  ;;  %7436 = vmatprep.subr.bf16.mxu1 %v10230_v8  ;;  %v10309_v7 = vld [vmem:[%s12136_s11 + $0x5a0] ss:$16 sps:$4 sm:$0xff]   ;;  %v10312_v8 = vld [vmem:[%s12136_s11 + $0x5a8] ss:$16 sps:$4 sm:$0xff]  }
 0x154   : > { %6749 = vmatpush1.bf16.msra.mxu0 %v10225_v9  ;;  %7437 = vmatpush1.bf16.msra.mxu1 %v10228_v10  ;;  %v10317_v9 = vld [vmem:[%s12136_s11 + $0x5c4] ss:$16 sps:$4 sm:$0xff]   ;;  %v10320_v10 = vld [vmem:[%s12136_s11 + $0x5cc] ss:$16 sps:$4 sm:$0xff]  }
 0x155   : > { %6761 = vmatprep.subr.bf16.mxu0 %v10233_v11  ;;  %7449 = vmatprep.subr.bf16.mxu1 %v10236_v14  ;;  %v10315_v11 = vld [vmem:[%s12136_s11 + $0x5c0] ss:$16 sps:$4 sm:$0xff]   ;;  %v10326_v14 = vld [vmem:[%s12136_s11 + $0x5ec] ss:$16 sps:$4 sm:$0xff]  }
 0x157   : > { %6751 = vmatmul.mubr.bf16.vlgmr.msra.gmra.mrb[0].mxu0 %v501_v17  ;;  %7439 = vmatmul.mubr.bf16.vlgmr.msra.gmra.mrb[0].mxu1 %v501_v17  ;;  %v10329_v17 = vld [vmem:[%s12136_s11 + $0x604] ss:$16 sps:$4 sm:$0xff]  }
 0x158   : > { %6762 = vmatpush1.bf16.msra.mxu0 %v10231_v15  ;;  %7450 = vmatpush1.bf16.msra.mxu1 %v10234_v16  ;;  %v10321_v15 = vld [vmem:[%s12136_s11 + $0x5e0] ss:$16 sps:$4 sm:$0xff]   ;;  %v10324_v16 = vld [vmem:[%s12136_s11 + $0x5e8] ss:$16 sps:$4 sm:$0xff]  }
 0x159   : > { %6763 = vmatprep.subr.bf16.mxu0 %v10239_v18  ;;  %7451 = vmatprep.subr.bf16.mxu1 %v10242_v19  ;;  %v439_v18 = vld [vmem:[%s12128_s16 + $0x20] sm:$0xff] }
 0x15a   : > { %6793 = vmatprep.mubr.bf16.mxu0 %v504_v24  ;;  %7481 = vmatprep.mubr.bf16.mxu1 %v504_v24  ;;  %v471_v19 = vld [vmem:[%s12128_s16 + $0x120] sm:$0xff]  ;;  %v442_v24 = vld [vmem:[%s12128_s16 + $0x38] sm:$0xff] }
 0x15c   : > { %6764 = vmatpush1.bf16.msra.mxu0 %v10237_v22  ;;  %7452 = vmatpush1.bf16.msra.mxu1 %v10240_v23  ;;  %v10330_v22 = vld [vmem:[%s12136_s11 + $0x608] ss:$16 sps:$4 sm:$0xff]   ;;  %v503_v23 = vpack.c.bf16 %v471_v19, %v439_v18  ;;  %v10419_v19 = vld [vmem:[%s12136_s11 + $0x7e4] ss:$16 sps:$4 sm:$0xff]  }
 0x15d   : > { %6765 = vmatprep.subr.bf16.mxu0 %v10245_v25  ;;  %7453 = vmatprep.subr.bf16.mxu1 %v10248_v26  ;;  %v474_v25 = vld [vmem:[%s12128_s16 + $0x138] sm:$0xff]  ;;  %v10335_v26 = vld [vmem:[%s12136_s11 + $0x624] ss:$16 sps:$4 sm:$0xff]  }
 0x15e   : > { %v10414_v18 = vld [vmem:[%s12136_s11 + $0x7c8] ss:$16 sps:$4 sm:$0xff]  }
 0x160   : > { %6766 = vmatpush1.bf16.msra.mxu0 %v10243_v27  ;;  %7454 = vmatpush1.bf16.msra.mxu1 %v10246_v28  ;;  %v10338_v27 = vld [vmem:[%s12136_s11 + $0x62c] ss:$16 sps:$4 sm:$0xff]   ;;  %v506_v28 = vpack.c.bf16 %v474_v25, %v442_v24  ;;  %v441_v24 = vld [vmem:[%s12128_s16 + $0x30] sm:$0xff] }
 0x161   : > { %6767 = vmatprep.subr.bf16.mxu0 %v10251_v29  ;;  %7455 = vmatprep.subr.bf16.mxu1 %v10254_v30  ;;  %v10333_v29 = vld [vmem:[%s12136_s11 + $0x620] ss:$16 sps:$4 sm:$0xff]   ;;  %v10336_v30 = vld [vmem:[%s12136_s11 + $0x628] ss:$16 sps:$4 sm:$0xff]  }
 0x162   : > { %v473_v25 = vld [vmem:[%s12128_s16 + $0x130] sm:$0xff] }
 0x164   : > { %6768 = vmatpush1.bf16.msra.mxu0 %v10249_v31  ;;  %7456 = vmatpush1.bf16.msra.mxu1 %v10252_v32  ;;  %v10341_v31 = vld [vmem:[%s12136_s11 + $0x644] ss:$16 sps:$4 sm:$0xff]   ;;  %v10344_v32 = vld [vmem:[%s12136_s11 + $0x64c] ss:$16 sps:$4 sm:$0xff]  }
 0x165   : > { %6769 = vmatprep.subr.bf16.mxu0 %v10257_v33  ;;  %7457 = vmatprep.subr.bf16.mxu1 %v10260_v34  ;;  %v10339_v33 = vld [vmem:[%s12136_s11 + $0x640] ss:$16 sps:$4 sm:$0xff]   ;;  %v10342_v34 = vld [vmem:[%s12136_s11 + $0x648] ss:$16 sps:$4 sm:$0xff]  }
 0x168   : > { %6770 = vmatpush1.bf16.msra.mxu0 %v10255_v35  ;;  %7458 = vmatpush1.bf16.msra.mxu1 %v10258_v36  ;;  %v10347_v35 = vld [vmem:[%s12136_s11 + $0x664] ss:$16 sps:$4 sm:$0xff]   ;;  %v10350_v36 = vld [vmem:[%s12136_s11 + $0x66c] ss:$16 sps:$4 sm:$0xff]  }
 0x169   : > { %6771 = vmatprep.subr.bf16.mxu0 %v10263_v37  ;;  %7459 = vmatprep.subr.bf16.mxu1 %v10266_v38  ;;  %v10345_v37 = vld [vmem:[%s12136_s11 + $0x660] ss:$16 sps:$4 sm:$0xff]   ;;  %v10348_v38 = vld [vmem:[%s12136_s11 + $0x668] ss:$16 sps:$4 sm:$0xff]  }
 0x16c   : > { %6772 = vmatpush1.bf16.msra.mxu0 %v10261_v39  ;;  %7460 = vmatpush1.bf16.msra.mxu1 %v10264_v40  ;;  %v10353_v39 = vld [vmem:[%s12136_s11 + $0x684] ss:$16 sps:$4 sm:$0xff]   ;;  %v10356_v40 = vld [vmem:[%s12136_s11 + $0x68c] ss:$16 sps:$4 sm:$0xff]  }
 0x16d   : > { %6773 = vmatprep.subr.bf16.mxu0 %v10269_v41  ;;  %7461 = vmatprep.subr.bf16.mxu1 %v10272_v42  ;;  %v10351_v41 = vld [vmem:[%s12136_s11 + $0x680] ss:$16 sps:$4 sm:$0xff]   ;;  %v10354_v42 = vld [vmem:[%s12136_s11 + $0x688] ss:$16 sps:$4 sm:$0xff]  }
 0x170   : > { %6774 = vmatpush1.bf16.msra.mxu0 %v10267_v43  ;;  %7462 = vmatpush1.bf16.msra.mxu1 %v10270_v44  ;;  %v10359_v43 = vld [vmem:[%s12136_s11 + $0x6a4] ss:$16 sps:$4 sm:$0xff]   ;;  %v10362_v44 = vld [vmem:[%s12136_s11 + $0x6ac] ss:$16 sps:$4 sm:$0xff]  }
 0x171   : > { %6775 = vmatprep.subr.bf16.mxu0 %v10275_v45  ;;  %7463 = vmatprep.subr.bf16.mxu1 %v10278_v46  ;;  %v10357_v45 = vld [vmem:[%s12136_s11 + $0x6a0] ss:$16 sps:$4 sm:$0xff]   ;;  %v10360_v46 = vld [vmem:[%s12136_s11 + $0x6a8] ss:$16 sps:$4 sm:$0xff]  }
 0x174   : > { %6776 = vmatpush1.bf16.msra.mxu0 %v10273_v47  ;;  %7464 = vmatpush1.bf16.msra.mxu1 %v10276_v48  ;;  %v10365_v47 = vld [vmem:[%s12136_s11 + $0x6c4] ss:$16 sps:$4 sm:$0xff]   ;;  %v10368_v48 = vld [vmem:[%s12136_s11 + $0x6cc] ss:$16 sps:$4 sm:$0xff]  }
 0x175   : > { %6777 = vmatprep.subr.bf16.mxu0 %v10281_v49  ;;  %7465 = vmatprep.subr.bf16.mxu1 %v10284_v50  ;;  %v10363_v49 = vld [vmem:[%s12136_s11 + $0x6c0] ss:$16 sps:$4 sm:$0xff]   ;;  %v10366_v50 = vld [vmem:[%s12136_s11 + $0x6c8] ss:$16 sps:$4 sm:$0xff]  }
 0x178   : > { %6778 = vmatpush1.bf16.msra.mxu0 %v10279_v51  ;;  %7466 = vmatpush1.bf16.msra.mxu1 %v10282_v52  ;;  %v10371_v51 = vld [vmem:[%s12136_s11 + $0x6e4] ss:$16 sps:$4 sm:$0xff]   ;;  %v10374_v52 = vld [vmem:[%s12136_s11 + $0x6ec] ss:$16 sps:$4 sm:$0xff]  }
 0x179   : > { %6779 = vmatprep.subr.bf16.mxu0 %v10287_v53  ;;  %7467 = vmatprep.subr.bf16.mxu1 %v10290_v54  ;;  %v10369_v53 = vld [vmem:[%s12136_s11 + $0x6e0] ss:$16 sps:$4 sm:$0xff]   ;;  %v10372_v54 = vld [vmem:[%s12136_s11 + $0x6e8] ss:$16 sps:$4 sm:$0xff]  }
 0x17c   : > { %6780 = vmatpush1.bf16.msra.mxu0 %v10285_v55  ;;  %7468 = vmatpush1.bf16.msra.mxu1 %v10288_v56  ;;  %v10377_v55 = vld [vmem:[%s12136_s11 + $0x704] ss:$16 sps:$4 sm:$0xff]   ;;  %v10380_v56 = vld [vmem:[%s12136_s11 + $0x70c] ss:$16 sps:$4 sm:$0xff]  }
 0x17d   : > { %6781 = vmatprep.subr.bf16.mxu0 %v10293_v57  ;;  %7469 = vmatprep.subr.bf16.mxu1 %v10296_v58  ;;  %v10375_v57 = vld [vmem:[%s12136_s11 + $0x700] ss:$16 sps:$4 sm:$0xff]   ;;  %v10378_v58 = vld [vmem:[%s12136_s11 + $0x708] ss:$16 sps:$4 sm:$0xff]  }
 0x180   : > { %6782 = vmatpush1.bf16.msra.mxu0 %v10291_v59  ;;  %7470 = vmatpush1.bf16.msra.mxu1 %v10294_v60  ;;  %v10383_v59 = vld [vmem:[%s12136_s11 + $0x724] ss:$16 sps:$4 sm:$0xff]   ;;  %v10386_v60 = vld [vmem:[%s12136_s11 + $0x72c] ss:$16 sps:$4 sm:$0xff]  }
 0x181   : > { %6783 = vmatprep.subr.bf16.mxu0 %v10299_v61  ;;  %7471 = vmatprep.subr.bf16.mxu1 %v10302_v62  ;;  %v10381_v61 = vld [vmem:[%s12136_s11 + $0x720] ss:$16 sps:$4 sm:$0xff]   ;;  %v10384_v62 = vld [vmem:[%s12136_s11 + $0x728] ss:$16 sps:$4 sm:$0xff]  }
 0x184   : > { %6784 = vmatpush1.bf16.msra.mxu0 %v10297_v63  ;;  %7472 = vmatpush1.bf16.msra.mxu1 %v10300_v0  ;;  %v10389_v63 = vld [vmem:[%s12136_s11 + $0x744] ss:$16 sps:$4 sm:$0xff]   ;;  %v10392_v0 = vld [vmem:[%s12136_s11 + $0x74c] ss:$16 sps:$4 sm:$0xff]  }
 0x185   : > { %6785 = vmatprep.subr.bf16.mxu0 %v10305_v1  ;;  %7473 = vmatprep.subr.bf16.mxu1 %v10308_v2  ;;  %v10387_v1 = vld [vmem:[%s12136_s11 + $0x740] ss:$16 sps:$4 sm:$0xff]   ;;  %v10390_v2 = vld [vmem:[%s12136_s11 + $0x748] ss:$16 sps:$4 sm:$0xff]  }
 0x188   : > { %6786 = vmatpush1.bf16.msra.mxu0 %v10303_v3  ;;  %7474 = vmatpush1.bf16.msra.mxu1 %v10306_v4  ;;  %v10395_v3 = vld [vmem:[%s12136_s11 + $0x764] ss:$16 sps:$4 sm:$0xff]   ;;  %v10398_v4 = vld [vmem:[%s12136_s11 + $0x76c] ss:$16 sps:$4 sm:$0xff]  }
 0x189   : > { %6787 = vmatprep.subr.bf16.mxu0 %v10311_v5  ;;  %7475 = vmatprep.subr.bf16.mxu1 %v10314_v6  ;;  %v10393_v5 = vld [vmem:[%s12136_s11 + $0x760] ss:$16 sps:$4 sm:$0xff]   ;;  %v10396_v6 = vld [vmem:[%s12136_s11 + $0x768] ss:$16 sps:$4 sm:$0xff]  }
 0x18c   : > { %6788 = vmatpush1.bf16.msra.mxu0 %v10309_v7  ;;  %7476 = vmatpush1.bf16.msra.mxu1 %v10312_v8  ;;  %v10401_v7 = vld [vmem:[%s12136_s11 + $0x784] ss:$16 sps:$4 sm:$0xff]   ;;  %v10404_v8 = vld [vmem:[%s12136_s11 + $0x78c] ss:$16 sps:$4 sm:$0xff]  }
 0x18d   : > { %6789 = vmatprep.subr.bf16.mxu0 %v10317_v9  ;;  %7477 = vmatprep.subr.bf16.mxu1 %v10320_v10  ;;  %v10399_v9 = vld [vmem:[%s12136_s11 + $0x780] ss:$16 sps:$4 sm:$0xff]   ;;  %v10402_v10 = vld [vmem:[%s12136_s11 + $0x788] ss:$16 sps:$4 sm:$0xff]  }
 0x190   : > { %6790 = vmatpush1.bf16.msra.mxu0 %v10315_v11  ;;  %7478 = vmatpush1.bf16.msra.mxu1 %v10318_v12  ;;  %v10407_v11 = vld [vmem:[%s12136_s11 + $0x7a4] ss:$16 sps:$4 sm:$0xff]   ;;  %v10410_v12 = vld [vmem:[%s12136_s11 + $0x7ac] ss:$16 sps:$4 sm:$0xff]  }
 0x191   : > { %6791 = vmatprep.subr.bf16.mxu0 %v10323_v13  ;;  %7479 = vmatprep.subr.bf16.mxu1 %v10326_v14  ;;  %v10405_v13 = vld [vmem:[%s12136_s11 + $0x7a0] ss:$16 sps:$4 sm:$0xff]   ;;  %v10408_v14 = vld [vmem:[%s12136_s11 + $0x7a8] ss:$16 sps:$4 sm:$0xff]  }
 0x194   : > { %6792 = vmatpush1.bf16.msra.mxu0 %v10321_v15  ;;  %7480 = vmatpush1.bf16.msra.mxu1 %v10324_v16  ;;  %v10413_v15 = vld [vmem:[%s12136_s11 + $0x7c4] ss:$16 sps:$4 sm:$0xff]   ;;  %v10416_v16 = vld [vmem:[%s12136_s11 + $0x7cc] ss:$16 sps:$4 sm:$0xff]  }
 0x195   : > { %6804 = vmatprep.subr.bf16.mxu0 %v10329_v17  ;;  %7492 = vmatprep.subr.bf16.mxu1 %v10332_v20  ;;  %v10411_v17 = vld [vmem:[%s12136_s11 + $0x7c0] ss:$16 sps:$4 sm:$0xff]   ;;  %v10422_v20 = vld [vmem:[%s12136_s11 + $0x7ec] ss:$16 sps:$4 sm:$0xff]  }
 0x197   : > { %6794 = vmatmul.mubr.bf16.vlgmr.msra.gmra.mrb[0].mxu0 %v503_v23  ;;  %7482 = vmatmul.mubr.bf16.vlgmr.msra.gmra.mrb[0].mxu1 %v503_v23  ;;  %v10425_v23 = vld [vmem:[%s12136_s11 + $0x804] ss:$16 sps:$4 sm:$0xff]  }
 0x198   : > { %6805 = vmatpush1.bf16.msra.mxu0 %v10327_v21  ;;  %7493 = vmatpush1.bf16.msra.mxu1 %v10330_v22  ;;  %v10417_v21 = vld [vmem:[%s12136_s11 + $0x7e0] ss:$16 sps:$4 sm:$0xff]   ;;  %v10420_v22 = vld [vmem:[%s12136_s11 + $0x7e8] ss:$16 sps:$4 sm:$0xff]  }
 0x199   : > { %6806 = vmatprep.subr.bf16.mxu0 %v10335_v26  ;;  %7494 = vmatprep.subr.bf16.mxu1 %v10338_v27  ;;  %v10428_v26 = vld [vmem:[%s12136_s11 + $0x80c] ss:$16 sps:$4 sm:$0xff]   ;;  %v10423_v27 = vld [vmem:[%s12136_s11 + $0x800] ss:$16 sps:$4 sm:$0xff]  }
 0x19a   : > { %6836 = vmatprep.mubr.bf16.mxu0 %v506_v28  ;;  %7524 = vmatprep.mubr.bf16.mxu1 %v506_v28  ;;  %v10426_v28 = vld [vmem:[%s12136_s11 + $0x808] ss:$16 sps:$4 sm:$0xff]  }
 0x19c   : > { %6807 = vmatpush1.bf16.msra.mxu0 %v10333_v29  ;;  %7495 = vmatpush1.bf16.msra.mxu1 %v10336_v30  ;;  %v505_v29 = vpack.c.bf16 %v473_v25, %v441_v24  ;;  %v444_v30 = vld [vmem:[%s12128_s16 + $0x48] sm:$0xff]  ;;  %v10515_v25 = vld [vmem:[%s12136_s11 + $0x9e4] ss:$16 sps:$4 sm:$0xff]  }
 0x19d   : > { %6808 = vmatprep.subr.bf16.mxu0 %v10341_v31  ;;  %7496 = vmatprep.subr.bf16.mxu1 %v10344_v32  ;;  %v476_v31 = vld [vmem:[%s12128_s16 + $0x148] sm:$0xff]  ;;  %v10431_v32 = vld [vmem:[%s12136_s11 + $0x824] ss:$16 sps:$4 sm:$0xff]  }
 0x19e   : > { %v10510_v24 = vld [vmem:[%s12136_s11 + $0x9c8] ss:$16 sps:$4 sm:$0xff]  }
 0x1a0   : > { %6809 = vmatpush1.bf16.msra.mxu0 %v10339_v33  ;;  %7497 = vmatpush1.bf16.msra.mxu1 %v10342_v34  ;;  %v10434_v33 = vld [vmem:[%s12136_s11 + $0x82c] ss:$16 sps:$4 sm:$0xff]   ;;  %v508_v34 = vpack.c.bf16 %v476_v31, %v444_v30  ;;  %v443_v31 = vld [vmem:[%s12128_s16 + $0x40] sm:$0xff] }
 0x1a1   : > { %6810 = vmatprep.subr.bf16.mxu0 %v10347_v35  ;;  %7498 = vmatprep.subr.bf16.mxu1 %v10350_v36  ;;  %v10429_v35 = vld [vmem:[%s12136_s11 + $0x820] ss:$16 sps:$4 sm:$0xff]   ;;  %v10432_v36 = vld [vmem:[%s12136_s11 + $0x828] ss:$16 sps:$4 sm:$0xff]   ;;  %v10524_v30 = vld [vmem:[%s12136_s11 + $0xa0c] ss:$16 sps:$4 sm:$0xff]  }
 0x1a4   : > { %6811 = vmatpush1.bf16.msra.mxu0 %v10345_v37  ;;  %7499 = vmatpush1.bf16.msra.mxu1 %v10348_v38  ;;  %v10437_v37 = vld [vmem:[%s12136_s11 + $0x844] ss:$16 sps:$4 sm:$0xff]   ;;  %v10440_v38 = vld [vmem:[%s12136_s11 + $0x84c] ss:$16 sps:$4 sm:$0xff]  }
 0x1a5   : > { %6812 = vmatprep.subr.bf16.mxu0 %v10353_v39  ;;  %7500 = vmatprep.subr.bf16.mxu1 %v10356_v40  ;;  %v10435_v39 = vld [vmem:[%s12136_s11 + $0x840] ss:$16 sps:$4 sm:$0xff]   ;;  %v10438_v40 = vld [vmem:[%s12136_s11 + $0x848] ss:$16 sps:$4 sm:$0xff]  }
 0x1a8   : > { %6813 = vmatpush1.bf16.msra.mxu0 %v10351_v41  ;;  %7501 = vmatpush1.bf16.msra.mxu1 %v10354_v42  ;;  %v10443_v41 = vld [vmem:[%s12136_s11 + $0x864] ss:$16 sps:$4 sm:$0xff]   ;;  %v10446_v42 = vld [vmem:[%s12136_s11 + $0x86c] ss:$16 sps:$4 sm:$0xff]  }
 0x1a9   : > { %6814 = vmatprep.subr.bf16.mxu0 %v10359_v43  ;;  %7502 = vmatprep.subr.bf16.mxu1 %v10362_v44  ;;  %v10441_v43 = vld [vmem:[%s12136_s11 + $0x860] ss:$16 sps:$4 sm:$0xff]   ;;  %v10444_v44 = vld [vmem:[%s12136_s11 + $0x868] ss:$16 sps:$4 sm:$0xff]  }
 0x1ac   : > { %6815 = vmatpush1.bf16.msra.mxu0 %v10357_v45  ;;  %7503 = vmatpush1.bf16.msra.mxu1 %v10360_v46  ;;  %v10449_v45 = vld [vmem:[%s12136_s11 + $0x884] ss:$16 sps:$4 sm:$0xff]   ;;  %v10452_v46 = vld [vmem:[%s12136_s11 + $0x88c] ss:$16 sps:$4 sm:$0xff]  }
 0x1ad   : > { %6816 = vmatprep.subr.bf16.mxu0 %v10365_v47  ;;  %7504 = vmatprep.subr.bf16.mxu1 %v10368_v48  ;;  %v10447_v47 = vld [vmem:[%s12136_s11 + $0x880] ss:$16 sps:$4 sm:$0xff]   ;;  %v10450_v48 = vld [vmem:[%s12136_s11 + $0x888] ss:$16 sps:$4 sm:$0xff]  }
 0x1b0   : > { %6817 = vmatpush1.bf16.msra.mxu0 %v10363_v49  ;;  %7505 = vmatpush1.bf16.msra.mxu1 %v10366_v50  ;;  %v10455_v49 = vld [vmem:[%s12136_s11 + $0x8a4] ss:$16 sps:$4 sm:$0xff]   ;;  %v10458_v50 = vld [vmem:[%s12136_s11 + $0x8ac] ss:$16 sps:$4 sm:$0xff]  }
 0x1b1   : > { %6818 = vmatprep.subr.bf16.mxu0 %v10371_v51  ;;  %7506 = vmatprep.subr.bf16.mxu1 %v10374_v52  ;;  %v10453_v51 = vld [vmem:[%s12136_s11 + $0x8a0] ss:$16 sps:$4 sm:$0xff]   ;;  %v10456_v52 = vld [vmem:[%s12136_s11 + $0x8a8] ss:$16 sps:$4 sm:$0xff]  }
 0x1b4   : > { %6819 = vmatpush1.bf16.msra.mxu0 %v10369_v53  ;;  %7507 = vmatpush1.bf16.msra.mxu1 %v10372_v54  ;;  %v10461_v53 = vld [vmem:[%s12136_s11 + $0x8c4] ss:$16 sps:$4 sm:$0xff]   ;;  %v10464_v54 = vld [vmem:[%s12136_s11 + $0x8cc] ss:$16 sps:$4 sm:$0xff]  }
 0x1b5   : > { %6820 = vmatprep.subr.bf16.mxu0 %v10377_v55  ;;  %7508 = vmatprep.subr.bf16.mxu1 %v10380_v56  ;;  %v10459_v55 = vld [vmem:[%s12136_s11 + $0x8c0] ss:$16 sps:$4 sm:$0xff]   ;;  %v10462_v56 = vld [vmem:[%s12136_s11 + $0x8c8] ss:$16 sps:$4 sm:$0xff]  }
 0x1b8   : > { %6821 = vmatpush1.bf16.msra.mxu0 %v10375_v57  ;;  %7509 = vmatpush1.bf16.msra.mxu1 %v10378_v58  ;;  %v10467_v57 = vld [vmem:[%s12136_s11 + $0x8e4] ss:$16 sps:$4 sm:$0xff]   ;;  %v10470_v58 = vld [vmem:[%s12136_s11 + $0x8ec] ss:$16 sps:$4 sm:$0xff]  }
 0x1b9   : > { %6822 = vmatprep.subr.bf16.mxu0 %v10383_v59  ;;  %7510 = vmatprep.subr.bf16.mxu1 %v10386_v60  ;;  %v10465_v59 = vld [vmem:[%s12136_s11 + $0x8e0] ss:$16 sps:$4 sm:$0xff]   ;;  %v10468_v60 = vld [vmem:[%s12136_s11 + $0x8e8] ss:$16 sps:$4 sm:$0xff]  }
 0x1bc   : > { %6823 = vmatpush1.bf16.msra.mxu0 %v10381_v61  ;;  %7511 = vmatpush1.bf16.msra.mxu1 %v10384_v62  ;;  %v10473_v61 = vld [vmem:[%s12136_s11 + $0x904] ss:$16 sps:$4 sm:$0xff]   ;;  %v10476_v62 = vld [vmem:[%s12136_s11 + $0x90c] ss:$16 sps:$4 sm:$0xff]  }
 0x1bd   : > { %6824 = vmatprep.subr.bf16.mxu0 %v10389_v63  ;;  %7512 = vmatprep.subr.bf16.mxu1 %v10392_v0  ;;  %v10471_v63 = vld [vmem:[%s12136_s11 + $0x900] ss:$16 sps:$4 sm:$0xff]   ;;  %v10474_v0 = vld [vmem:[%s12136_s11 + $0x908] ss:$16 sps:$4 sm:$0xff]  }
 0x1c0   : > { %6825 = vmatpush1.bf16.msra.mxu0 %v10387_v1  ;;  %7513 = vmatpush1.bf16.msra.mxu1 %v10390_v2  ;;  %v10479_v1 = vld [vmem:[%s12136_s11 + $0x924] ss:$16 sps:$4 sm:$0xff]   ;;  %v10482_v2 = vld [vmem:[%s12136_s11 + $0x92c] ss:$16 sps:$4 sm:$0xff]  }
 0x1c1   : > { %6826 = vmatprep.subr.bf16.mxu0 %v10395_v3  ;;  %7514 = vmatprep.subr.bf16.mxu1 %v10398_v4  ;;  %v10477_v3 = vld [vmem:[%s12136_s11 + $0x920] ss:$16 sps:$4 sm:$0xff]   ;;  %v10480_v4 = vld [vmem:[%s12136_s11 + $0x928] ss:$16 sps:$4 sm:$0xff]  }
 0x1c4   : > { %6827 = vmatpush1.bf16.msra.mxu0 %v10393_v5  ;;  %7515 = vmatpush1.bf16.msra.mxu1 %v10396_v6  ;;  %v10485_v5 = vld [vmem:[%s12136_s11 + $0x944] ss:$16 sps:$4 sm:$0xff]   ;;  %v10488_v6 = vld [vmem:[%s12136_s11 + $0x94c] ss:$16 sps:$4 sm:$0xff]  }
 0x1c5   : > { %6828 = vmatprep.subr.bf16.mxu0 %v10401_v7  ;;  %7516 = vmatprep.subr.bf16.mxu1 %v10404_v8  ;;  %v10483_v7 = vld [vmem:[%s12136_s11 + $0x940] ss:$16 sps:$4 sm:$0xff]   ;;  %v10486_v8 = vld [vmem:[%s12136_s11 + $0x948] ss:$16 sps:$4 sm:$0xff]  }
 0x1c8   : > { %6829 = vmatpush1.bf16.msra.mxu0 %v10399_v9  ;;  %7517 = vmatpush1.bf16.msra.mxu1 %v10402_v10  ;;  %v10491_v9 = vld [vmem:[%s12136_s11 + $0x964] ss:$16 sps:$4 sm:$0xff]   ;;  %v10494_v10 = vld [vmem:[%s12136_s11 + $0x96c] ss:$16 sps:$4 sm:$0xff]  }
 0x1c9   : > { %6830 = vmatprep.subr.bf16.mxu0 %v10407_v11  ;;  %7518 = vmatprep.subr.bf16.mxu1 %v10410_v12  ;;  %v10489_v11 = vld [vmem:[%s12136_s11 + $0x960] ss:$16 sps:$4 sm:$0xff]   ;;  %v10492_v12 = vld [vmem:[%s12136_s11 + $0x968] ss:$16 sps:$4 sm:$0xff]  }
 0x1cc   : > { %6831 = vmatpush1.bf16.msra.mxu0 %v10405_v13  ;;  %7519 = vmatpush1.bf16.msra.mxu1 %v10408_v14  ;;  %v10497_v13 = vld [vmem:[%s12136_s11 + $0x984] ss:$16 sps:$4 sm:$0xff]   ;;  %v10500_v14 = vld [vmem:[%s12136_s11 + $0x98c] ss:$16 sps:$4 sm:$0xff]  }
 0x1cd   : > { %6832 = vmatprep.subr.bf16.mxu0 %v10413_v15  ;;  %7520 = vmatprep.subr.bf16.mxu1 %v10416_v16  ;;  %v10495_v15 = vld [vmem:[%s12136_s11 + $0x980] ss:$16 sps:$4 sm:$0xff]   ;;  %v10498_v16 = vld [vmem:[%s12136_s11 + $0x988] ss:$16 sps:$4 sm:$0xff]  }
 0x1d0   : > { %6833 = vmatpush1.bf16.msra.mxu0 %v10411_v17  ;;  %7521 = vmatpush1.bf16.msra.mxu1 %v10414_v18  ;;  %v10503_v17 = vld [vmem:[%s12136_s11 + $0x9a4] ss:$16 sps:$4 sm:$0xff]   ;;  %v10506_v18 = vld [vmem:[%s12136_s11 + $0x9ac] ss:$16 sps:$4 sm:$0xff]  }
 0x1d1   : > { %6834 = vmatprep.subr.bf16.mxu0 %v10419_v19  ;;  %7522 = vmatprep.subr.bf16.mxu1 %v10422_v20  ;;  %v10501_v19 = vld [vmem:[%s12136_s11 + $0x9a0] ss:$16 sps:$4 sm:$0xff]   ;;  %v10504_v20 = vld [vmem:[%s12136_s11 + $0x9a8] ss:$16 sps:$4 sm:$0xff]  }
 0x1d4   : > { %6835 = vmatpush1.bf16.msra.mxu0 %v10417_v21  ;;  %7523 = vmatpush1.bf16.msra.mxu1 %v10420_v22  ;;  %v10509_v21 = vld [vmem:[%s12136_s11 + $0x9c4] ss:$16 sps:$4 sm:$0xff]   ;;  %v10512_v22 = vld [vmem:[%s12136_s11 + $0x9cc] ss:$16 sps:$4 sm:$0xff]  }
 0x1d5   : > { %6847 = vmatprep.subr.bf16.mxu0 %v10425_v23  ;;  %7535 = vmatprep.subr.bf16.mxu1 %v10428_v26  ;;  %v10507_v23 = vld [vmem:[%s12136_s11 + $0x9c0] ss:$16 sps:$4 sm:$0xff]   ;;  %v10518_v26 = vld [vmem:[%s12136_s11 + $0x9ec] ss:$16 sps:$4 sm:$0xff]  }
 0x1d7   : > { %6837 = vmatmul.mubr.bf16.vlgmr.msra.gmra.mrb[0].mxu0 %v505_v29  ;;  %7525 = vmatmul.mubr.bf16.vlgmr.msra.gmra.mrb[0].mxu1 %v505_v29  ;;  %v10521_v29 = vld [vmem:[%s12136_s11 + $0xa04] ss:$16 sps:$4 sm:$0xff]  }
 0x1d8   : > { %6848 = vmatpush1.bf16.msra.mxu0 %v10423_v27  ;;  %7536 = vmatpush1.bf16.msra.mxu1 %v10426_v28  ;;  %v10513_v27 = vld [vmem:[%s12136_s11 + $0x9e0] ss:$16 sps:$4 sm:$0xff]   ;;  %v10516_v28 = vld [vmem:[%s12136_s11 + $0x9e8] ss:$16 sps:$4 sm:$0xff]  }
 0x1d9   : > { %6849 = vmatprep.subr.bf16.mxu0 %v10431_v32  ;;  %7537 = vmatprep.subr.bf16.mxu1 %v10434_v33  ;;  %v475_v32 = vld [vmem:[%s12128_s16 + $0x140] sm:$0xff]  ;;  %v446_v33 = vld [vmem:[%s12128_s16 + $0x58] sm:$0xff] }
 0x1da   : > { %6879 = vmatprep.mubr.bf16.mxu0 %v508_v34  ;;  %7567 = vmatprep.mubr.bf16.mxu1 %v508_v34  ;;  %v478_v34 = vld [vmem:[%s12128_s16 + $0x158] sm:$0xff] }
 0x1dc   : > { %6850 = vmatpush1.bf16.msra.mxu0 %v10429_v35  ;;  %7538 = vmatpush1.bf16.msra.mxu1 %v10432_v36  ;;  %v507_v35 = vpack.c.bf16 %v475_v32, %v443_v31  ;;  %v10519_v36 = vld [vmem:[%s12136_s11 + $0xa00] ss:$16 sps:$4 sm:$0xff]   ;;  %v10611_v31 = vld [vmem:[%s12136_s11 + $0xbe4] ss:$16 sps:$4 sm:$0xff]   ;;  %v10614_v32 = vld [vmem:[%s12136_s11 + $0xbec] ss:$16 sps:$4 sm:$0xff]  }
 0x1dd   : > { %6851 = vmatprep.subr.bf16.mxu0 %v10437_v37  ;;  %7539 = vmatprep.subr.bf16.mxu1 %v10440_v38  ;;  %v10522_v37 = vld [vmem:[%s12136_s11 + $0xa08] ss:$16 sps:$4 sm:$0xff]   ;;  %v10527_v38 = vld [vmem:[%s12136_s11 + $0xa24] ss:$16 sps:$4 sm:$0xff]  }
 0x1e0   : > { %6852 = vmatpush1.bf16.msra.mxu0 %v10435_v39  ;;  %7540 = vmatpush1.bf16.msra.mxu1 %v10438_v40  ;;  %v10530_v39 = vld [vmem:[%s12136_s11 + $0xa2c] ss:$16 sps:$4 sm:$0xff]   ;;  %v510_v40 = vpack.c.bf16 %v478_v34, %v446_v33  ;;  %v10609_v33 = vld [vmem:[%s12136_s11 + $0xbe0] ss:$16 sps:$4 sm:$0xff]   ;;  %v10612_v34 = vld [vmem:[%s12136_s11 + $0xbe8] ss:$16 sps:$4 sm:$0xff]  }
 0x1e1   : > { %6853 = vmatprep.subr.bf16.mxu0 %v10443_v41  ;;  %7541 = vmatprep.subr.bf16.mxu1 %v10446_v42  ;;  %v10525_v41 = vld [vmem:[%s12136_s11 + $0xa20] ss:$16 sps:$4 sm:$0xff]   ;;  %v10528_v42 = vld [vmem:[%s12136_s11 + $0xa28] ss:$16 sps:$4 sm:$0xff]  }
 0x1e4   : > { %6854 = vmatpush1.bf16.msra.mxu0 %v10441_v43  ;;  %7542 = vmatpush1.bf16.msra.mxu1 %v10444_v44  ;;  %v10533_v43 = vld [vmem:[%s12136_s11 + $0xa44] ss:$16 sps:$4 sm:$0xff]   ;;  %v10536_v44 = vld [vmem:[%s12136_s11 + $0xa4c] ss:$16 sps:$4 sm:$0xff]  }
 0x1e5   : > { %6855 = vmatprep.subr.bf16.mxu0 %v10449_v45  ;;  %7543 = vmatprep.subr.bf16.mxu1 %v10452_v46  ;;  %v10531_v45 = vld [vmem:[%s12136_s11 + $0xa40] ss:$16 sps:$4 sm:$0xff]   ;;  %v10534_v46 = vld [vmem:[%s12136_s11 + $0xa48] ss:$16 sps:$4 sm:$0xff]  }
 0x1e8   : > { %6856 = vmatpush1.bf16.msra.mxu0 %v10447_v47  ;;  %7544 = vmatpush1.bf16.msra.mxu1 %v10450_v48  ;;  %v10539_v47 = vld [vmem:[%s12136_s11 + $0xa64] ss:$16 sps:$4 sm:$0xff]   ;;  %v10542_v48 = vld [vmem:[%s12136_s11 + $0xa6c] ss:$16 sps:$4 sm:$0xff]  }
 0x1e9   : > { %6857 = vmatprep.subr.bf16.mxu0 %v10455_v49  ;;  %7545 = vmatprep.subr.bf16.mxu1 %v10458_v50  ;;  %v10537_v49 = vld [vmem:[%s12136_s11 + $0xa60] ss:$16 sps:$4 sm:$0xff]   ;;  %v10540_v50 = vld [vmem:[%s12136_s11 + $0xa68] ss:$16 sps:$4 sm:$0xff]  }
 0x1ec   : > { %6858 = vmatpush1.bf16.msra.mxu0 %v10453_v51  ;;  %7546 = vmatpush1.bf16.msra.mxu1 %v10456_v52  ;;  %v10545_v51 = vld [vmem:[%s12136_s11 + $0xa84] ss:$16 sps:$4 sm:$0xff]   ;;  %v10548_v52 = vld [vmem:[%s12136_s11 + $0xa8c] ss:$16 sps:$4 sm:$0xff]  }
 0x1ed   : > { %6859 = vmatprep.subr.bf16.mxu0 %v10461_v53  ;;  %7547 = vmatprep.subr.bf16.mxu1 %v10464_v54  ;;  %v10543_v53 = vld [vmem:[%s12136_s11 + $0xa80] ss:$16 sps:$4 sm:$0xff]   ;;  %v10546_v54 = vld [vmem:[%s12136_s11 + $0xa88] ss:$16 sps:$4 sm:$0xff]  }
 0x1f0   : > { %6860 = vmatpush1.bf16.msra.mxu0 %v10459_v55  ;;  %7548 = vmatpush1.bf16.msra.mxu1 %v10462_v56  ;;  %v10551_v55 = vld [vmem:[%s12136_s11 + $0xaa4] ss:$16 sps:$4 sm:$0xff]   ;;  %v10554_v56 = vld [vmem:[%s12136_s11 + $0xaac] ss:$16 sps:$4 sm:$0xff]  }
 0x1f1   : > { %6861 = vmatprep.subr.bf16.mxu0 %v10467_v57  ;;  %7549 = vmatprep.subr.bf16.mxu1 %v10470_v58  ;;  %v10549_v57 = vld [vmem:[%s12136_s11 + $0xaa0] ss:$16 sps:$4 sm:$0xff]   ;;  %v10552_v58 = vld [vmem:[%s12136_s11 + $0xaa8] ss:$16 sps:$4 sm:$0xff]  }
 0x1f4   : > { %6862 = vmatpush1.bf16.msra.mxu0 %v10465_v59  ;;  %7550 = vmatpush1.bf16.msra.mxu1 %v10468_v60  ;;  %v10557_v59 = vld [vmem:[%s12136_s11 + $0xac4] ss:$16 sps:$4 sm:$0xff]   ;;  %v10560_v60 = vld [vmem:[%s12136_s11 + $0xacc] ss:$16 sps:$4 sm:$0xff]  }
 0x1f5   : > { %6863 = vmatprep.subr.bf16.mxu0 %v10473_v61  ;;  %7551 = vmatprep.subr.bf16.mxu1 %v10476_v62  ;;  %v10555_v61 = vld [vmem:[%s12136_s11 + $0xac0] ss:$16 sps:$4 sm:$0xff]   ;;  %v10558_v62 = vld [vmem:[%s12136_s11 + $0xac8] ss:$16 sps:$4 sm:$0xff]  }
 0x1f8   : > { %6864 = vmatpush1.bf16.msra.mxu0 %v10471_v63  ;;  %7552 = vmatpush1.bf16.msra.mxu1 %v10474_v0  ;;  %v10563_v63 = vld [vmem:[%s12136_s11 + $0xae4] ss:$16 sps:$4 sm:$0xff]   ;;  %v10566_v0 = vld [vmem:[%s12136_s11 + $0xaec] ss:$16 sps:$4 sm:$0xff]  }
 0x1f9   : > { %6865 = vmatprep.subr.bf16.mxu0 %v10479_v1  ;;  %7553 = vmatprep.subr.bf16.mxu1 %v10482_v2  ;;  %v10561_v1 = vld [vmem:[%s12136_s11 + $0xae0] ss:$16 sps:$4 sm:$0xff]   ;;  %v10564_v2 = vld [vmem:[%s12136_s11 + $0xae8] ss:$16 sps:$4 sm:$0xff]  }
 0x1fc   : > { %6866 = vmatpush1.bf16.msra.mxu0 %v10477_v3  ;;  %7554 = vmatpush1.bf16.msra.mxu1 %v10480_v4  ;;  %v10569_v3 = vld [vmem:[%s12136_s11 + $0xb04] ss:$16 sps:$4 sm:$0xff]   ;;  %v10572_v4 = vld [vmem:[%s12136_s11 + $0xb0c] ss:$16 sps:$4 sm:$0xff]  }
 0x1fd   : > { %6867 = vmatprep.subr.bf16.mxu0 %v10485_v5  ;;  %7555 = vmatprep.subr.bf16.mxu1 %v10488_v6  ;;  %v10567_v5 = vld [vmem:[%s12136_s11 + $0xb00] ss:$16 sps:$4 sm:$0xff]   ;;  %v10570_v6 = vld [vmem:[%s12136_s11 + $0xb08] ss:$16 sps:$4 sm:$0xff]  }
 0x200   : > { %6868 = vmatpush1.bf16.msra.mxu0 %v10483_v7  ;;  %7556 = vmatpush1.bf16.msra.mxu1 %v10486_v8  ;;  %v10575_v7 = vld [vmem:[%s12136_s11 + $0xb24] ss:$16 sps:$4 sm:$0xff]   ;;  %v10578_v8 = vld [vmem:[%s12136_s11 + $0xb2c] ss:$16 sps:$4 sm:$0xff]  }
 0x201   : > { %6869 = vmatprep.subr.bf16.mxu0 %v10491_v9  ;;  %7557 = vmatprep.subr.bf16.mxu1 %v10494_v10  ;;  %v10573_v9 = vld [vmem:[%s12136_s11 + $0xb20] ss:$16 sps:$4 sm:$0xff]   ;;  %v10576_v10 = vld [vmem:[%s12136_s11 + $0xb28] ss:$16 sps:$4 sm:$0xff]  }
 0x204   : > { %6870 = vmatpush1.bf16.msra.mxu0 %v10489_v11  ;;  %7558 = vmatpush1.bf16.msra.mxu1 %v10492_v12  ;;  %v10581_v11 = vld [vmem:[%s12136_s11 + $0xb44] ss:$16 sps:$4 sm:$0xff]   ;;  %v10584_v12 = vld [vmem:[%s12136_s11 + $0xb4c] ss:$16 sps:$4 sm:$0xff]  }
 0x205   : > { %6871 = vmatprep.subr.bf16.mxu0 %v10497_v13  ;;  %7559 = vmatprep.subr.bf16.mxu1 %v10500_v14  ;;  %v10579_v13 = vld [vmem:[%s12136_s11 + $0xb40] ss:$16 sps:$4 sm:$0xff]   ;;  %v10582_v14 = vld [vmem:[%s12136_s11 + $0xb48] ss:$16 sps:$4 sm:$0xff]  }
 0x208   : > { %6872 = vmatpush1.bf16.msra.mxu0 %v10495_v15  ;;  %7560 = vmatpush1.bf16.msra.mxu1 %v10498_v16  ;;  %v10587_v15 = vld [vmem:[%s12136_s11 + $0xb64] ss:$16 sps:$4 sm:$0xff]   ;;  %v10590_v16 = vld [vmem:[%s12136_s11 + $0xb6c] ss:$16 sps:$4 sm:$0xff]  }
 0x209   : > { %6873 = vmatprep.subr.bf16.mxu0 %v10503_v17  ;;  %7561 = vmatprep.subr.bf16.mxu1 %v10506_v18  ;;  %v10585_v17 = vld [vmem:[%s12136_s11 + $0xb60] ss:$16 sps:$4 sm:$0xff]   ;;  %v10588_v18 = vld [vmem:[%s12136_s11 + $0xb68] ss:$16 sps:$4 sm:$0xff]  }
 0x20c   : > { %6874 = vmatpush1.bf16.msra.mxu0 %v10501_v19  ;;  %7562 = vmatpush1.bf16.msra.mxu1 %v10504_v20  ;;  %v10593_v19 = vld [vmem:[%s12136_s11 + $0xb84] ss:$16 sps:$4 sm:$0xff]   ;;  %v10596_v20 = vld [vmem:[%s12136_s11 + $0xb8c] ss:$16 sps:$4 sm:$0xff]  }
 0x20d   : > { %6875 = vmatprep.subr.bf16.mxu0 %v10509_v21  ;;  %7563 = vmatprep.subr.bf16.mxu1 %v10512_v22  ;;  %v10591_v21 = vld [vmem:[%s12136_s11 + $0xb80] ss:$16 sps:$4 sm:$0xff]   ;;  %v10594_v22 = vld [vmem:[%s12136_s11 + $0xb88] ss:$16 sps:$4 sm:$0xff]  }
 0x210   : > { %6876 = vmatpush1.bf16.msra.mxu0 %v10507_v23  ;;  %7564 = vmatpush1.bf16.msra.mxu1 %v10510_v24  ;;  %v10599_v23 = vld [vmem:[%s12136_s11 + $0xba4] ss:$16 sps:$4 sm:$0xff]   ;;  %v10602_v24 = vld [vmem:[%s12136_s11 + $0xbac] ss:$16 sps:$4 sm:$0xff]  }
 0x211   : > { %6877 = vmatprep.subr.bf16.mxu0 %v10515_v25  ;;  %7565 = vmatprep.subr.bf16.mxu1 %v10518_v26  ;;  %v10597_v25 = vld [vmem:[%s12136_s11 + $0xba0] ss:$16 sps:$4 sm:$0xff]   ;;  %v10600_v26 = vld [vmem:[%s12136_s11 + $0xba8] ss:$16 sps:$4 sm:$0xff]  }
 0x214   : > { %6878 = vmatpush1.bf16.msra.mxu0 %v10513_v27  ;;  %7566 = vmatpush1.bf16.msra.mxu1 %v10516_v28  ;;  %v10605_v27 = vld [vmem:[%s12136_s11 + $0xbc4] ss:$16 sps:$4 sm:$0xff]   ;;  %v10608_v28 = vld [vmem:[%s12136_s11 + $0xbcc] ss:$16 sps:$4 sm:$0xff]  }
 0x215   : > { %6890 = vmatprep.subr.bf16.mxu0 %v10521_v29  ;;  %7578 = vmatprep.subr.bf16.mxu1 %v10524_v30  ;;  %v10603_v29 = vld [vmem:[%s12136_s11 + $0xbc0] ss:$16 sps:$4 sm:$0xff]   ;;  %v10606_v30 = vld [vmem:[%s12136_s11 + $0xbc8] ss:$16 sps:$4 sm:$0xff]  }
 0x217   : > { %6880 = vmatmul.mubr.bf16.vlgmr.msra.gmra.mrb[0].mxu0 %v507_v35  ;;  %7568 = vmatmul.mubr.bf16.vlgmr.msra.gmra.mrb[0].mxu1 %v507_v35  ;;  %v10617_v35 = vld [vmem:[%s12136_s11 + $0xc04] ss:$16 sps:$4 sm:$0xff]  }
 0x218   : > { %6891 = vmatpush1.bf16.msra.mxu0 %v10519_v36  ;;  %7579 = vmatpush1.bf16.msra.mxu1 %v10522_v37  ;;  %v10620_v36 = vld [vmem:[%s12136_s11 + $0xc0c] ss:$16 sps:$4 sm:$0xff]   ;;  %v445_v37 = vld [vmem:[%s12128_s16 + $0x50] sm:$0xff] }
 0x219   : > { %6892 = vmatprep.subr.bf16.mxu0 %v10527_v38  ;;  %7580 = vmatprep.subr.bf16.mxu1 %v10530_v39  ;;  %v477_v38 = vld [vmem:[%s12128_s16 + $0x150] sm:$0xff]  ;;  %v448_v39 = vld [vmem:[%s12128_s16 + $0x68] sm:$0xff] }
 0x21a   : > { %6922 = vmatprep.mubr.bf16.mxu0 %v510_v40  ;;  %7610 = vmatprep.mubr.bf16.mxu1 %v510_v40  ;;  %v480_v40 = vld [vmem:[%s12128_s16 + $0x168] sm:$0xff] }
 0x21c   : > { %6893 = vmatpush1.bf16.msra.mxu0 %v10525_v41  ;;  %7581 = vmatpush1.bf16.msra.mxu1 %v10528_v42  ;;  %v509_v41 = vpack.c.bf16 %v477_v38, %v445_v37  ;;  %v10615_v42 = vld [vmem:[%s12136_s11 + $0xc00] ss:$16 sps:$4 sm:$0xff]   ;;  %v10707_v37 = vld [vmem:[%s12136_s11 + $0xde4] ss:$16 sps:$4 sm:$0xff]   ;;  %v10710_v38 = vld [vmem:[%s12136_s11 + $0xdec] ss:$16 sps:$4 sm:$0xff]  }
 0x21d   : > { %6894 = vmatprep.subr.bf16.mxu0 %v10533_v43  ;;  %7582 = vmatprep.subr.bf16.mxu1 %v10536_v44  ;;  %v10618_v43 = vld [vmem:[%s12136_s11 + $0xc08] ss:$16 sps:$4 sm:$0xff]   ;;  %v10623_v44 = vld [vmem:[%s12136_s11 + $0xc24] ss:$16 sps:$4 sm:$0xff]  }
 0x220   : > { %6895 = vmatpush1.bf16.msra.mxu0 %v10531_v45  ;;  %7583 = vmatpush1.bf16.msra.mxu1 %v10534_v46  ;;  %v10626_v45 = vld [vmem:[%s12136_s11 + $0xc2c] ss:$16 sps:$4 sm:$0xff]   ;;  %v512_v46 = vpack.c.bf16 %v480_v40, %v448_v39  ;;  %v10705_v39 = vld [vmem:[%s12136_s11 + $0xde0] ss:$16 sps:$4 sm:$0xff]   ;;  %v10708_v40 = vld [vmem:[%s12136_s11 + $0xde8] ss:$16 sps:$4 sm:$0xff]  }
 0x221   : > { %6896 = vmatprep.subr.bf16.mxu0 %v10539_v47  ;;  %7584 = vmatprep.subr.bf16.mxu1 %v10542_v48  ;;  %v10621_v47 = vld [vmem:[%s12136_s11 + $0xc20] ss:$16 sps:$4 sm:$0xff]   ;;  %v10624_v48 = vld [vmem:[%s12136_s11 + $0xc28] ss:$16 sps:$4 sm:$0xff]  }
 0x224   : > { %6897 = vmatpush1.bf16.msra.mxu0 %v10537_v49  ;;  %7585 = vmatpush1.bf16.msra.mxu1 %v10540_v50  ;;  %v10629_v49 = vld [vmem:[%s12136_s11 + $0xc44] ss:$16 sps:$4 sm:$0xff]   ;;  %v10632_v50 = vld [vmem:[%s12136_s11 + $0xc4c] ss:$16 sps:$4 sm:$0xff]  }
 0x225   : > { %6898 = vmatprep.subr.bf16.mxu0 %v10545_v51  ;;  %7586 = vmatprep.subr.bf16.mxu1 %v10548_v52  ;;  %v10627_v51 = vld [vmem:[%s12136_s11 + $0xc40] ss:$16 sps:$4 sm:$0xff]   ;;  %v10630_v52 = vld [vmem:[%s12136_s11 + $0xc48] ss:$16 sps:$4 sm:$0xff]  }
 0x228   : > { %6899 = vmatpush1.bf16.msra.mxu0 %v10543_v53  ;;  %7587 = vmatpush1.bf16.msra.mxu1 %v10546_v54  ;;  %v10635_v53 = vld [vmem:[%s12136_s11 + $0xc64] ss:$16 sps:$4 sm:$0xff]   ;;  %v10638_v54 = vld [vmem:[%s12136_s11 + $0xc6c] ss:$16 sps:$4 sm:$0xff]  }
 0x229   : > { %6900 = vmatprep.subr.bf16.mxu0 %v10551_v55  ;;  %7588 = vmatprep.subr.bf16.mxu1 %v10554_v56  ;;  %v10633_v55 = vld [vmem:[%s12136_s11 + $0xc60] ss:$16 sps:$4 sm:$0xff]   ;;  %v10636_v56 = vld [vmem:[%s12136_s11 + $0xc68] ss:$16 sps:$4 sm:$0xff]  }
 0x22c   : > { %6901 = vmatpush1.bf16.msra.mxu0 %v10549_v57  ;;  %7589 = vmatpush1.bf16.msra.mxu1 %v10552_v58  ;;  %v10641_v57 = vld [vmem:[%s12136_s11 + $0xc84] ss:$16 sps:$4 sm:$0xff]   ;;  %v10644_v58 = vld [vmem:[%s12136_s11 + $0xc8c] ss:$16 sps:$4 sm:$0xff]  }
 0x22d   : > { %6902 = vmatprep.subr.bf16.mxu0 %v10557_v59  ;;  %7590 = vmatprep.subr.bf16.mxu1 %v10560_v60  ;;  %v10639_v59 = vld [vmem:[%s12136_s11 + $0xc80] ss:$16 sps:$4 sm:$0xff]   ;;  %v10642_v60 = vld [vmem:[%s12136_s11 + $0xc88] ss:$16 sps:$4 sm:$0xff]  }
 0x230   : > { %6903 = vmatpush1.bf16.msra.mxu0 %v10555_v61  ;;  %7591 = vmatpush1.bf16.msra.mxu1 %v10558_v62  ;;  %v10647_v61 = vld [vmem:[%s12136_s11 + $0xca4] ss:$16 sps:$4 sm:$0xff]   ;;  %v10650_v62 = vld [vmem:[%s12136_s11 + $0xcac] ss:$16 sps:$4 sm:$0xff]  }
 0x231   : > { %6904 = vmatprep.subr.bf16.mxu0 %v10563_v63  ;;  %7592 = vmatprep.subr.bf16.mxu1 %v10566_v0  ;;  %v10645_v63 = vld [vmem:[%s12136_s11 + $0xca0] ss:$16 sps:$4 sm:$0xff]   ;;  %v10648_v0 = vld [vmem:[%s12136_s11 + $0xca8] ss:$16 sps:$4 sm:$0xff]  }
 0x234   : > { %6905 = vmatpush1.bf16.msra.mxu0 %v10561_v1  ;;  %7593 = vmatpush1.bf16.msra.mxu1 %v10564_v2  ;;  %v10653_v1 = vld [vmem:[%s12136_s11 + $0xcc4] ss:$16 sps:$4 sm:$0xff]   ;;  %v10656_v2 = vld [vmem:[%s12136_s11 + $0xccc] ss:$16 sps:$4 sm:$0xff]  }
 0x235   : > { %6906 = vmatprep.subr.bf16.mxu0 %v10569_v3  ;;  %7594 = vmatprep.subr.bf16.mxu1 %v10572_v4  ;;  %v10651_v3 = vld [vmem:[%s12136_s11 + $0xcc0] ss:$16 sps:$4 sm:$0xff]   ;;  %v10654_v4 = vld [vmem:[%s12136_s11 + $0xcc8] ss:$16 sps:$4 sm:$0xff]  }
 0x238   : > { %6907 = vmatpush1.bf16.msra.mxu0 %v10567_v5  ;;  %7595 = vmatpush1.bf16.msra.mxu1 %v10570_v6  ;;  %v10659_v5 = vld [vmem:[%s12136_s11 + $0xce4] ss:$16 sps:$4 sm:$0xff]   ;;  %v10662_v6 = vld [vmem:[%s12136_s11 + $0xcec] ss:$16 sps:$4 sm:$0xff]  }
 0x239   : > { %6908 = vmatprep.subr.bf16.mxu0 %v10575_v7  ;;  %7596 = vmatprep.subr.bf16.mxu1 %v10578_v8  ;;  %v10657_v7 = vld [vmem:[%s12136_s11 + $0xce0] ss:$16 sps:$4 sm:$0xff]   ;;  %v10660_v8 = vld [vmem:[%s12136_s11 + $0xce8] ss:$16 sps:$4 sm:$0xff]  }
 0x23c   : > { %6909 = vmatpush1.bf16.msra.mxu0 %v10573_v9  ;;  %7597 = vmatpush1.bf16.msra.mxu1 %v10576_v10  ;;  %v10665_v9 = vld [vmem:[%s12136_s11 + $0xd04] ss:$16 sps:$4 sm:$0xff]   ;;  %v10668_v10 = vld [vmem:[%s12136_s11 + $0xd0c] ss:$16 sps:$4 sm:$0xff]  }
 0x23d   : > { %6910 = vmatprep.subr.bf16.mxu0 %v10581_v11  ;;  %7598 = vmatprep.subr.bf16.mxu1 %v10584_v12  ;;  %v10663_v11 = vld [vmem:[%s12136_s11 + $0xd00] ss:$16 sps:$4 sm:$0xff]   ;;  %v10666_v12 = vld [vmem:[%s12136_s11 + $0xd08] ss:$16 sps:$4 sm:$0xff]  }
 0x240   : > { %6911 = vmatpush1.bf16.msra.mxu0 %v10579_v13  ;;  %7599 = vmatpush1.bf16.msra.mxu1 %v10582_v14  ;;  %v10671_v13 = vld [vmem:[%s12136_s11 + $0xd24] ss:$16 sps:$4 sm:$0xff]   ;;  %v10674_v14 = vld [vmem:[%s12136_s11 + $0xd2c] ss:$16 sps:$4 sm:$0xff]  }
 0x241   : > { %6912 = vmatprep.subr.bf16.mxu0 %v10587_v15  ;;  %7600 = vmatprep.subr.bf16.mxu1 %v10590_v16  ;;  %v10669_v15 = vld [vmem:[%s12136_s11 + $0xd20] ss:$16 sps:$4 sm:$0xff]   ;;  %v10672_v16 = vld [vmem:[%s12136_s11 + $0xd28] ss:$16 sps:$4 sm:$0xff]  }
 0x244   : > { %6913 = vmatpush1.bf16.msra.mxu0 %v10585_v17  ;;  %7601 = vmatpush1.bf16.msra.mxu1 %v10588_v18  ;;  %v10677_v17 = vld [vmem:[%s12136_s11 + $0xd44] ss:$16 sps:$4 sm:$0xff]   ;;  %v10680_v18 = vld [vmem:[%s12136_s11 + $0xd4c] ss:$16 sps:$4 sm:$0xff]  }
 0x245   : > { %6914 = vmatprep.subr.bf16.mxu0 %v10593_v19  ;;  %7602 = vmatprep.subr.bf16.mxu1 %v10596_v20  ;;  %v10675_v19 = vld [vmem:[%s12136_s11 + $0xd40] ss:$16 sps:$4 sm:$0xff]   ;;  %v10678_v20 = vld [vmem:[%s12136_s11 + $0xd48] ss:$16 sps:$4 sm:$0xff]  }
 0x248   : > { %6915 = vmatpush1.bf16.msra.mxu0 %v10591_v21  ;;  %7603 = vmatpush1.bf16.msra.mxu1 %v10594_v22  ;;  %v10683_v21 = vld [vmem:[%s12136_s11 + $0xd64] ss:$16 sps:$4 sm:$0xff]   ;;  %v10686_v22 = vld [vmem:[%s12136_s11 + $0xd6c] ss:$16 sps:$4 sm:$0xff]  }
 0x249   : > { %6916 = vmatprep.subr.bf16.mxu0 %v10599_v23  ;;  %7604 = vmatprep.subr.bf16.mxu1 %v10602_v24  ;;  %v10681_v23 = vld [vmem:[%s12136_s11 + $0xd60] ss:$16 sps:$4 sm:$0xff]   ;;  %v10684_v24 = vld [vmem:[%s12136_s11 + $0xd68] ss:$16 sps:$4 sm:$0xff]  }
 0x24c   : > { %6917 = vmatpush1.bf16.msra.mxu0 %v10597_v25  ;;  %7605 = vmatpush1.bf16.msra.mxu1 %v10600_v26  ;;  %v10689_v25 = vld [vmem:[%s12136_s11 + $0xd84] ss:$16 sps:$4 sm:$0xff]   ;;  %v10692_v26 = vld [vmem:[%s12136_s11 + $0xd8c] ss:$16 sps:$4 sm:$0xff]  }
 0x24d   : > { %6918 = vmatprep.subr.bf16.mxu0 %v10605_v27  ;;  %7606 = vmatprep.subr.bf16.mxu1 %v10608_v28  ;;  %v10687_v27 = vld [vmem:[%s12136_s11 + $0xd80] ss:$16 sps:$4 sm:$0xff]   ;;  %v10690_v28 = vld [vmem:[%s12136_s11 + $0xd88] ss:$16 sps:$4 sm:$0xff]  }
 0x250   : > { %6919 = vmatpush1.bf16.msra.mxu0 %v10603_v29  ;;  %7607 = vmatpush1.bf16.msra.mxu1 %v10606_v30  ;;  %v10695_v29 = vld [vmem:[%s12136_s11 + $0xda4] ss:$16 sps:$4 sm:$0xff]   ;;  %v10698_v30 = vld [vmem:[%s12136_s11 + $0xdac] ss:$16 sps:$4 sm:$0xff]  }
 0x251   : > { %6920 = vmatprep.subr.bf16.mxu0 %v10611_v31  ;;  %7608 = vmatprep.subr.bf16.mxu1 %v10614_v32  ;;  %v10693_v31 = vld [vmem:[%s12136_s11 + $0xda0] ss:$16 sps:$4 sm:$0xff]   ;;  %v10696_v32 = vld [vmem:[%s12136_s11 + $0xda8] ss:$16 sps:$4 sm:$0xff]  }
 0x254   : > { %6921 = vmatpush1.bf16.msra.mxu0 %v10609_v33  ;;  %7609 = vmatpush1.bf16.msra.mxu1 %v10612_v34  ;;  %v10701_v33 = vld [vmem:[%s12136_s11 + $0xdc4] ss:$16 sps:$4 sm:$0xff]   ;;  %v10704_v34 = vld [vmem:[%s12136_s11 + $0xdcc] ss:$16 sps:$4 sm:$0xff]  }
 0x255   : > { %6933 = vmatprep.subr.bf16.mxu0 %v10617_v35  ;;  %7621 = vmatprep.subr.bf16.mxu1 %v10620_v36  ;;  %v10699_v35 = vld [vmem:[%s12136_s11 + $0xdc0] ss:$16 sps:$4 sm:$0xff]   ;;  %v10702_v36 = vld [vmem:[%s12136_s11 + $0xdc8] ss:$16 sps:$4 sm:$0xff]  }
 0x257   : > { %6923 = vmatmul.mubr.bf16.vlgmr.msra.gmra.mrb[0].mxu0 %v509_v41  ;;  %7611 = vmatmul.mubr.bf16.vlgmr.msra.gmra.mrb[0].mxu1 %v509_v41  ;;  %v10713_v41 = vld [vmem:[%s12136_s11 + $0xe04] ss:$16 sps:$4 sm:$0xff]  }
 0x258   : > { %6934 = vmatpush1.bf16.msra.mxu0 %v10615_v42  ;;  %7622 = vmatpush1.bf16.msra.mxu1 %v10618_v43  ;;  %v10716_v42 = vld [vmem:[%s12136_s11 + $0xe0c] ss:$16 sps:$4 sm:$0xff]   ;;  %v447_v43 = vld [vmem:[%s12128_s16 + $0x60] sm:$0xff] }
 0x259   : > { %6935 = vmatprep.subr.bf16.mxu0 %v10623_v44  ;;  %7623 = vmatprep.subr.bf16.mxu1 %v10626_v45  ;;  %v479_v44 = vld [vmem:[%s12128_s16 + $0x160] sm:$0xff]  ;;  %v450_v45 = vld [vmem:[%s12128_s16 + $0x78] sm:$0xff] }
 0x25a   : > { %6965 = vmatprep.mubr.bf16.mxu0 %v512_v46  ;;  %7653 = vmatprep.mubr.bf16.mxu1 %v512_v46  ;;  %v482_v46 = vld [vmem:[%s12128_s16 + $0x178] sm:$0xff] }
 0x25c   : > { %6936 = vmatpush1.bf16.msra.mxu0 %v10621_v47  ;;  %7624 = vmatpush1.bf16.msra.mxu1 %v10624_v48  ;;  %v511_v47 = vpack.c.bf16 %v479_v44, %v447_v43  ;;  %v10711_v48 = vld [vmem:[%s12136_s11 + $0xe00] ss:$16 sps:$4 sm:$0xff]   ;;  %v10803_v43 = vld [vmem:[%s12136_s11 + $0xfe4] ss:$16 sps:$4 sm:$0xff]   ;;  %v10806_v44 = vld [vmem:[%s12136_s11 + $0xfec] ss:$16 sps:$4 sm:$0xff]  }
 0x25d   : > { %6937 = vmatprep.subr.bf16.mxu0 %v10629_v49  ;;  %7625 = vmatprep.subr.bf16.mxu1 %v10632_v50  ;;  %v10714_v49 = vld [vmem:[%s12136_s11 + $0xe08] ss:$16 sps:$4 sm:$0xff]   ;;  %v10719_v50 = vld [vmem:[%s12136_s11 + $0xe24] ss:$16 sps:$4 sm:$0xff]  }
 0x260   : > { %6938 = vmatpush1.bf16.msra.mxu0 %v10627_v51  ;;  %7626 = vmatpush1.bf16.msra.mxu1 %v10630_v52  ;;  %v10722_v51 = vld [vmem:[%s12136_s11 + $0xe2c] ss:$16 sps:$4 sm:$0xff]   ;;  %v514_v52 = vpack.c.bf16 %v482_v46, %v450_v45  ;;  %v10801_v45 = vld [vmem:[%s12136_s11 + $0xfe0] ss:$16 sps:$4 sm:$0xff]   ;;  %v10804_v46 = vld [vmem:[%s12136_s11 + $0xfe8] ss:$16 sps:$4 sm:$0xff]  }
 0x261   : > { %6939 = vmatprep.subr.bf16.mxu0 %v10635_v53  ;;  %7627 = vmatprep.subr.bf16.mxu1 %v10638_v54  ;;  %v10717_v53 = vld [vmem:[%s12136_s11 + $0xe20] ss:$16 sps:$4 sm:$0xff]   ;;  %v10720_v54 = vld [vmem:[%s12136_s11 + $0xe28] ss:$16 sps:$4 sm:$0xff]  }
 0x264   : > { %6940 = vmatpush1.bf16.msra.mxu0 %v10633_v55  ;;  %7628 = vmatpush1.bf16.msra.mxu1 %v10636_v56  ;;  %v10725_v55 = vld [vmem:[%s12136_s11 + $0xe44] ss:$16 sps:$4 sm:$0xff]   ;;  %v10728_v56 = vld [vmem:[%s12136_s11 + $0xe4c] ss:$16 sps:$4 sm:$0xff]  }
 0x265   : > { %6941 = vmatprep.subr.bf16.mxu0 %v10641_v57  ;;  %7629 = vmatprep.subr.bf16.mxu1 %v10644_v58  ;;  %v10723_v57 = vld [vmem:[%s12136_s11 + $0xe40] ss:$16 sps:$4 sm:$0xff]   ;;  %v10726_v58 = vld [vmem:[%s12136_s11 + $0xe48] ss:$16 sps:$4 sm:$0xff]  }
 0x268   : > { %6942 = vmatpush1.bf16.msra.mxu0 %v10639_v59  ;;  %7630 = vmatpush1.bf16.msra.mxu1 %v10642_v60  ;;  %v10731_v59 = vld [vmem:[%s12136_s11 + $0xe64] ss:$16 sps:$4 sm:$0xff]   ;;  %v10734_v60 = vld [vmem:[%s12136_s11 + $0xe6c] ss:$16 sps:$4 sm:$0xff]  }
 0x269   : > { %6943 = vmatprep.subr.bf16.mxu0 %v10647_v61  ;;  %7631 = vmatprep.subr.bf16.mxu1 %v10650_v62  ;;  %v10729_v61 = vld [vmem:[%s12136_s11 + $0xe60] ss:$16 sps:$4 sm:$0xff]   ;;  %v10732_v62 = vld [vmem:[%s12136_s11 + $0xe68] ss:$16 sps:$4 sm:$0xff]  }
 0x26c   : > { %6944 = vmatpush1.bf16.msra.mxu0 %v10645_v63  ;;  %7632 = vmatpush1.bf16.msra.mxu1 %v10648_v0  ;;  %v10737_v63 = vld [vmem:[%s12136_s11 + $0xe84] ss:$16 sps:$4 sm:$0xff]   ;;  %v10740_v0 = vld [vmem:[%s12136_s11 + $0xe8c] ss:$16 sps:$4 sm:$0xff]  }
 0x26d   : > { %6945 = vmatprep.subr.bf16.mxu0 %v10653_v1  ;;  %7633 = vmatprep.subr.bf16.mxu1 %v10656_v2  ;;  %v10735_v1 = vld [vmem:[%s12136_s11 + $0xe80] ss:$16 sps:$4 sm:$0xff]   ;;  %v10738_v2 = vld [vmem:[%s12136_s11 + $0xe88] ss:$16 sps:$4 sm:$0xff]  }
 0x270   : > { %6946 = vmatpush1.bf16.msra.mxu0 %v10651_v3  ;;  %7634 = vmatpush1.bf16.msra.mxu1 %v10654_v4  ;;  %v10743_v3 = vld [vmem:[%s12136_s11 + $0xea4] ss:$16 sps:$4 sm:$0xff]   ;;  %v10746_v4 = vld [vmem:[%s12136_s11 + $0xeac] ss:$16 sps:$4 sm:$0xff]  }
 0x271   : > { %6947 = vmatprep.subr.bf16.mxu0 %v10659_v5  ;;  %7635 = vmatprep.subr.bf16.mxu1 %v10662_v6  ;;  %v10741_v5 = vld [vmem:[%s12136_s11 + $0xea0] ss:$16 sps:$4 sm:$0xff]   ;;  %v10744_v6 = vld [vmem:[%s12136_s11 + $0xea8] ss:$16 sps:$4 sm:$0xff]  }
 0x274   : > { %6948 = vmatpush1.bf16.msra.mxu0 %v10657_v7  ;;  %7636 = vmatpush1.bf16.msra.mxu1 %v10660_v8  ;;  %v10749_v7 = vld [vmem:[%s12136_s11 + $0xec4] ss:$16 sps:$4 sm:$0xff]   ;;  %v10752_v8 = vld [vmem:[%s12136_s11 + $0xecc] ss:$16 sps:$4 sm:$0xff]  }
 0x275   : > { %6949 = vmatprep.subr.bf16.mxu0 %v10665_v9  ;;  %7637 = vmatprep.subr.bf16.mxu1 %v10668_v10  ;;  %v10747_v9 = vld [vmem:[%s12136_s11 + $0xec0] ss:$16 sps:$4 sm:$0xff]   ;;  %v10750_v10 = vld [vmem:[%s12136_s11 + $0xec8] ss:$16 sps:$4 sm:$0xff]  }
 0x278   : > { %6950 = vmatpush1.bf16.msra.mxu0 %v10663_v11  ;;  %7638 = vmatpush1.bf16.msra.mxu1 %v10666_v12  ;;  %v10755_v11 = vld [vmem:[%s12136_s11 + $0xee4] ss:$16 sps:$4 sm:$0xff]   ;;  %v10758_v12 = vld [vmem:[%s12136_s11 + $0xeec] ss:$16 sps:$4 sm:$0xff]  }
 0x279   : > { %6951 = vmatprep.subr.bf16.mxu0 %v10671_v13  ;;  %7639 = vmatprep.subr.bf16.mxu1 %v10674_v14  ;;  %v10753_v13 = vld [vmem:[%s12136_s11 + $0xee0] ss:$16 sps:$4 sm:$0xff]   ;;  %v10756_v14 = vld [vmem:[%s12136_s11 + $0xee8] ss:$16 sps:$4 sm:$0xff]  }
 0x27c   : > { %6952 = vmatpush1.bf16.msra.mxu0 %v10669_v15  ;;  %7640 = vmatpush1.bf16.msra.mxu1 %v10672_v16  ;;  %v10761_v15 = vld [vmem:[%s12136_s11 + $0xf04] ss:$16 sps:$4 sm:$0xff]   ;;  %v10764_v16 = vld [vmem:[%s12136_s11 + $0xf0c] ss:$16 sps:$4 sm:$0xff]  }
 0x27d   : > { %6953 = vmatprep.subr.bf16.mxu0 %v10677_v17  ;;  %7641 = vmatprep.subr.bf16.mxu1 %v10680_v18  ;;  %v10759_v17 = vld [vmem:[%s12136_s11 + $0xf00] ss:$16 sps:$4 sm:$0xff]   ;;  %v10762_v18 = vld [vmem:[%s12136_s11 + $0xf08] ss:$16 sps:$4 sm:$0xff]  }
 0x280   : > { %6954 = vmatpush1.bf16.msra.mxu0 %v10675_v19  ;;  %7642 = vmatpush1.bf16.msra.mxu1 %v10678_v20  ;;  %v10767_v19 = vld [vmem:[%s12136_s11 + $0xf24] ss:$16 sps:$4 sm:$0xff]   ;;  %v10770_v20 = vld [vmem:[%s12136_s11 + $0xf2c] ss:$16 sps:$4 sm:$0xff]  }
 0x281   : > { %6955 = vmatprep.subr.bf16.mxu0 %v10683_v21  ;;  %7643 = vmatprep.subr.bf16.mxu1 %v10686_v22  ;;  %v10765_v21 = vld [vmem:[%s12136_s11 + $0xf20] ss:$16 sps:$4 sm:$0xff]   ;;  %v10768_v22 = vld [vmem:[%s12136_s11 + $0xf28] ss:$16 sps:$4 sm:$0xff]  }
 0x284   : > { %6956 = vmatpush1.bf16.msra.mxu0 %v10681_v23  ;;  %7644 = vmatpush1.bf16.msra.mxu1 %v10684_v24  ;;  %v10773_v23 = vld [vmem:[%s12136_s11 + $0xf44] ss:$16 sps:$4 sm:$0xff]   ;;  %v10776_v24 = vld [vmem:[%s12136_s11 + $0xf4c] ss:$16 sps:$4 sm:$0xff]  }
 0x285   : > { %6957 = vmatprep.subr.bf16.mxu0 %v10689_v25  ;;  %7645 = vmatprep.subr.bf16.mxu1 %v10692_v26  ;;  %v10771_v25 = vld [vmem:[%s12136_s11 + $0xf40] ss:$16 sps:$4 sm:$0xff]   ;;  %v10774_v26 = vld [vmem:[%s12136_s11 + $0xf48] ss:$16 sps:$4 sm:$0xff]  }
 0x288   : > { %6958 = vmatpush1.bf16.msra.mxu0 %v10687_v27  ;;  %7646 = vmatpush1.bf16.msra.mxu1 %v10690_v28  ;;  %v10779_v27 = vld [vmem:[%s12136_s11 + $0xf64] ss:$16 sps:$4 sm:$0xff]   ;;  %v10782_v28 = vld [vmem:[%s12136_s11 + $0xf6c] ss:$16 sps:$4 sm:$0xff]  }
 0x289   : > { %6959 = vmatprep.subr.bf16.mxu0 %v10695_v29  ;;  %7647 = vmatprep.subr.bf16.mxu1 %v10698_v30  ;;  %v10777_v29 = vld [vmem:[%s12136_s11 + $0xf60] ss:$16 sps:$4 sm:$0xff]   ;;  %v10780_v30 = vld [vmem:[%s12136_s11 + $0xf68] ss:$16 sps:$4 sm:$0xff]  }
 0x28c   : > { %6960 = vmatpush1.bf16.msra.mxu0 %v10693_v31  ;;  %7648 = vmatpush1.bf16.msra.mxu1 %v10696_v32  ;;  %v10785_v31 = vld [vmem:[%s12136_s11 + $0xf84] ss:$16 sps:$4 sm:$0xff]   ;;  %v10788_v32 = vld [vmem:[%s12136_s11 + $0xf8c] ss:$16 sps:$4 sm:$0xff]  }
 0x28d   : > { %6961 = vmatprep.subr.bf16.mxu0 %v10701_v33  ;;  %7649 = vmatprep.subr.bf16.mxu1 %v10704_v34  ;;  %v10783_v33 = vld [vmem:[%s12136_s11 + $0xf80] ss:$16 sps:$4 sm:$0xff]   ;;  %v10786_v34 = vld [vmem:[%s12136_s11 + $0xf88] ss:$16 sps:$4 sm:$0xff]  }
 0x290   : > { %6962 = vmatpush1.bf16.msra.mxu0 %v10699_v35  ;;  %7650 = vmatpush1.bf16.msra.mxu1 %v10702_v36  ;;  %v10791_v35 = vld [vmem:[%s12136_s11 + $0xfa4] ss:$16 sps:$4 sm:$0xff]   ;;  %v10794_v36 = vld [vmem:[%s12136_s11 + $0xfac] ss:$16 sps:$4 sm:$0xff]  }
 0x291   : > { %6963 = vmatprep.subr.bf16.mxu0 %v10707_v37  ;;  %7651 = vmatprep.subr.bf16.mxu1 %v10710_v38  ;;  %v10789_v37 = vld [vmem:[%s12136_s11 + $0xfa0] ss:$16 sps:$4 sm:$0xff]   ;;  %v10792_v38 = vld [vmem:[%s12136_s11 + $0xfa8] ss:$16 sps:$4 sm:$0xff]  }
 0x294   : > { %6964 = vmatpush1.bf16.msra.mxu0 %v10705_v39  ;;  %7652 = vmatpush1.bf16.msra.mxu1 %v10708_v40  ;;  %v10797_v39 = vld [vmem:[%s12136_s11 + $0xfc4] ss:$16 sps:$4 sm:$0xff]   ;;  %v10800_v40 = vld [vmem:[%s12136_s11 + $0xfcc] ss:$16 sps:$4 sm:$0xff]  }
 0x295   : > { %6976 = vmatprep.subr.bf16.mxu0 %v10713_v41  ;;  %7664 = vmatprep.subr.bf16.mxu1 %v10716_v42  ;;  %v10795_v41 = vld [vmem:[%s12136_s11 + $0xfc0] ss:$16 sps:$4 sm:$0xff]   ;;  %v10798_v42 = vld [vmem:[%s12136_s11 + $0xfc8] ss:$16 sps:$4 sm:$0xff]  }
 0x297   : > { %6966 = vmatmul.mubr.bf16.vlgmr.msra.gmra.mrb[0].mxu0 %v511_v47  ;;  %7654 = vmatmul.mubr.bf16.vlgmr.msra.gmra.mrb[0].mxu1 %v511_v47  ;;  %v10809_v47 = vld [vmem:[%s12136_s11 + $0x1004] ss:$16 sps:$4 sm:$0xff]  }
 0x298   : > { %6977 = vmatpush1.bf16.msra.mxu0 %v10711_v48  ;;  %7665 = vmatpush1.bf16.msra.mxu1 %v10714_v49  ;;  %v10812_v48 = vld [vmem:[%s12136_s11 + $0x100c] ss:$16 sps:$4 sm:$0xff]   ;;  %v449_v49 = vld [vmem:[%s12128_s16 + $0x70] sm:$0xff] }
 0x299   : > { %6978 = vmatprep.subr.bf16.mxu0 %v10719_v50  ;;  %7666 = vmatprep.subr.bf16.mxu1 %v10722_v51  ;;  %v481_v50 = vld [vmem:[%s12128_s16 + $0x170] sm:$0xff]  ;;  %v452_v51 = vld [vmem:[%s12128_s16 + $0x88] sm:$0xff] }
 0x29a   : > { %7008 = vmatprep.mubr.bf16.mxu0 %v514_v52  ;;  %7696 = vmatprep.mubr.bf16.mxu1 %v514_v52  ;;  %v484_v52 = vld [vmem:[%s12128_s16 + $0x188] sm:$0xff] }
 0x29c   : > { %6979 = vmatpush1.bf16.msra.mxu0 %v10717_v53  ;;  %7667 = vmatpush1.bf16.msra.mxu1 %v10720_v54  ;;  %v513_v53 = vpack.c.bf16 %v481_v50, %v449_v49  ;;  %v10807_v54 = vld [vmem:[%s12136_s11 + $0x1000] ss:$16 sps:$4 sm:$0xff]   ;;  %v10899_v49 = vld [vmem:[%s12136_s11 + $0x11e4] ss:$16 sps:$4 sm:$0xff]   ;;  %v10902_v50 = vld [vmem:[%s12136_s11 + $0x11ec] ss:$16 sps:$4 sm:$0xff]  }
 0x29d   : > { %6980 = vmatprep.subr.bf16.mxu0 %v10725_v55  ;;  %7668 = vmatprep.subr.bf16.mxu1 %v10728_v56  ;;  %v10810_v55 = vld [vmem:[%s12136_s11 + $0x1008] ss:$16 sps:$4 sm:$0xff]   ;;  %v10815_v56 = vld [vmem:[%s12136_s11 + $0x1024] ss:$16 sps:$4 sm:$0xff]  }
 0x2a0   : > { %6981 = vmatpush1.bf16.msra.mxu0 %v10723_v57  ;;  %7669 = vmatpush1.bf16.msra.mxu1 %v10726_v58  ;;  %v10818_v57 = vld [vmem:[%s12136_s11 + $0x102c] ss:$16 sps:$4 sm:$0xff]   ;;  %v516_v58 = vpack.c.bf16 %v484_v52, %v452_v51  ;;  %v10897_v51 = vld [vmem:[%s12136_s11 + $0x11e0] ss:$16 sps:$4 sm:$0xff]   ;;  %v10900_v52 = vld [vmem:[%s12136_s11 + $0x11e8] ss:$16 sps:$4 sm:$0xff]  }
 0x2a1   : > { %6982 = vmatprep.subr.bf16.mxu0 %v10731_v59  ;;  %7670 = vmatprep.subr.bf16.mxu1 %v10734_v60  ;;  %v10813_v59 = vld [vmem:[%s12136_s11 + $0x1020] ss:$16 sps:$4 sm:$0xff]   ;;  %v10816_v60 = vld [vmem:[%s12136_s11 + $0x1028] ss:$16 sps:$4 sm:$0xff]  }
 0x2a4   : > { %6983 = vmatpush1.bf16.msra.mxu0 %v10729_v61  ;;  %7671 = vmatpush1.bf16.msra.mxu1 %v10732_v62  ;;  %v10821_v61 = vld [vmem:[%s12136_s11 + $0x1044] ss:$16 sps:$4 sm:$0xff]   ;;  %v10824_v62 = vld [vmem:[%s12136_s11 + $0x104c] ss:$16 sps:$4 sm:$0xff]  }
 0x2a5   : > { %6984 = vmatprep.subr.bf16.mxu0 %v10737_v63  ;;  %7672 = vmatprep.subr.bf16.mxu1 %v10740_v0  ;;  %v10819_v63 = vld [vmem:[%s12136_s11 + $0x1040] ss:$16 sps:$4 sm:$0xff]   ;;  %v10822_v0 = vld [vmem:[%s12136_s11 + $0x1048] ss:$16 sps:$4 sm:$0xff]  }
 0x2a8   : > { %6985 = vmatpush1.bf16.msra.mxu0 %v10735_v1  ;;  %7673 = vmatpush1.bf16.msra.mxu1 %v10738_v2  ;;  %v10827_v1 = vld [vmem:[%s12136_s11 + $0x1064] ss:$16 sps:$4 sm:$0xff]   ;;  %v10830_v2 = vld [vmem:[%s12136_s11 + $0x106c] ss:$16 sps:$4 sm:$0xff]  }
 0x2a9   : > { %6986 = vmatprep.subr.bf16.mxu0 %v10743_v3  ;;  %7674 = vmatprep.subr.bf16.mxu1 %v10746_v4  ;;  %v10825_v3 = vld [vmem:[%s12136_s11 + $0x1060] ss:$16 sps:$4 sm:$0xff]   ;;  %v10828_v4 = vld [vmem:[%s12136_s11 + $0x1068] ss:$16 sps:$4 sm:$0xff]  }
 0x2ac   : > { %6987 = vmatpush1.bf16.msra.mxu0 %v10741_v5  ;;  %7675 = vmatpush1.bf16.msra.mxu1 %v10744_v6  ;;  %v10833_v5 = vld [vmem:[%s12136_s11 + $0x1084] ss:$16 sps:$4 sm:$0xff]   ;;  %v10836_v6 = vld [vmem:[%s12136_s11 + $0x108c] ss:$16 sps:$4 sm:$0xff]  }
 0x2ad   : > { %6988 = vmatprep.subr.bf16.mxu0 %v10749_v7  ;;  %7676 = vmatprep.subr.bf16.mxu1 %v10752_v8  ;;  %v10831_v7 = vld [vmem:[%s12136_s11 + $0x1080] ss:$16 sps:$4 sm:$0xff]   ;;  %v10834_v8 = vld [vmem:[%s12136_s11 + $0x1088] ss:$16 sps:$4 sm:$0xff]  }
 0x2b0   : > { %6989 = vmatpush1.bf16.msra.mxu0 %v10747_v9  ;;  %7677 = vmatpush1.bf16.msra.mxu1 %v10750_v10  ;;  %v10839_v9 = vld [vmem:[%s12136_s11 + $0x10a4] ss:$16 sps:$4 sm:$0xff]   ;;  %v10842_v10 = vld [vmem:[%s12136_s11 + $0x10ac] ss:$16 sps:$4 sm:$0xff]  }
 0x2b1   : > { %6990 = vmatprep.subr.bf16.mxu0 %v10755_v11  ;;  %7678 = vmatprep.subr.bf16.mxu1 %v10758_v12  ;;  %v10837_v11 = vld [vmem:[%s12136_s11 + $0x10a0] ss:$16 sps:$4 sm:$0xff]   ;;  %v10840_v12 = vld [vmem:[%s12136_s11 + $0x10a8] ss:$16 sps:$4 sm:$0xff]  }
 0x2b4   : > { %6991 = vmatpush1.bf16.msra.mxu0 %v10753_v13  ;;  %7679 = vmatpush1.bf16.msra.mxu1 %v10756_v14  ;;  %v10845_v13 = vld [vmem:[%s12136_s11 + $0x10c4] ss:$16 sps:$4 sm:$0xff]   ;;  %v10848_v14 = vld [vmem:[%s12136_s11 + $0x10cc] ss:$16 sps:$4 sm:$0xff]  }
 0x2b5   : > { %6992 = vmatprep.subr.bf16.mxu0 %v10761_v15  ;;  %7680 = vmatprep.subr.bf16.mxu1 %v10764_v16  ;;  %v10843_v15 = vld [vmem:[%s12136_s11 + $0x10c0] ss:$16 sps:$4 sm:$0xff]   ;;  %v10846_v16 = vld [vmem:[%s12136_s11 + $0x10c8] ss:$16 sps:$4 sm:$0xff]  }
 0x2b8   : > { %6993 = vmatpush1.bf16.msra.mxu0 %v10759_v17  ;;  %7681 = vmatpush1.bf16.msra.mxu1 %v10762_v18  ;;  %v10851_v17 = vld [vmem:[%s12136_s11 + $0x10e4] ss:$16 sps:$4 sm:$0xff]   ;;  %v10854_v18 = vld [vmem:[%s12136_s11 + $0x10ec] ss:$16 sps:$4 sm:$0xff]  }
 0x2b9   : > { %6994 = vmatprep.subr.bf16.mxu0 %v10767_v19  ;;  %7682 = vmatprep.subr.bf16.mxu1 %v10770_v20  ;;  %v10849_v19 = vld [vmem:[%s12136_s11 + $0x10e0] ss:$16 sps:$4 sm:$0xff]   ;;  %v10852_v20 = vld [vmem:[%s12136_s11 + $0x10e8] ss:$16 sps:$4 sm:$0xff]  }
 0x2bc   : > { %6995 = vmatpush1.bf16.msra.mxu0 %v10765_v21  ;;  %7683 = vmatpush1.bf16.msra.mxu1 %v10768_v22  ;;  %v10857_v21 = vld [vmem:[%s12136_s11 + $0x1104] ss:$16 sps:$4 sm:$0xff]   ;;  %v10860_v22 = vld [vmem:[%s12136_s11 + $0x110c] ss:$16 sps:$4 sm:$0xff]  }
 0x2bd   : > { %6996 = vmatprep.subr.bf16.mxu0 %v10773_v23  ;;  %7684 = vmatprep.subr.bf16.mxu1 %v10776_v24  ;;  %v10855_v23 = vld [vmem:[%s12136_s11 + $0x1100] ss:$16 sps:$4 sm:$0xff]   ;;  %v10858_v24 = vld [vmem:[%s12136_s11 + $0x1108] ss:$16 sps:$4 sm:$0xff]  }
 0x2c0   : > { %6997 = vmatpush1.bf16.msra.mxu0 %v10771_v25  ;;  %7685 = vmatpush1.bf16.msra.mxu1 %v10774_v26  ;;  %v10863_v25 = vld [vmem:[%s12136_s11 + $0x1124] ss:$16 sps:$4 sm:$0xff]   ;;  %v10866_v26 = vld [vmem:[%s12136_s11 + $0x112c] ss:$16 sps:$4 sm:$0xff]  }
 0x2c1   : > { %6998 = vmatprep.subr.bf16.mxu0 %v10779_v27  ;;  %7686 = vmatprep.subr.bf16.mxu1 %v10782_v28  ;;  %v10861_v27 = vld [vmem:[%s12136_s11 + $0x1120] ss:$16 sps:$4 sm:$0xff]   ;;  %v10864_v28 = vld [vmem:[%s12136_s11 + $0x1128] ss:$16 sps:$4 sm:$0xff]  }
 0x2c4   : > { %6999 = vmatpush1.bf16.msra.mxu0 %v10777_v29  ;;  %7687 = vmatpush1.bf16.msra.mxu1 %v10780_v30  ;;  %v10869_v29 = vld [vmem:[%s12136_s11 + $0x1144] ss:$16 sps:$4 sm:$0xff]   ;;  %v10872_v30 = vld [vmem:[%s12136_s11 + $0x114c] ss:$16 sps:$4 sm:$0xff]  }
 0x2c5   : > { %7000 = vmatprep.subr.bf16.mxu0 %v10785_v31  ;;  %7688 = vmatprep.subr.bf16.mxu1 %v10788_v32  ;;  %v10867_v31 = vld [vmem:[%s12136_s11 + $0x1140] ss:$16 sps:$4 sm:$0xff]   ;;  %v10870_v32 = vld [vmem:[%s12136_s11 + $0x1148] ss:$16 sps:$4 sm:$0xff]  }
 0x2c8   : > { %7001 = vmatpush1.bf16.msra.mxu0 %v10783_v33  ;;  %7689 = vmatpush1.bf16.msra.mxu1 %v10786_v34  ;;  %v10875_v33 = vld [vmem:[%s12136_s11 + $0x1164] ss:$16 sps:$4 sm:$0xff]   ;;  %v10878_v34 = vld [vmem:[%s12136_s11 + $0x116c] ss:$16 sps:$4 sm:$0xff]  }
 0x2c9   : > { %7002 = vmatprep.subr.bf16.mxu0 %v10791_v35  ;;  %7690 = vmatprep.subr.bf16.mxu1 %v10794_v36  ;;  %v10873_v35 = vld [vmem:[%s12136_s11 + $0x1160] ss:$16 sps:$4 sm:$0xff]   ;;  %v10876_v36 = vld [vmem:[%s12136_s11 + $0x1168] ss:$16 sps:$4 sm:$0xff]  }
 0x2cc   : > { %7003 = vmatpush1.bf16.msra.mxu0 %v10789_v37  ;;  %7691 = vmatpush1.bf16.msra.mxu1 %v10792_v38  ;;  %v10881_v37 = vld [vmem:[%s12136_s11 + $0x1184] ss:$16 sps:$4 sm:$0xff]   ;;  %v10884_v38 = vld [vmem:[%s12136_s11 + $0x118c] ss:$16 sps:$4 sm:$0xff]  }
 0x2cd   : > { %7004 = vmatprep.subr.bf16.mxu0 %v10797_v39  ;;  %7692 = vmatprep.subr.bf16.mxu1 %v10800_v40  ;;  %v10879_v39 = vld [vmem:[%s12136_s11 + $0x1180] ss:$16 sps:$4 sm:$0xff]   ;;  %v10882_v40 = vld [vmem:[%s12136_s11 + $0x1188] ss:$16 sps:$4 sm:$0xff]  }
 0x2d0   : > { %7005 = vmatpush1.bf16.msra.mxu0 %v10795_v41  ;;  %7693 = vmatpush1.bf16.msra.mxu1 %v10798_v42  ;;  %v10887_v41 = vld [vmem:[%s12136_s11 + $0x11a4] ss:$16 sps:$4 sm:$0xff]   ;;  %v10890_v42 = vld [vmem:[%s12136_s11 + $0x11ac] ss:$16 sps:$4 sm:$0xff]  }
 0x2d1   : > { %7006 = vmatprep.subr.bf16.mxu0 %v10803_v43  ;;  %7694 = vmatprep.subr.bf16.mxu1 %v10806_v44  ;;  %v10885_v43 = vld [vmem:[%s12136_s11 + $0x11a0] ss:$16 sps:$4 sm:$0xff]   ;;  %v10888_v44 = vld [vmem:[%s12136_s11 + $0x11a8] ss:$16 sps:$4 sm:$0xff]  }
 0x2d4   : > { %7007 = vmatpush1.bf16.msra.mxu0 %v10801_v45  ;;  %7695 = vmatpush1.bf16.msra.mxu1 %v10804_v46  ;;  %v10893_v45 = vld [vmem:[%s12136_s11 + $0x11c4] ss:$16 sps:$4 sm:$0xff]   ;;  %v10896_v46 = vld [vmem:[%s12136_s11 + $0x11cc] ss:$16 sps:$4 sm:$0xff]  }
 0x2d5   : > { %7019 = vmatprep.subr.bf16.mxu0 %v10809_v47  ;;  %7707 = vmatprep.subr.bf16.mxu1 %v10812_v48  ;;  %v10891_v47 = vld [vmem:[%s12136_s11 + $0x11c0] ss:$16 sps:$4 sm:$0xff]   ;;  %v10894_v48 = vld [vmem:[%s12136_s11 + $0x11c8] ss:$16 sps:$4 sm:$0xff]  }
 0x2d7   : > { %7009 = vmatmul.mubr.bf16.vlgmr.msra.gmra.mrb[0].mxu0 %v513_v53  ;;  %7697 = vmatmul.mubr.bf16.vlgmr.msra.gmra.mrb[0].mxu1 %v513_v53  ;;  %v10905_v53 = vld [vmem:[%s12136_s11 + $0x1204] ss:$16 sps:$4 sm:$0xff]  }
 0x2d8   : > { %7020 = vmatpush1.bf16.msra.mxu0 %v10807_v54  ;;  %7708 = vmatpush1.bf16.msra.mxu1 %v10810_v55  ;;  %v10908_v54 = vld [vmem:[%s12136_s11 + $0x120c] ss:$16 sps:$4 sm:$0xff]   ;;  %v451_v55 = vld [vmem:[%s12128_s16 + $0x80] sm:$0xff] }
 0x2d9   : > { %7021 = vmatprep.subr.bf16.mxu0 %v10815_v56  ;;  %7709 = vmatprep.subr.bf16.mxu1 %v10818_v57  ;;  %v483_v56 = vld [vmem:[%s12128_s16 + $0x180] sm:$0xff]  ;;  %v454_v57 = vld [vmem:[%s12128_s16 + $0x98] sm:$0xff] }
 0x2da   : > { %7051 = vmatprep.mubr.bf16.mxu0 %v516_v58  ;;  %7739 = vmatprep.mubr.bf16.mxu1 %v516_v58  ;;  %v486_v58 = vld [vmem:[%s12128_s16 + $0x198] sm:$0xff] }
 0x2dc   : > { %7022 = vmatpush1.bf16.msra.mxu0 %v10813_v59  ;;  %7710 = vmatpush1.bf16.msra.mxu1 %v10816_v60  ;;  %v515_v59 = vpack.c.bf16 %v483_v56, %v451_v55  ;;  %v10903_v60 = vld [vmem:[%s12136_s11 + $0x1200] ss:$16 sps:$4 sm:$0xff]   ;;  %v10995_v55 = vld [vmem:[%s12136_s11 + $0x13e4] ss:$16 sps:$4 sm:$0xff]   ;;  %v10998_v56 = vld [vmem:[%s12136_s11 + $0x13ec] ss:$16 sps:$4 sm:$0xff]  }
 0x2dd   : > { %7023 = vmatprep.subr.bf16.mxu0 %v10821_v61  ;;  %7711 = vmatprep.subr.bf16.mxu1 %v10824_v62  ;;  %v10906_v61 = vld [vmem:[%s12136_s11 + $0x1208] ss:$16 sps:$4 sm:$0xff]   ;;  %v10911_v62 = vld [vmem:[%s12136_s11 + $0x1224] ss:$16 sps:$4 sm:$0xff]  }
 0x2e0   : > { %7024 = vmatpush1.bf16.msra.mxu0 %v10819_v63  ;;  %7712 = vmatpush1.bf16.msra.mxu1 %v10822_v0  ;;  %v10914_v63 = vld [vmem:[%s12136_s11 + $0x122c] ss:$16 sps:$4 sm:$0xff]   ;;  %v518_v0 = vpack.c.bf16 %v486_v58, %v454_v57  ;;  %v10993_v57 = vld [vmem:[%s12136_s11 + $0x13e0] ss:$16 sps:$4 sm:$0xff]   ;;  %v10996_v58 = vld [vmem:[%s12136_s11 + $0x13e8] ss:$16 sps:$4 sm:$0xff]  }
 0x2e1   : > { %7025 = vmatprep.subr.bf16.mxu0 %v10827_v1  ;;  %7713 = vmatprep.subr.bf16.mxu1 %v10830_v2  ;;  %v10909_v1 = vld [vmem:[%s12136_s11 + $0x1220] ss:$16 sps:$4 sm:$0xff]   ;;  %v10912_v2 = vld [vmem:[%s12136_s11 + $0x1228] ss:$16 sps:$4 sm:$0xff]  }
 0x2e4   : > { %7026 = vmatpush1.bf16.msra.mxu0 %v10825_v3  ;;  %7714 = vmatpush1.bf16.msra.mxu1 %v10828_v4  ;;  %v10917_v3 = vld [vmem:[%s12136_s11 + $0x1244] ss:$16 sps:$4 sm:$0xff]   ;;  %v10920_v4 = vld [vmem:[%s12136_s11 + $0x124c] ss:$16 sps:$4 sm:$0xff]  }
 0x2e5   : > { %7027 = vmatprep.subr.bf16.mxu0 %v10833_v5  ;;  %7715 = vmatprep.subr.bf16.mxu1 %v10836_v6  ;;  %v10915_v5 = vld [vmem:[%s12136_s11 + $0x1240] ss:$16 sps:$4 sm:$0xff]   ;;  %v10918_v6 = vld [vmem:[%s12136_s11 + $0x1248] ss:$16 sps:$4 sm:$0xff]  }
 0x2e8   : > { %7028 = vmatpush1.bf16.msra.mxu0 %v10831_v7  ;;  %7716 = vmatpush1.bf16.msra.mxu1 %v10834_v8  ;;  %v10923_v7 = vld [vmem:[%s12136_s11 + $0x1264] ss:$16 sps:$4 sm:$0xff]   ;;  %v10926_v8 = vld [vmem:[%s12136_s11 + $0x126c] ss:$16 sps:$4 sm:$0xff]  }
 0x2e9   : > { %7029 = vmatprep.subr.bf16.mxu0 %v10839_v9  ;;  %7717 = vmatprep.subr.bf16.mxu1 %v10842_v10  ;;  %v10921_v9 = vld [vmem:[%s12136_s11 + $0x1260] ss:$16 sps:$4 sm:$0xff]   ;;  %v10924_v10 = vld [vmem:[%s12136_s11 + $0x1268] ss:$16 sps:$4 sm:$0xff]  }
 0x2ec   : > { %7030 = vmatpush1.bf16.msra.mxu0 %v10837_v11  ;;  %7718 = vmatpush1.bf16.msra.mxu1 %v10840_v12  ;;  %v10929_v11 = vld [vmem:[%s12136_s11 + $0x1284] ss:$16 sps:$4 sm:$0xff]   ;;  %v10932_v12 = vld [vmem:[%s12136_s11 + $0x128c] ss:$16 sps:$4 sm:$0xff]  }
 0x2ed   : > { %7031 = vmatprep.subr.bf16.mxu0 %v10845_v13  ;;  %7719 = vmatprep.subr.bf16.mxu1 %v10848_v14  ;;  %v10927_v13 = vld [vmem:[%s12136_s11 + $0x1280] ss:$16 sps:$4 sm:$0xff]   ;;  %v10930_v14 = vld [vmem:[%s12136_s11 + $0x1288] ss:$16 sps:$4 sm:$0xff]  }
 0x2f0   : > { %7032 = vmatpush1.bf16.msra.mxu0 %v10843_v15  ;;  %7720 = vmatpush1.bf16.msra.mxu1 %v10846_v16  ;;  %v10935_v15 = vld [vmem:[%s12136_s11 + $0x12a4] ss:$16 sps:$4 sm:$0xff]   ;;  %v10938_v16 = vld [vmem:[%s12136_s11 + $0x12ac] ss:$16 sps:$4 sm:$0xff]  }
 0x2f1   : > { %7033 = vmatprep.subr.bf16.mxu0 %v10851_v17  ;;  %7721 = vmatprep.subr.bf16.mxu1 %v10854_v18  ;;  %v10933_v17 = vld [vmem:[%s12136_s11 + $0x12a0] ss:$16 sps:$4 sm:$0xff]   ;;  %v10936_v18 = vld [vmem:[%s12136_s11 + $0x12a8] ss:$16 sps:$4 sm:$0xff]  }
 0x2f4   : > { %7034 = vmatpush1.bf16.msra.mxu0 %v10849_v19  ;;  %7722 = vmatpush1.bf16.msra.mxu1 %v10852_v20  ;;  %v10941_v19 = vld [vmem:[%s12136_s11 + $0x12c4] ss:$16 sps:$4 sm:$0xff]   ;;  %v10944_v20 = vld [vmem:[%s12136_s11 + $0x12cc] ss:$16 sps:$4 sm:$0xff]  }
 0x2f5   : > { %7035 = vmatprep.subr.bf16.mxu0 %v10857_v21  ;;  %7723 = vmatprep.subr.bf16.mxu1 %v10860_v22  ;;  %v10939_v21 = vld [vmem:[%s12136_s11 + $0x12c0] ss:$16 sps:$4 sm:$0xff]   ;;  %v10942_v22 = vld [vmem:[%s12136_s11 + $0x12c8] ss:$16 sps:$4 sm:$0xff]  }
 0x2f8   : > { %7036 = vmatpush1.bf16.msra.mxu0 %v10855_v23  ;;  %7724 = vmatpush1.bf16.msra.mxu1 %v10858_v24  ;;  %v10947_v23 = vld [vmem:[%s12136_s11 + $0x12e4] ss:$16 sps:$4 sm:$0xff]   ;;  %v10950_v24 = vld [vmem:[%s12136_s11 + $0x12ec] ss:$16 sps:$4 sm:$0xff]  }
 0x2f9   : > { %7037 = vmatprep.subr.bf16.mxu0 %v10863_v25  ;;  %7725 = vmatprep.subr.bf16.mxu1 %v10866_v26  ;;  %v10945_v25 = vld [vmem:[%s12136_s11 + $0x12e0] ss:$16 sps:$4 sm:$0xff]   ;;  %v10948_v26 = vld [vmem:[%s12136_s11 + $0x12e8] ss:$16 sps:$4 sm:$0xff]  }
 0x2fc   : > { %7038 = vmatpush1.bf16.msra.mxu0 %v10861_v27  ;;  %7726 = vmatpush1.bf16.msra.mxu1 %v10864_v28  ;;  %v10953_v27 = vld [vmem:[%s12136_s11 + $0x1304] ss:$16 sps:$4 sm:$0xff]   ;;  %v10956_v28 = vld [vmem:[%s12136_s11 + $0x130c] ss:$16 sps:$4 sm:$0xff]  }
 0x2fd   : > { %7039 = vmatprep.subr.bf16.mxu0 %v10869_v29  ;;  %7727 = vmatprep.subr.bf16.mxu1 %v10872_v30  ;;  %v10951_v29 = vld [vmem:[%s12136_s11 + $0x1300] ss:$16 sps:$4 sm:$0xff]   ;;  %v10954_v30 = vld [vmem:[%s12136_s11 + $0x1308] ss:$16 sps:$4 sm:$0xff]  }
 0x300   : > { %7040 = vmatpush1.bf16.msra.mxu0 %v10867_v31  ;;  %7728 = vmatpush1.bf16.msra.mxu1 %v10870_v32  ;;  %v10959_v31 = vld [vmem:[%s12136_s11 + $0x1324] ss:$16 sps:$4 sm:$0xff]   ;;  %v10962_v32 = vld [vmem:[%s12136_s11 + $0x132c] ss:$16 sps:$4 sm:$0xff]  }
 0x301   : > { %7041 = vmatprep.subr.bf16.mxu0 %v10875_v33  ;;  %7729 = vmatprep.subr.bf16.mxu1 %v10878_v34  ;;  %v10957_v33 = vld [vmem:[%s12136_s11 + $0x1320] ss:$16 sps:$4 sm:$0xff]   ;;  %v10960_v34 = vld [vmem:[%s12136_s11 + $0x1328] ss:$16 sps:$4 sm:$0xff]  }
 0x304   : > { %7042 = vmatpush1.bf16.msra.mxu0 %v10873_v35  ;;  %7730 = vmatpush1.bf16.msra.mxu1 %v10876_v36  ;;  %v10965_v35 = vld [vmem:[%s12136_s11 + $0x1344] ss:$16 sps:$4 sm:$0xff]   ;;  %v10968_v36 = vld [vmem:[%s12136_s11 + $0x134c] ss:$16 sps:$4 sm:$0xff]  }
 0x305   : > { %7043 = vmatprep.subr.bf16.mxu0 %v10881_v37  ;;  %7731 = vmatprep.subr.bf16.mxu1 %v10884_v38  ;;  %v10963_v37 = vld [vmem:[%s12136_s11 + $0x1340] ss:$16 sps:$4 sm:$0xff]   ;;  %v10966_v38 = vld [vmem:[%s12136_s11 + $0x1348] ss:$16 sps:$4 sm:$0xff]  }
 0x308   : > { %7044 = vmatpush1.bf16.msra.mxu0 %v10879_v39  ;;  %7732 = vmatpush1.bf16.msra.mxu1 %v10882_v40  ;;  %v10971_v39 = vld [vmem:[%s12136_s11 + $0x1364] ss:$16 sps:$4 sm:$0xff]   ;;  %v10974_v40 = vld [vmem:[%s12136_s11 + $0x136c] ss:$16 sps:$4 sm:$0xff]  }
 0x309   : > { %7045 = vmatprep.subr.bf16.mxu0 %v10887_v41  ;;  %7733 = vmatprep.subr.bf16.mxu1 %v10890_v42  ;;  %v10969_v41 = vld [vmem:[%s12136_s11 + $0x1360] ss:$16 sps:$4 sm:$0xff]   ;;  %v10972_v42 = vld [vmem:[%s12136_s11 + $0x1368] ss:$16 sps:$4 sm:$0xff]  }
 0x30c   : > { %7046 = vmatpush1.bf16.msra.mxu0 %v10885_v43  ;;  %7734 = vmatpush1.bf16.msra.mxu1 %v10888_v44  ;;  %v10977_v43 = vld [vmem:[%s12136_s11 + $0x1384] ss:$16 sps:$4 sm:$0xff]   ;;  %v10980_v44 = vld [vmem:[%s12136_s11 + $0x138c] ss:$16 sps:$4 sm:$0xff]  }
 0x30d   : > { %7047 = vmatprep.subr.bf16.mxu0 %v10893_v45  ;;  %7735 = vmatprep.subr.bf16.mxu1 %v10896_v46  ;;  %v10975_v45 = vld [vmem:[%s12136_s11 + $0x1380] ss:$16 sps:$4 sm:$0xff]   ;;  %v10978_v46 = vld [vmem:[%s12136_s11 + $0x1388] ss:$16 sps:$4 sm:$0xff]  }
 0x310   : > { %7048 = vmatpush1.bf16.msra.mxu0 %v10891_v47  ;;  %7736 = vmatpush1.bf16.msra.mxu1 %v10894_v48  ;;  %v10983_v47 = vld [vmem:[%s12136_s11 + $0x13a4] ss:$16 sps:$4 sm:$0xff]   ;;  %v10986_v48 = vld [vmem:[%s12136_s11 + $0x13ac] ss:$16 sps:$4 sm:$0xff]  }
 0x311   : > { %7049 = vmatprep.subr.bf16.mxu0 %v10899_v49  ;;  %7737 = vmatprep.subr.bf16.mxu1 %v10902_v50  ;;  %v10981_v49 = vld [vmem:[%s12136_s11 + $0x13a0] ss:$16 sps:$4 sm:$0xff]   ;;  %v10984_v50 = vld [vmem:[%s12136_s11 + $0x13a8] ss:$16 sps:$4 sm:$0xff]  }
 0x314   : > { %7050 = vmatpush1.bf16.msra.mxu0 %v10897_v51  ;;  %7738 = vmatpush1.bf16.msra.mxu1 %v10900_v52  ;;  %v10989_v51 = vld [vmem:[%s12136_s11 + $0x13c4] ss:$16 sps:$4 sm:$0xff]   ;;  %v10992_v52 = vld [vmem:[%s12136_s11 + $0x13cc] ss:$16 sps:$4 sm:$0xff]  }
 0x315   : > { %7062 = vmatprep.subr.bf16.mxu0 %v10905_v53  ;;  %7750 = vmatprep.subr.bf16.mxu1 %v10908_v54  ;;  %v10987_v53 = vld [vmem:[%s12136_s11 + $0x13c0] ss:$16 sps:$4 sm:$0xff]   ;;  %v10990_v54 = vld [vmem:[%s12136_s11 + $0x13c8] ss:$16 sps:$4 sm:$0xff]  }
 0x317   : > { %7052 = vmatmul.mubr.bf16.vlgmr.msra.gmra.mrb[0].mxu0 %v515_v59  ;;  %7740 = vmatmul.mubr.bf16.vlgmr.msra.gmra.mrb[0].mxu1 %v515_v59  ;;  %v453_v59 = vld [vmem:[%s12128_s16 + $0x90] sm:$0xff] }
 0x318   : > { %7063 = vmatpush1.bf16.msra.mxu0 %v10903_v60  ;;  %7751 = vmatpush1.bf16.msra.mxu1 %v10906_v61  ;;  %v485_v60 = vld [vmem:[%s12128_s16 + $0x190] sm:$0xff] }
 0x319   : > { %7064 = vmatprep.subr.bf16.mxu0 %v10911_v62  ;;  %7752 = vmatprep.subr.bf16.mxu1 %v10914_v63  ;;  %v11001_v61 = vld [vmem:[%s12136_s11 + $0x1404] ss:$16 sps:$4 sm:$0xff]   ;;  %v11004_v62 = vld [vmem:[%s12136_s11 + $0x140c] ss:$16 sps:$4 sm:$0xff]   ;;  %v517_v63 = vpack.c.bf16 %v485_v60, %v453_v59  ;;  %v11083_v59 = vld [vmem:[%s12136_s11 + $0x15c0] ss:$16 sps:$4 sm:$0xff]  }
 0x31a   : > { %7094 = vmatprep.mubr.bf16.mxu0 %v518_v0  ;;  %7782 = vmatprep.mubr.bf16.mxu1 %v518_v0  ;;  %v456_v0 = vld [vmem:[%s12128_s16 + $0xa8] sm:$0xff] }
 0x31b   : > { %v11086_v60 = vld [vmem:[%s12136_s11 + $0x15c8] ss:$16 sps:$4 sm:$0xff]  }
 0x31c   : > { %7065 = vmatpush1.bf16.msra.mxu0 %v10909_v1  ;;  %7753 = vmatpush1.bf16.msra.mxu1 %v10912_v2  ;;  %v488_v1 = vld [vmem:[%s12128_s16 + $0x1a8] sm:$0xff]  ;;  %v10999_v2 = vld [vmem:[%s12136_s11 + $0x1400] ss:$16 sps:$4 sm:$0xff]  }
 0x31d   : > { %7066 = vmatprep.subr.bf16.mxu0 %v10917_v3  ;;  %7754 = vmatprep.subr.bf16.mxu1 %v10920_v4  ;;  %v11002_v3 = vld [vmem:[%s12136_s11 + $0x1408] ss:$16 sps:$4 sm:$0xff]   ;;  %v11007_v4 = vld [vmem:[%s12136_s11 + $0x1424] ss:$16 sps:$4 sm:$0xff]  }
 0x320   : > { %7067 = vmatpush1.bf16.msra.mxu0 %v10915_v5  ;;  %7755 = vmatpush1.bf16.msra.mxu1 %v10918_v6  ;;  %v11010_v5 = vld [vmem:[%s12136_s11 + $0x142c] ss:$16 sps:$4 sm:$0xff]   ;;  %v520_v6 = vpack.c.bf16 %v488_v1, %v456_v0  ;;  %v11092_v0 = vld [vmem:[%s12136_s11 + $0x15e8] ss:$16 sps:$4 sm:$0xff]   ;;  %v455_v1 = vld [vmem:[%s12128_s16 + $0xa0] sm:$0xff] }
 0x321   : > { %7068 = vmatprep.subr.bf16.mxu0 %v10923_v7  ;;  %7756 = vmatprep.subr.bf16.mxu1 %v10926_v8  ;;  %v11005_v7 = vld [vmem:[%s12136_s11 + $0x1420] ss:$16 sps:$4 sm:$0xff]   ;;  %v11008_v8 = vld [vmem:[%s12136_s11 + $0x1428] ss:$16 sps:$4 sm:$0xff]  }
 0x324   : > { %7069 = vmatpush1.bf16.msra.mxu0 %v10921_v9  ;;  %7757 = vmatpush1.bf16.msra.mxu1 %v10924_v10  ;;  %v11013_v9 = vld [vmem:[%s12136_s11 + $0x1444] ss:$16 sps:$4 sm:$0xff]   ;;  %v11016_v10 = vld [vmem:[%s12136_s11 + $0x144c] ss:$16 sps:$4 sm:$0xff]  }
 0x325   : > { %7070 = vmatprep.subr.bf16.mxu0 %v10929_v11  ;;  %7758 = vmatprep.subr.bf16.mxu1 %v10932_v12  ;;  %v11011_v11 = vld [vmem:[%s12136_s11 + $0x1440] ss:$16 sps:$4 sm:$0xff]   ;;  %v11014_v12 = vld [vmem:[%s12136_s11 + $0x1448] ss:$16 sps:$4 sm:$0xff]  }
 0x328   : > { %7071 = vmatpush1.bf16.msra.mxu0 %v10927_v13  ;;  %7759 = vmatpush1.bf16.msra.mxu1 %v10930_v14  ;;  %v11019_v13 = vld [vmem:[%s12136_s11 + $0x1464] ss:$16 sps:$4 sm:$0xff]   ;;  %v11022_v14 = vld [vmem:[%s12136_s11 + $0x146c] ss:$16 sps:$4 sm:$0xff]  }
 0x329   : > { %7072 = vmatprep.subr.bf16.mxu0 %v10935_v15  ;;  %7760 = vmatprep.subr.bf16.mxu1 %v10938_v16  ;;  %v11017_v15 = vld [vmem:[%s12136_s11 + $0x1460] ss:$16 sps:$4 sm:$0xff]   ;;  %v11020_v16 = vld [vmem:[%s12136_s11 + $0x1468] ss:$16 sps:$4 sm:$0xff]  }
 0x32c   : > { %7073 = vmatpush1.bf16.msra.mxu0 %v10933_v17  ;;  %7761 = vmatpush1.bf16.msra.mxu1 %v10936_v18  ;;  %v11025_v17 = vld [vmem:[%s12136_s11 + $0x1484] ss:$16 sps:$4 sm:$0xff]   ;;  %v11028_v18 = vld [vmem:[%s12136_s11 + $0x148c] ss:$16 sps:$4 sm:$0xff]  }
 0x32d   : > { %7074 = vmatprep.subr.bf16.mxu0 %v10941_v19  ;;  %7762 = vmatprep.subr.bf16.mxu1 %v10944_v20  ;;  %v11023_v19 = vld [vmem:[%s12136_s11 + $0x1480] ss:$16 sps:$4 sm:$0xff]   ;;  %v11026_v20 = vld [vmem:[%s12136_s11 + $0x1488] ss:$16 sps:$4 sm:$0xff]  }
 0x330   : > { %7075 = vmatpush1.bf16.msra.mxu0 %v10939_v21  ;;  %7763 = vmatpush1.bf16.msra.mxu1 %v10942_v22  ;;  %v11031_v21 = vld [vmem:[%s12136_s11 + $0x14a4] ss:$16 sps:$4 sm:$0xff]   ;;  %v11034_v22 = vld [vmem:[%s12136_s11 + $0x14ac] ss:$16 sps:$4 sm:$0xff]  }
 0x331   : > { %7076 = vmatprep.subr.bf16.mxu0 %v10947_v23  ;;  %7764 = vmatprep.subr.bf16.mxu1 %v10950_v24  ;;  %v11029_v23 = vld [vmem:[%s12136_s11 + $0x14a0] ss:$16 sps:$4 sm:$0xff]   ;;  %v11032_v24 = vld [vmem:[%s12136_s11 + $0x14a8] ss:$16 sps:$4 sm:$0xff]  }
 0x334   : > { %7077 = vmatpush1.bf16.msra.mxu0 %v10945_v25  ;;  %7765 = vmatpush1.bf16.msra.mxu1 %v10948_v26  ;;  %v11037_v25 = vld [vmem:[%s12136_s11 + $0x14c4] ss:$16 sps:$4 sm:$0xff]   ;;  %v11040_v26 = vld [vmem:[%s12136_s11 + $0x14cc] ss:$16 sps:$4 sm:$0xff]  }
 0x335   : > { %7078 = vmatprep.subr.bf16.mxu0 %v10953_v27  ;;  %7766 = vmatprep.subr.bf16.mxu1 %v10956_v28  ;;  %v11035_v27 = vld [vmem:[%s12136_s11 + $0x14c0] ss:$16 sps:$4 sm:$0xff]   ;;  %v11038_v28 = vld [vmem:[%s12136_s11 + $0x14c8] ss:$16 sps:$4 sm:$0xff]  }
 0x338   : > { %7079 = vmatpush1.bf16.msra.mxu0 %v10951_v29  ;;  %7767 = vmatpush1.bf16.msra.mxu1 %v10954_v30  ;;  %v11043_v29 = vld [vmem:[%s12136_s11 + $0x14e4] ss:$16 sps:$4 sm:$0xff]   ;;  %v11046_v30 = vld [vmem:[%s12136_s11 + $0x14ec] ss:$16 sps:$4 sm:$0xff]  }
 0x339   : > { %7080 = vmatprep.subr.bf16.mxu0 %v10959_v31  ;;  %7768 = vmatprep.subr.bf16.mxu1 %v10962_v32  ;;  %v11041_v31 = vld [vmem:[%s12136_s11 + $0x14e0] ss:$16 sps:$4 sm:$0xff]   ;;  %v11044_v32 = vld [vmem:[%s12136_s11 + $0x14e8] ss:$16 sps:$4 sm:$0xff]  }
 0x33c   : > { %7081 = vmatpush1.bf16.msra.mxu0 %v10957_v33  ;;  %7769 = vmatpush1.bf16.msra.mxu1 %v10960_v34  ;;  %v11049_v33 = vld [vmem:[%s12136_s11 + $0x1504] ss:$16 sps:$4 sm:$0xff]   ;;  %v11052_v34 = vld [vmem:[%s12136_s11 + $0x150c] ss:$16 sps:$4 sm:$0xff]  }
 0x33d   : > { %7082 = vmatprep.subr.bf16.mxu0 %v10965_v35  ;;  %7770 = vmatprep.subr.bf16.mxu1 %v10968_v36  ;;  %v11047_v35 = vld [vmem:[%s12136_s11 + $0x1500] ss:$16 sps:$4 sm:$0xff]   ;;  %v11050_v36 = vld [vmem:[%s12136_s11 + $0x1508] ss:$16 sps:$4 sm:$0xff]  }
 0x340   : > { %7083 = vmatpush1.bf16.msra.mxu0 %v10963_v37  ;;  %7771 = vmatpush1.bf16.msra.mxu1 %v10966_v38  ;;  %v11055_v37 = vld [vmem:[%s12136_s11 + $0x1524] ss:$16 sps:$4 sm:$0xff]   ;;  %v11058_v38 = vld [vmem:[%s12136_s11 + $0x152c] ss:$16 sps:$4 sm:$0xff]  }
 0x341   : > { %7084 = vmatprep.subr.bf16.mxu0 %v10971_v39  ;;  %7772 = vmatprep.subr.bf16.mxu1 %v10974_v40  ;;  %v11053_v39 = vld [vmem:[%s12136_s11 + $0x1520] ss:$16 sps:$4 sm:$0xff]   ;;  %v11056_v40 = vld [vmem:[%s12136_s11 + $0x1528] ss:$16 sps:$4 sm:$0xff]  }
 0x344   : > { %7085 = vmatpush1.bf16.msra.mxu0 %v10969_v41  ;;  %7773 = vmatpush1.bf16.msra.mxu1 %v10972_v42  ;;  %v11061_v41 = vld [vmem:[%s12136_s11 + $0x1544] ss:$16 sps:$4 sm:$0xff]   ;;  %v11064_v42 = vld [vmem:[%s12136_s11 + $0x154c] ss:$16 sps:$4 sm:$0xff]  }
 0x345   : > { %7086 = vmatprep.subr.bf16.mxu0 %v10977_v43  ;;  %7774 = vmatprep.subr.bf16.mxu1 %v10980_v44  ;;  %v11059_v43 = vld [vmem:[%s12136_s11 + $0x1540] ss:$16 sps:$4 sm:$0xff]   ;;  %v11062_v44 = vld [vmem:[%s12136_s11 + $0x1548] ss:$16 sps:$4 sm:$0xff]  }
 0x348   : > { %7087 = vmatpush1.bf16.msra.mxu0 %v10975_v45  ;;  %7775 = vmatpush1.bf16.msra.mxu1 %v10978_v46  ;;  %v11067_v45 = vld [vmem:[%s12136_s11 + $0x1564] ss:$16 sps:$4 sm:$0xff]   ;;  %v11070_v46 = vld [vmem:[%s12136_s11 + $0x156c] ss:$16 sps:$4 sm:$0xff]  }
 0x349   : > { %7088 = vmatprep.subr.bf16.mxu0 %v10983_v47  ;;  %7776 = vmatprep.subr.bf16.mxu1 %v10986_v48  ;;  %v11065_v47 = vld [vmem:[%s12136_s11 + $0x1560] ss:$16 sps:$4 sm:$0xff]   ;;  %v11068_v48 = vld [vmem:[%s12136_s11 + $0x1568] ss:$16 sps:$4 sm:$0xff]  }
 0x34c   : > { %7089 = vmatpush1.bf16.msra.mxu0 %v10981_v49  ;;  %7777 = vmatpush1.bf16.msra.mxu1 %v10984_v50  ;;  %v11073_v49 = vld [vmem:[%s12136_s11 + $0x1584] ss:$16 sps:$4 sm:$0xff]   ;;  %v11076_v50 = vld [vmem:[%s12136_s11 + $0x158c] ss:$16 sps:$4 sm:$0xff]  }
 0x34d   : > { %7090 = vmatprep.subr.bf16.mxu0 %v10989_v51  ;;  %7778 = vmatprep.subr.bf16.mxu1 %v10992_v52  ;;  %v11071_v51 = vld [vmem:[%s12136_s11 + $0x1580] ss:$16 sps:$4 sm:$0xff]   ;;  %v11074_v52 = vld [vmem:[%s12136_s11 + $0x1588] ss:$16 sps:$4 sm:$0xff]  }
 0x350   : > { %7091 = vmatpush1.bf16.msra.mxu0 %v10987_v53  ;;  %7779 = vmatpush1.bf16.msra.mxu1 %v10990_v54  ;;  %v11079_v53 = vld [vmem:[%s12136_s11 + $0x15a4] ss:$16 sps:$4 sm:$0xff]   ;;  %v11082_v54 = vld [vmem:[%s12136_s11 + $0x15ac] ss:$16 sps:$4 sm:$0xff]  }
 0x351   : > { %7092 = vmatprep.subr.bf16.mxu0 %v10995_v55  ;;  %7780 = vmatprep.subr.bf16.mxu1 %v10998_v56  ;;  %v11077_v55 = vld [vmem:[%s12136_s11 + $0x15a0] ss:$16 sps:$4 sm:$0xff]   ;;  %v11080_v56 = vld [vmem:[%s12136_s11 + $0x15a8] ss:$16 sps:$4 sm:$0xff]  }
 0x354   : > { %7093 = vmatpush1.bf16.msra.mxu0 %v10993_v57  ;;  %7781 = vmatpush1.bf16.msra.mxu1 %v10996_v58  ;;  %v11085_v57 = vld [vmem:[%s12136_s11 + $0x15c4] ss:$16 sps:$4 sm:$0xff]   ;;  %v11088_v58 = vld [vmem:[%s12136_s11 + $0x15cc] ss:$16 sps:$4 sm:$0xff]  }
 0x355   : > { %7105 = vmatprep.subr.bf16.mxu0 %v11001_v61  ;;  %7793 = vmatprep.subr.bf16.mxu1 %v11004_v62  ;;  %v11091_v61 = vld [vmem:[%s12136_s11 + $0x15e4] ss:$16 sps:$4 sm:$0xff]   ;;  %v11094_v62 = vld [vmem:[%s12136_s11 + $0x15ec] ss:$16 sps:$4 sm:$0xff]  }
 0x357   : > { %7095 = vmatmul.mubr.bf16.vlgmr.msra.gmra.mrb[0].mxu0 %v517_v63  ;;  %7783 = vmatmul.mubr.bf16.vlgmr.msra.gmra.mrb[0].mxu1 %v517_v63  ;;  %v11089_v63 = vld [vmem:[%s12136_s11 + $0x15e0] ss:$16 sps:$4 sm:$0xff]  }
 0x358   : > { %7106 = vmatpush1.bf16.msra.mxu0 %v10999_v2  ;;  %7794 = vmatpush1.bf16.msra.mxu1 %v11002_v3  ;;  %v487_v2 = vld [vmem:[%s12128_s16 + $0x1a0] sm:$0xff] }
 0x359   : > { %7107 = vmatprep.subr.bf16.mxu0 %v11007_v4  ;;  %7795 = vmatprep.subr.bf16.mxu1 %v11010_v5  ;;  %v11097_v3 = vld [vmem:[%s12136_s11 + $0x1604] ss:$16 sps:$4 sm:$0xff]   ;;  %v11100_v4 = vld [vmem:[%s12136_s11 + $0x160c] ss:$16 sps:$4 sm:$0xff]   ;;  %v519_v5 = vpack.c.bf16 %v487_v2, %v455_v1  ;;  %v11179_v1 = vld [vmem:[%s12136_s11 + $0x17c0] ss:$16 sps:$4 sm:$0xff]  }
 0x35a   : > { %7137 = vmatprep.mubr.bf16.mxu0 %v520_v6  ;;  %7825 = vmatprep.mubr.bf16.mxu1 %v520_v6  ;;  %v458_v6 = vld [vmem:[%s12128_s16 + $0xb8] sm:$0xff] }
 0x35b   : > { %v11182_v2 = vld [vmem:[%s12136_s11 + $0x17c8] ss:$16 sps:$4 sm:$0xff]  }
 0x35c   : > { %7108 = vmatpush1.bf16.msra.mxu0 %v11005_v7  ;;  %7796 = vmatpush1.bf16.msra.mxu1 %v11008_v8  ;;  %v490_v7 = vld [vmem:[%s12128_s16 + $0x1b8] sm:$0xff]  ;;  %v11095_v8 = vld [vmem:[%s12136_s11 + $0x1600] ss:$16 sps:$4 sm:$0xff]  }
 0x35d   : > { %7109 = vmatprep.subr.bf16.mxu0 %v11013_v9  ;;  %7797 = vmatprep.subr.bf16.mxu1 %v11016_v10  ;;  %v11098_v9 = vld [vmem:[%s12136_s11 + $0x1608] ss:$16 sps:$4 sm:$0xff]   ;;  %v11103_v10 = vld [vmem:[%s12136_s11 + $0x1624] ss:$16 sps:$4 sm:$0xff]  }
 0x360   : > { %7110 = vmatpush1.bf16.msra.mxu0 %v11011_v11  ;;  %7798 = vmatpush1.bf16.msra.mxu1 %v11014_v12  ;;  %v11106_v11 = vld [vmem:[%s12136_s11 + $0x162c] ss:$16 sps:$4 sm:$0xff]   ;;  %v522_v12 = vpack.c.bf16 %v490_v7, %v458_v6  ;;  %v11188_v6 = vld [vmem:[%s12136_s11 + $0x17e8] ss:$16 sps:$4 sm:$0xff]   ;;  %v457_v7 = vld [vmem:[%s12128_s16 + $0xb0] sm:$0xff] }
 0x361   : > { %7111 = vmatprep.subr.bf16.mxu0 %v11019_v13  ;;  %7799 = vmatprep.subr.bf16.mxu1 %v11022_v14  ;;  %v11101_v13 = vld [vmem:[%s12136_s11 + $0x1620] ss:$16 sps:$4 sm:$0xff]   ;;  %v11104_v14 = vld [vmem:[%s12136_s11 + $0x1628] ss:$16 sps:$4 sm:$0xff]  }
 0x364   : > { %7112 = vmatpush1.bf16.msra.mxu0 %v11017_v15  ;;  %7800 = vmatpush1.bf16.msra.mxu1 %v11020_v16  ;;  %v11109_v15 = vld [vmem:[%s12136_s11 + $0x1644] ss:$16 sps:$4 sm:$0xff]   ;;  %v11112_v16 = vld [vmem:[%s12136_s11 + $0x164c] ss:$16 sps:$4 sm:$0xff]  }
 0x365   : > { %7113 = vmatprep.subr.bf16.mxu0 %v11025_v17  ;;  %7801 = vmatprep.subr.bf16.mxu1 %v11028_v18  ;;  %v11107_v17 = vld [vmem:[%s12136_s11 + $0x1640] ss:$16 sps:$4 sm:$0xff]   ;;  %v11110_v18 = vld [vmem:[%s12136_s11 + $0x1648] ss:$16 sps:$4 sm:$0xff]  }
 0x368   : > { %7114 = vmatpush1.bf16.msra.mxu0 %v11023_v19  ;;  %7802 = vmatpush1.bf16.msra.mxu1 %v11026_v20  ;;  %v11115_v19 = vld [vmem:[%s12136_s11 + $0x1664] ss:$16 sps:$4 sm:$0xff]   ;;  %v11118_v20 = vld [vmem:[%s12136_s11 + $0x166c] ss:$16 sps:$4 sm:$0xff]  }
 0x369   : > { %7115 = vmatprep.subr.bf16.mxu0 %v11031_v21  ;;  %7803 = vmatprep.subr.bf16.mxu1 %v11034_v22  ;;  %v11113_v21 = vld [vmem:[%s12136_s11 + $0x1660] ss:$16 sps:$4 sm:$0xff]   ;;  %v11116_v22 = vld [vmem:[%s12136_s11 + $0x1668] ss:$16 sps:$4 sm:$0xff]  }
 0x36c   : > { %7116 = vmatpush1.bf16.msra.mxu0 %v11029_v23  ;;  %7804 = vmatpush1.bf16.msra.mxu1 %v11032_v24  ;;  %v11121_v23 = vld [vmem:[%s12136_s11 + $0x1684] ss:$16 sps:$4 sm:$0xff]   ;;  %v11124_v24 = vld [vmem:[%s12136_s11 + $0x168c] ss:$16 sps:$4 sm:$0xff]  }
 0x36d   : > { %7117 = vmatprep.subr.bf16.mxu0 %v11037_v25  ;;  %7805 = vmatprep.subr.bf16.mxu1 %v11040_v26  ;;  %v11119_v25 = vld [vmem:[%s12136_s11 + $0x1680] ss:$16 sps:$4 sm:$0xff]   ;;  %v11122_v26 = vld [vmem:[%s12136_s11 + $0x1688] ss:$16 sps:$4 sm:$0xff]  }
 0x370   : > { %7118 = vmatpush1.bf16.msra.mxu0 %v11035_v27  ;;  %7806 = vmatpush1.bf16.msra.mxu1 %v11038_v28  ;;  %v11127_v27 = vld [vmem:[%s12136_s11 + $0x16a4] ss:$16 sps:$4 sm:$0xff]   ;;  %v11130_v28 = vld [vmem:[%s12136_s11 + $0x16ac] ss:$16 sps:$4 sm:$0xff]  }
 0x371   : > { %7119 = vmatprep.subr.bf16.mxu0 %v11043_v29  ;;  %7807 = vmatprep.subr.bf16.mxu1 %v11046_v30  ;;  %v11125_v29 = vld [vmem:[%s12136_s11 + $0x16a0] ss:$16 sps:$4 sm:$0xff]   ;;  %v11128_v30 = vld [vmem:[%s12136_s11 + $0x16a8] ss:$16 sps:$4 sm:$0xff]  }
 0x374   : > { %7120 = vmatpush1.bf16.msra.mxu0 %v11041_v31  ;;  %7808 = vmatpush1.bf16.msra.mxu1 %v11044_v32  ;;  %v11133_v31 = vld [vmem:[%s12136_s11 + $0x16c4] ss:$16 sps:$4 sm:$0xff]   ;;  %v11136_v32 = vld [vmem:[%s12136_s11 + $0x16cc] ss:$16 sps:$4 sm:$0xff]  }
 0x375   : > { %7121 = vmatprep.subr.bf16.mxu0 %v11049_v33  ;;  %7809 = vmatprep.subr.bf16.mxu1 %v11052_v34  ;;  %v11131_v33 = vld [vmem:[%s12136_s11 + $0x16c0] ss:$16 sps:$4 sm:$0xff]   ;;  %v11134_v34 = vld [vmem:[%s12136_s11 + $0x16c8] ss:$16 sps:$4 sm:$0xff]  }
 0x378   : > { %7122 = vmatpush1.bf16.msra.mxu0 %v11047_v35  ;;  %7810 = vmatpush1.bf16.msra.mxu1 %v11050_v36  ;;  %v11139_v35 = vld [vmem:[%s12136_s11 + $0x16e4] ss:$16 sps:$4 sm:$0xff]   ;;  %v11142_v36 = vld [vmem:[%s12136_s11 + $0x16ec] ss:$16 sps:$4 sm:$0xff]  }
 0x379   : > { %7123 = vmatprep.subr.bf16.mxu0 %v11055_v37  ;;  %7811 = vmatprep.subr.bf16.mxu1 %v11058_v38  ;;  %v11137_v37 = vld [vmem:[%s12136_s11 + $0x16e0] ss:$16 sps:$4 sm:$0xff]   ;;  %v11140_v38 = vld [vmem:[%s12136_s11 + $0x16e8] ss:$16 sps:$4 sm:$0xff]  }
 0x37c   : > { %7124 = vmatpush1.bf16.msra.mxu0 %v11053_v39  ;;  %7812 = vmatpush1.bf16.msra.mxu1 %v11056_v40  ;;  %v11145_v39 = vld [vmem:[%s12136_s11 + $0x1704] ss:$16 sps:$4 sm:$0xff]   ;;  %v11148_v40 = vld [vmem:[%s12136_s11 + $0x170c] ss:$16 sps:$4 sm:$0xff]  }
 0x37d   : > { %7125 = vmatprep.subr.bf16.mxu0 %v11061_v41  ;;  %7813 = vmatprep.subr.bf16.mxu1 %v11064_v42  ;;  %v11143_v41 = vld [vmem:[%s12136_s11 + $0x1700] ss:$16 sps:$4 sm:$0xff]   ;;  %v11146_v42 = vld [vmem:[%s12136_s11 + $0x1708] ss:$16 sps:$4 sm:$0xff]  }
 0x380   : > { %7126 = vmatpush1.bf16.msra.mxu0 %v11059_v43  ;;  %7814 = vmatpush1.bf16.msra.mxu1 %v11062_v44  ;;  %v11151_v43 = vld [vmem:[%s12136_s11 + $0x1724] ss:$16 sps:$4 sm:$0xff]   ;;  %v11154_v44 = vld [vmem:[%s12136_s11 + $0x172c] ss:$16 sps:$4 sm:$0xff]  }
 0x381   : > { %7127 = vmatprep.subr.bf16.mxu0 %v11067_v45  ;;  %7815 = vmatprep.subr.bf16.mxu1 %v11070_v46  ;;  %v11149_v45 = vld [vmem:[%s12136_s11 + $0x1720] ss:$16 sps:$4 sm:$0xff]   ;;  %v11152_v46 = vld [vmem:[%s12136_s11 + $0x1728] ss:$16 sps:$4 sm:$0xff]  }
 0x384   : > { %7128 = vmatpush1.bf16.msra.mxu0 %v11065_v47  ;;  %7816 = vmatpush1.bf16.msra.mxu1 %v11068_v48  ;;  %v11157_v47 = vld [vmem:[%s12136_s11 + $0x1744] ss:$16 sps:$4 sm:$0xff]   ;;  %v11160_v48 = vld [vmem:[%s12136_s11 + $0x174c] ss:$16 sps:$4 sm:$0xff]  }
 0x385   : > { %7129 = vmatprep.subr.bf16.mxu0 %v11073_v49  ;;  %7817 = vmatprep.subr.bf16.mxu1 %v11076_v50  ;;  %v11155_v49 = vld [vmem:[%s12136_s11 + $0x1740] ss:$16 sps:$4 sm:$0xff]   ;;  %v11158_v50 = vld [vmem:[%s12136_s11 + $0x1748] ss:$16 sps:$4 sm:$0xff]  }
 0x388   : > { %7130 = vmatpush1.bf16.msra.mxu0 %v11071_v51  ;;  %7818 = vmatpush1.bf16.msra.mxu1 %v11074_v52  ;;  %v11163_v51 = vld [vmem:[%s12136_s11 + $0x1764] ss:$16 sps:$4 sm:$0xff]   ;;  %v11166_v52 = vld [vmem:[%s12136_s11 + $0x176c] ss:$16 sps:$4 sm:$0xff]  }
 0x389   : > { %7131 = vmatprep.subr.bf16.mxu0 %v11079_v53  ;;  %7819 = vmatprep.subr.bf16.mxu1 %v11082_v54  ;;  %v11161_v53 = vld [vmem:[%s12136_s11 + $0x1760] ss:$16 sps:$4 sm:$0xff]   ;;  %v11164_v54 = vld [vmem:[%s12136_s11 + $0x1768] ss:$16 sps:$4 sm:$0xff]  }
 0x38c   : > { %7132 = vmatpush1.bf16.msra.mxu0 %v11077_v55  ;;  %7820 = vmatpush1.bf16.msra.mxu1 %v11080_v56  ;;  %v11169_v55 = vld [vmem:[%s12136_s11 + $0x1784] ss:$16 sps:$4 sm:$0xff]   ;;  %v11172_v56 = vld [vmem:[%s12136_s11 + $0x178c] ss:$16 sps:$4 sm:$0xff]  }
 0x38d   : > { %7133 = vmatprep.subr.bf16.mxu0 %v11085_v57  ;;  %7821 = vmatprep.subr.bf16.mxu1 %v11088_v58  ;;  %v11167_v57 = vld [vmem:[%s12136_s11 + $0x1780] ss:$16 sps:$4 sm:$0xff]   ;;  %v11170_v58 = vld [vmem:[%s12136_s11 + $0x1788] ss:$16 sps:$4 sm:$0xff]  }
 0x390   : > { %7134 = vmatpush1.bf16.msra.mxu0 %v11083_v59  ;;  %7822 = vmatpush1.bf16.msra.mxu1 %v11086_v60  ;;  %v11175_v59 = vld [vmem:[%s12136_s11 + $0x17a4] ss:$16 sps:$4 sm:$0xff]   ;;  %v11178_v60 = vld [vmem:[%s12136_s11 + $0x17ac] ss:$16 sps:$4 sm:$0xff]  }
 0x391   : > { %7135 = vmatprep.subr.bf16.mxu0 %v11091_v61  ;;  %7823 = vmatprep.subr.bf16.mxu1 %v11094_v62  ;;  %v11173_v61 = vld [vmem:[%s12136_s11 + $0x17a0] ss:$16 sps:$4 sm:$0xff]   ;;  %v11176_v62 = vld [vmem:[%s12136_s11 + $0x17a8] ss:$16 sps:$4 sm:$0xff]  }
 0x394   : > { %7136 = vmatpush1.bf16.msra.mxu0 %v11089_v63  ;;  %7824 = vmatpush1.bf16.msra.mxu1 %v11092_v0  ;;  %v11181_v63 = vld [vmem:[%s12136_s11 + $0x17c4] ss:$16 sps:$4 sm:$0xff]   ;;  %v11184_v0 = vld [vmem:[%s12136_s11 + $0x17cc] ss:$16 sps:$4 sm:$0xff]  }
 0x395   : > { %7148 = vmatprep.subr.bf16.mxu0 %v11097_v3  ;;  %7836 = vmatprep.subr.bf16.mxu1 %v11100_v4  ;;  %v11187_v3 = vld [vmem:[%s12136_s11 + $0x17e4] ss:$16 sps:$4 sm:$0xff]   ;;  %v11190_v4 = vld [vmem:[%s12136_s11 + $0x17ec] ss:$16 sps:$4 sm:$0xff]  }
 0x397   : > { %7138 = vmatmul.mubr.bf16.vlgmr.msra.gmra.mrb[0].mxu0 %v519_v5  ;;  %7826 = vmatmul.mubr.bf16.vlgmr.msra.gmra.mrb[0].mxu1 %v519_v5  ;;  %v11185_v5 = vld [vmem:[%s12136_s11 + $0x17e0] ss:$16 sps:$4 sm:$0xff]  }
 0x398   : > { %7149 = vmatpush1.bf16.msra.mxu0 %v11095_v8  ;;  %7837 = vmatpush1.bf16.msra.mxu1 %v11098_v9  ;;  %v489_v8 = vld [vmem:[%s12128_s16 + $0x1b0] sm:$0xff] }
 0x399   : > { %7150 = vmatprep.subr.bf16.mxu0 %v11103_v10  ;;  %7838 = vmatprep.subr.bf16.mxu1 %v11106_v11  ;;  %v11193_v9 = vld [vmem:[%s12136_s11 + $0x1804] ss:$16 sps:$4 sm:$0xff]   ;;  %v11196_v10 = vld [vmem:[%s12136_s11 + $0x180c] ss:$16 sps:$4 sm:$0xff]   ;;  %v521_v11 = vpack.c.bf16 %v489_v8, %v457_v7  ;;  %v11275_v7 = vld [vmem:[%s12136_s11 + $0x19c0] ss:$16 sps:$4 sm:$0xff]  }
 0x39a   : > { %7180 = vmatprep.mubr.bf16.mxu0 %v522_v12  ;;  %7868 = vmatprep.mubr.bf16.mxu1 %v522_v12  ;;  %v460_v12 = vld [vmem:[%s12128_s16 + $0xc8] sm:$0xff] }
 0x39b   : > { %v11278_v8 = vld [vmem:[%s12136_s11 + $0x19c8] ss:$16 sps:$4 sm:$0xff]  }
 0x39c   : > { %7151 = vmatpush1.bf16.msra.mxu0 %v11101_v13  ;;  %7839 = vmatpush1.bf16.msra.mxu1 %v11104_v14  ;;  %v492_v13 = vld [vmem:[%s12128_s16 + $0x1c8] sm:$0xff]  ;;  %v11191_v14 = vld [vmem:[%s12136_s11 + $0x1800] ss:$16 sps:$4 sm:$0xff]  }
 0x39d   : > { %7152 = vmatprep.subr.bf16.mxu0 %v11109_v15  ;;  %7840 = vmatprep.subr.bf16.mxu1 %v11112_v16  ;;  %v11194_v15 = vld [vmem:[%s12136_s11 + $0x1808] ss:$16 sps:$4 sm:$0xff]   ;;  %v11199_v16 = vld [vmem:[%s12136_s11 + $0x1824] ss:$16 sps:$4 sm:$0xff]  }
 0x3a0   : > { %7153 = vmatpush1.bf16.msra.mxu0 %v11107_v17  ;;  %7841 = vmatpush1.bf16.msra.mxu1 %v11110_v18  ;;  %v11202_v17 = vld [vmem:[%s12136_s11 + $0x182c] ss:$16 sps:$4 sm:$0xff]   ;;  %v524_v18 = vpack.c.bf16 %v492_v13, %v460_v12  ;;  %v11284_v12 = vld [vmem:[%s12136_s11 + $0x19e8] ss:$16 sps:$4 sm:$0xff]   ;;  %v459_v13 = vld [vmem:[%s12128_s16 + $0xc0] sm:$0xff] }
 0x3a1   : > { %7154 = vmatprep.subr.bf16.mxu0 %v11115_v19  ;;  %7842 = vmatprep.subr.bf16.mxu1 %v11118_v20  ;;  %v11197_v19 = vld [vmem:[%s12136_s11 + $0x1820] ss:$16 sps:$4 sm:$0xff]   ;;  %v11200_v20 = vld [vmem:[%s12136_s11 + $0x1828] ss:$16 sps:$4 sm:$0xff]  }
 0x3a4   : > { %7155 = vmatpush1.bf16.msra.mxu0 %v11113_v21  ;;  %7843 = vmatpush1.bf16.msra.mxu1 %v11116_v22  ;;  %v11205_v21 = vld [vmem:[%s12136_s11 + $0x1844] ss:$16 sps:$4 sm:$0xff]   ;;  %v11208_v22 = vld [vmem:[%s12136_s11 + $0x184c] ss:$16 sps:$4 sm:$0xff]  }
 0x3a5   : > { %7156 = vmatprep.subr.bf16.mxu0 %v11121_v23  ;;  %7844 = vmatprep.subr.bf16.mxu1 %v11124_v24  ;;  %v11203_v23 = vld [vmem:[%s12136_s11 + $0x1840] ss:$16 sps:$4 sm:$0xff]   ;;  %v11206_v24 = vld [vmem:[%s12136_s11 + $0x1848] ss:$16 sps:$4 sm:$0xff]  }
 0x3a8   : > { %7157 = vmatpush1.bf16.msra.mxu0 %v11119_v25  ;;  %7845 = vmatpush1.bf16.msra.mxu1 %v11122_v26  ;;  %v11211_v25 = vld [vmem:[%s12136_s11 + $0x1864] ss:$16 sps:$4 sm:$0xff]   ;;  %v11214_v26 = vld [vmem:[%s12136_s11 + $0x186c] ss:$16 sps:$4 sm:$0xff]  }
 0x3a9   : > { %7158 = vmatprep.subr.bf16.mxu0 %v11127_v27  ;;  %7846 = vmatprep.subr.bf16.mxu1 %v11130_v28  ;;  %v11209_v27 = vld [vmem:[%s12136_s11 + $0x1860] ss:$16 sps:$4 sm:$0xff]   ;;  %v11212_v28 = vld [vmem:[%s12136_s11 + $0x1868] ss:$16 sps:$4 sm:$0xff]  }
 0x3ac   : > { %7159 = vmatpush1.bf16.msra.mxu0 %v11125_v29  ;;  %7847 = vmatpush1.bf16.msra.mxu1 %v11128_v30  ;;  %v11217_v29 = vld [vmem:[%s12136_s11 + $0x1884] ss:$16 sps:$4 sm:$0xff]   ;;  %v11220_v30 = vld [vmem:[%s12136_s11 + $0x188c] ss:$16 sps:$4 sm:$0xff]  }
 0x3ad   : > { %7160 = vmatprep.subr.bf16.mxu0 %v11133_v31  ;;  %7848 = vmatprep.subr.bf16.mxu1 %v11136_v32  ;;  %v11215_v31 = vld [vmem:[%s12136_s11 + $0x1880] ss:$16 sps:$4 sm:$0xff]   ;;  %v11218_v32 = vld [vmem:[%s12136_s11 + $0x1888] ss:$16 sps:$4 sm:$0xff]  }
 0x3b0   : > { %7161 = vmatpush1.bf16.msra.mxu0 %v11131_v33  ;;  %7849 = vmatpush1.bf16.msra.mxu1 %v11134_v34  ;;  %v11223_v33 = vld [vmem:[%s12136_s11 + $0x18a4] ss:$16 sps:$4 sm:$0xff]   ;;  %v11226_v34 = vld [vmem:[%s12136_s11 + $0x18ac] ss:$16 sps:$4 sm:$0xff]  }
 0x3b1   : > { %7162 = vmatprep.subr.bf16.mxu0 %v11139_v35  ;;  %7850 = vmatprep.subr.bf16.mxu1 %v11142_v36  ;;  %v11221_v35 = vld [vmem:[%s12136_s11 + $0x18a0] ss:$16 sps:$4 sm:$0xff]   ;;  %v11224_v36 = vld [vmem:[%s12136_s11 + $0x18a8] ss:$16 sps:$4 sm:$0xff]  }
 0x3b4   : > { %7163 = vmatpush1.bf16.msra.mxu0 %v11137_v37  ;;  %7851 = vmatpush1.bf16.msra.mxu1 %v11140_v38  ;;  %v11229_v37 = vld [vmem:[%s12136_s11 + $0x18c4] ss:$16 sps:$4 sm:$0xff]   ;;  %v11232_v38 = vld [vmem:[%s12136_s11 + $0x18cc] ss:$16 sps:$4 sm:$0xff]  }
 0x3b5   : > { %7164 = vmatprep.subr.bf16.mxu0 %v11145_v39  ;;  %7852 = vmatprep.subr.bf16.mxu1 %v11148_v40  ;;  %v11227_v39 = vld [vmem:[%s12136_s11 + $0x18c0] ss:$16 sps:$4 sm:$0xff]   ;;  %v11230_v40 = vld [vmem:[%s12136_s11 + $0x18c8] ss:$16 sps:$4 sm:$0xff]  }
 0x3b8   : > { %7165 = vmatpush1.bf16.msra.mxu0 %v11143_v41  ;;  %7853 = vmatpush1.bf16.msra.mxu1 %v11146_v42  ;;  %v11235_v41 = vld [vmem:[%s12136_s11 + $0x18e4] ss:$16 sps:$4 sm:$0xff]   ;;  %v11238_v42 = vld [vmem:[%s12136_s11 + $0x18ec] ss:$16 sps:$4 sm:$0xff]  }
 0x3b9   : > { %7166 = vmatprep.subr.bf16.mxu0 %v11151_v43  ;;  %7854 = vmatprep.subr.bf16.mxu1 %v11154_v44  ;;  %v11233_v43 = vld [vmem:[%s12136_s11 + $0x18e0] ss:$16 sps:$4 sm:$0xff]   ;;  %v11236_v44 = vld [vmem:[%s12136_s11 + $0x18e8] ss:$16 sps:$4 sm:$0xff]  }
 0x3bc   : > { %7167 = vmatpush1.bf16.msra.mxu0 %v11149_v45  ;;  %7855 = vmatpush1.bf16.msra.mxu1 %v11152_v46  ;;  %v11241_v45 = vld [vmem:[%s12136_s11 + $0x1904] ss:$16 sps:$4 sm:$0xff]   ;;  %v11244_v46 = vld [vmem:[%s12136_s11 + $0x190c] ss:$16 sps:$4 sm:$0xff]  }
 0x3bd   : > { %7168 = vmatprep.subr.bf16.mxu0 %v11157_v47  ;;  %7856 = vmatprep.subr.bf16.mxu1 %v11160_v48  ;;  %v11239_v47 = vld [vmem:[%s12136_s11 + $0x1900] ss:$16 sps:$4 sm:$0xff]   ;;  %v11242_v48 = vld [vmem:[%s12136_s11 + $0x1908] ss:$16 sps:$4 sm:$0xff]  }
 0x3c0   : > { %7169 = vmatpush1.bf16.msra.mxu0 %v11155_v49  ;;  %7857 = vmatpush1.bf16.msra.mxu1 %v11158_v50  ;;  %v11247_v49 = vld [vmem:[%s12136_s11 + $0x1924] ss:$16 sps:$4 sm:$0xff]   ;;  %v11250_v50 = vld [vmem:[%s12136_s11 + $0x192c] ss:$16 sps:$4 sm:$0xff]  }
 0x3c1   : > { %7170 = vmatprep.subr.bf16.mxu0 %v11163_v51  ;;  %7858 = vmatprep.subr.bf16.mxu1 %v11166_v52  ;;  %v11245_v51 = vld [vmem:[%s12136_s11 + $0x1920] ss:$16 sps:$4 sm:$0xff]   ;;  %v11248_v52 = vld [vmem:[%s12136_s11 + $0x1928] ss:$16 sps:$4 sm:$0xff]  }
 0x3c4   : > { %7171 = vmatpush1.bf16.msra.mxu0 %v11161_v53  ;;  %7859 = vmatpush1.bf16.msra.mxu1 %v11164_v54  ;;  %v11253_v53 = vld [vmem:[%s12136_s11 + $0x1944] ss:$16 sps:$4 sm:$0xff]   ;;  %v11256_v54 = vld [vmem:[%s12136_s11 + $0x194c] ss:$16 sps:$4 sm:$0xff]  }
 0x3c5   : > { %7172 = vmatprep.subr.bf16.mxu0 %v11169_v55  ;;  %7860 = vmatprep.subr.bf16.mxu1 %v11172_v56  ;;  %v11251_v55 = vld [vmem:[%s12136_s11 + $0x1940] ss:$16 sps:$4 sm:$0xff]   ;;  %v11254_v56 = vld [vmem:[%s12136_s11 + $0x1948] ss:$16 sps:$4 sm:$0xff]  }
 0x3c8   : > { %7173 = vmatpush1.bf16.msra.mxu0 %v11167_v57  ;;  %7861 = vmatpush1.bf16.msra.mxu1 %v11170_v58  ;;  %v11259_v57 = vld [vmem:[%s12136_s11 + $0x1964] ss:$16 sps:$4 sm:$0xff]   ;;  %v11262_v58 = vld [vmem:[%s12136_s11 + $0x196c] ss:$16 sps:$4 sm:$0xff]  }
 0x3c9   : > { %7174 = vmatprep.subr.bf16.mxu0 %v11175_v59  ;;  %7862 = vmatprep.subr.bf16.mxu1 %v11178_v60  ;;  %v11257_v59 = vld [vmem:[%s12136_s11 + $0x1960] ss:$16 sps:$4 sm:$0xff]   ;;  %v11260_v60 = vld [vmem:[%s12136_s11 + $0x1968] ss:$16 sps:$4 sm:$0xff]  }
 0x3cc   : > { %7175 = vmatpush1.bf16.msra.mxu0 %v11173_v61  ;;  %7863 = vmatpush1.bf16.msra.mxu1 %v11176_v62  ;;  %v11265_v61 = vld [vmem:[%s12136_s11 + $0x1984] ss:$16 sps:$4 sm:$0xff]   ;;  %v11268_v62 = vld [vmem:[%s12136_s11 + $0x198c] ss:$16 sps:$4 sm:$0xff]  }
 0x3cd   : > { %7176 = vmatprep.subr.bf16.mxu0 %v11181_v63  ;;  %7864 = vmatprep.subr.bf16.mxu1 %v11184_v0  ;;  %v11263_v63 = vld [vmem:[%s12136_s11 + $0x1980] ss:$16 sps:$4 sm:$0xff]   ;;  %v11266_v0 = vld [vmem:[%s12136_s11 + $0x1988] ss:$16 sps:$4 sm:$0xff]  }
 0x3d0   : > { %7177 = vmatpush1.bf16.msra.mxu0 %v11179_v1  ;;  %7865 = vmatpush1.bf16.msra.mxu1 %v11182_v2  ;;  %v11271_v1 = vld [vmem:[%s12136_s11 + $0x19a4] ss:$16 sps:$4 sm:$0xff]   ;;  %v11274_v2 = vld [vmem:[%s12136_s11 + $0x19ac] ss:$16 sps:$4 sm:$0xff]  }
 0x3d1   : > { %7178 = vmatprep.subr.bf16.mxu0 %v11187_v3  ;;  %7866 = vmatprep.subr.bf16.mxu1 %v11190_v4  ;;  %v11269_v3 = vld [vmem:[%s12136_s11 + $0x19a0] ss:$16 sps:$4 sm:$0xff]   ;;  %v11272_v4 = vld [vmem:[%s12136_s11 + $0x19a8] ss:$16 sps:$4 sm:$0xff]  }
 0x3d4   : > { %7179 = vmatpush1.bf16.msra.mxu0 %v11185_v5  ;;  %7867 = vmatpush1.bf16.msra.mxu1 %v11188_v6  ;;  %v11277_v5 = vld [vmem:[%s12136_s11 + $0x19c4] ss:$16 sps:$4 sm:$0xff]   ;;  %v11280_v6 = vld [vmem:[%s12136_s11 + $0x19cc] ss:$16 sps:$4 sm:$0xff]  }
 0x3d5   : > { %7191 = vmatprep.subr.bf16.mxu0 %v11193_v9  ;;  %7879 = vmatprep.subr.bf16.mxu1 %v11196_v10  ;;  %v11283_v9 = vld [vmem:[%s12136_s11 + $0x19e4] ss:$16 sps:$4 sm:$0xff]   ;;  %v11286_v10 = vld [vmem:[%s12136_s11 + $0x19ec] ss:$16 sps:$4 sm:$0xff]  }
 0x3d7   : > { %7181 = vmatmul.mubr.bf16.vlgmr.msra.gmra.mrb[0].mxu0 %v521_v11  ;;  %7869 = vmatmul.mubr.bf16.vlgmr.msra.gmra.mrb[0].mxu1 %v521_v11  ;;  %v11281_v11 = vld [vmem:[%s12136_s11 + $0x19e0] ss:$16 sps:$4 sm:$0xff]  }
 0x3d8   : > { %7192 = vmatpush1.bf16.msra.mxu0 %v11191_v14  ;;  %7880 = vmatpush1.bf16.msra.mxu1 %v11194_v15  ;;  %v491_v14 = vld [vmem:[%s12128_s16 + $0x1c0] sm:$0xff] }
 0x3d9   : > { %7193 = vmatprep.subr.bf16.mxu0 %v11199_v16  ;;  %7881 = vmatprep.subr.bf16.mxu1 %v11202_v17  ;;  %v11289_v15 = vld [vmem:[%s12136_s11 + $0x1a04] ss:$16 sps:$4 sm:$0xff]   ;;  %v11292_v16 = vld [vmem:[%s12136_s11 + $0x1a0c] ss:$16 sps:$4 sm:$0xff]   ;;  %v523_v17 = vpack.c.bf16 %v491_v14, %v459_v13  ;;  %v11371_v13 = vld [vmem:[%s12136_s11 + $0x1bc0] ss:$16 sps:$4 sm:$0xff]  }
 0x3da   : > { %7223 = vmatprep.mubr.bf16.mxu0 %v524_v18  ;;  %7911 = vmatprep.mubr.bf16.mxu1 %v524_v18  ;;  %v462_v18 = vld [vmem:[%s12128_s16 + $0xd8] sm:$0xff] }
 0x3db   : > { %v11374_v14 = vld [vmem:[%s12136_s11 + $0x1bc8] ss:$16 sps:$4 sm:$0xff]  }
 0x3dc   : > { %7194 = vmatpush1.bf16.msra.mxu0 %v11197_v19  ;;  %7882 = vmatpush1.bf16.msra.mxu1 %v11200_v20  ;;  %v494_v19 = vld [vmem:[%s12128_s16 + $0x1d8] sm:$0xff]  ;;  %v11287_v20 = vld [vmem:[%s12136_s11 + $0x1a00] ss:$16 sps:$4 sm:$0xff]  }
 0x3dd   : > { %7195 = vmatprep.subr.bf16.mxu0 %v11205_v21  ;;  %7883 = vmatprep.subr.bf16.mxu1 %v11208_v22  ;;  %v11290_v21 = vld [vmem:[%s12136_s11 + $0x1a08] ss:$16 sps:$4 sm:$0xff]   ;;  %v11295_v22 = vld [vmem:[%s12136_s11 + $0x1a24] ss:$16 sps:$4 sm:$0xff]  }
 0x3e0   : > { %7196 = vmatpush1.bf16.msra.mxu0 %v11203_v23  ;;  %7884 = vmatpush1.bf16.msra.mxu1 %v11206_v24  ;;  %v11298_v23 = vld [vmem:[%s12136_s11 + $0x1a2c] ss:$16 sps:$4 sm:$0xff]   ;;  %v526_v24 = vpack.c.bf16 %v494_v19, %v462_v18  ;;  %v11380_v18 = vld [vmem:[%s12136_s11 + $0x1be8] ss:$16 sps:$4 sm:$0xff]   ;;  %v461_v19 = vld [vmem:[%s12128_s16 + $0xd0] sm:$0xff] }
 0x3e1   : > { %7197 = vmatprep.subr.bf16.mxu0 %v11211_v25  ;;  %7885 = vmatprep.subr.bf16.mxu1 %v11214_v26  ;;  %v11293_v25 = vld [vmem:[%s12136_s11 + $0x1a20] ss:$16 sps:$4 sm:$0xff]   ;;  %v11296_v26 = vld [vmem:[%s12136_s11 + $0x1a28] ss:$16 sps:$4 sm:$0xff]  }
 0x3e4   : > { %7198 = vmatpush1.bf16.msra.mxu0 %v11209_v27  ;;  %7886 = vmatpush1.bf16.msra.mxu1 %v11212_v28  ;;  %v11301_v27 = vld [vmem:[%s12136_s11 + $0x1a44] ss:$16 sps:$4 sm:$0xff]   ;;  %v11304_v28 = vld [vmem:[%s12136_s11 + $0x1a4c] ss:$16 sps:$4 sm:$0xff]  }
 0x3e5   : > { %7199 = vmatprep.subr.bf16.mxu0 %v11217_v29  ;;  %7887 = vmatprep.subr.bf16.mxu1 %v11220_v30  ;;  %v11299_v29 = vld [vmem:[%s12136_s11 + $0x1a40] ss:$16 sps:$4 sm:$0xff]   ;;  %v11302_v30 = vld [vmem:[%s12136_s11 + $0x1a48] ss:$16 sps:$4 sm:$0xff]  }
 0x3e8   : > { %7200 = vmatpush1.bf16.msra.mxu0 %v11215_v31  ;;  %7888 = vmatpush1.bf16.msra.mxu1 %v11218_v32  ;;  %v11307_v31 = vld [vmem:[%s12136_s11 + $0x1a64] ss:$16 sps:$4 sm:$0xff]   ;;  %v11310_v32 = vld [vmem:[%s12136_s11 + $0x1a6c] ss:$16 sps:$4 sm:$0xff]  }
 0x3e9   : > { %7201 = vmatprep.subr.bf16.mxu0 %v11223_v33  ;;  %7889 = vmatprep.subr.bf16.mxu1 %v11226_v34  ;;  %v11305_v33 = vld [vmem:[%s12136_s11 + $0x1a60] ss:$16 sps:$4 sm:$0xff]   ;;  %v11308_v34 = vld [vmem:[%s12136_s11 + $0x1a68] ss:$16 sps:$4 sm:$0xff]  }
 0x3ec   : > { %7202 = vmatpush1.bf16.msra.mxu0 %v11221_v35  ;;  %7890 = vmatpush1.bf16.msra.mxu1 %v11224_v36  ;;  %v11313_v35 = vld [vmem:[%s12136_s11 + $0x1a84] ss:$16 sps:$4 sm:$0xff]   ;;  %v11316_v36 = vld [vmem:[%s12136_s11 + $0x1a8c] ss:$16 sps:$4 sm:$0xff]  }
 0x3ed   : > { %7203 = vmatprep.subr.bf16.mxu0 %v11229_v37  ;;  %7891 = vmatprep.subr.bf16.mxu1 %v11232_v38  ;;  %v11311_v37 = vld [vmem:[%s12136_s11 + $0x1a80] ss:$16 sps:$4 sm:$0xff]   ;;  %v11314_v38 = vld [vmem:[%s12136_s11 + $0x1a88] ss:$16 sps:$4 sm:$0xff]  }
 0x3f0   : > { %7204 = vmatpush1.bf16.msra.mxu0 %v11227_v39  ;;  %7892 = vmatpush1.bf16.msra.mxu1 %v11230_v40  ;;  %v11319_v39 = vld [vmem:[%s12136_s11 + $0x1aa4] ss:$16 sps:$4 sm:$0xff]   ;;  %v11322_v40 = vld [vmem:[%s12136_s11 + $0x1aac] ss:$16 sps:$4 sm:$0xff]  }
 0x3f1   : > { %7205 = vmatprep.subr.bf16.mxu0 %v11235_v41  ;;  %7893 = vmatprep.subr.bf16.mxu1 %v11238_v42  ;;  %v11317_v41 = vld [vmem:[%s12136_s11 + $0x1aa0] ss:$16 sps:$4 sm:$0xff]   ;;  %v11320_v42 = vld [vmem:[%s12136_s11 + $0x1aa8] ss:$16 sps:$4 sm:$0xff]  }
 0x3f4   : > { %7206 = vmatpush1.bf16.msra.mxu0 %v11233_v43  ;;  %7894 = vmatpush1.bf16.msra.mxu1 %v11236_v44  ;;  %v11325_v43 = vld [vmem:[%s12136_s11 + $0x1ac4] ss:$16 sps:$4 sm:$0xff]   ;;  %v11328_v44 = vld [vmem:[%s12136_s11 + $0x1acc] ss:$16 sps:$4 sm:$0xff]  }
 0x3f5   : > { %7207 = vmatprep.subr.bf16.mxu0 %v11241_v45  ;;  %7895 = vmatprep.subr.bf16.mxu1 %v11244_v46  ;;  %v11323_v45 = vld [vmem:[%s12136_s11 + $0x1ac0] ss:$16 sps:$4 sm:$0xff]   ;;  %v11326_v46 = vld [vmem:[%s12136_s11 + $0x1ac8] ss:$16 sps:$4 sm:$0xff]  }
 0x3f8   : > { %7208 = vmatpush1.bf16.msra.mxu0 %v11239_v47  ;;  %7896 = vmatpush1.bf16.msra.mxu1 %v11242_v48  ;;  %v11331_v47 = vld [vmem:[%s12136_s11 + $0x1ae4] ss:$16 sps:$4 sm:$0xff]   ;;  %v11334_v48 = vld [vmem:[%s12136_s11 + $0x1aec] ss:$16 sps:$4 sm:$0xff]  }
 0x3f9   : > { %7209 = vmatprep.subr.bf16.mxu0 %v11247_v49  ;;  %7897 = vmatprep.subr.bf16.mxu1 %v11250_v50  ;;  %v11329_v49 = vld [vmem:[%s12136_s11 + $0x1ae0] ss:$16 sps:$4 sm:$0xff]   ;;  %v11332_v50 = vld [vmem:[%s12136_s11 + $0x1ae8] ss:$16 sps:$4 sm:$0xff]  }
 0x3fc   : > { %7210 = vmatpush1.bf16.msra.mxu0 %v11245_v51  ;;  %7898 = vmatpush1.bf16.msra.mxu1 %v11248_v52  ;;  %v11337_v51 = vld [vmem:[%s12136_s11 + $0x1b04] ss:$16 sps:$4 sm:$0xff]   ;;  %v11340_v52 = vld [vmem:[%s12136_s11 + $0x1b0c] ss:$16 sps:$4 sm:$0xff]  }
 0x3fd   : > { %7211 = vmatprep.subr.bf16.mxu0 %v11253_v53  ;;  %7899 = vmatprep.subr.bf16.mxu1 %v11256_v54  ;;  %v11335_v53 = vld [vmem:[%s12136_s11 + $0x1b00] ss:$16 sps:$4 sm:$0xff]   ;;  %v11338_v54 = vld [vmem:[%s12136_s11 + $0x1b08] ss:$16 sps:$4 sm:$0xff]  }
 0x400   : > { %7212 = vmatpush1.bf16.msra.mxu0 %v11251_v55  ;;  %7900 = vmatpush1.bf16.msra.mxu1 %v11254_v56  ;;  %v11343_v55 = vld [vmem:[%s12136_s11 + $0x1b24] ss:$16 sps:$4 sm:$0xff]   ;;  %v11346_v56 = vld [vmem:[%s12136_s11 + $0x1b2c] ss:$16 sps:$4 sm:$0xff]  }
 0x401   : > { %7213 = vmatprep.subr.bf16.mxu0 %v11259_v57  ;;  %7901 = vmatprep.subr.bf16.mxu1 %v11262_v58  ;;  %v11341_v57 = vld [vmem:[%s12136_s11 + $0x1b20] ss:$16 sps:$4 sm:$0xff]   ;;  %v11344_v58 = vld [vmem:[%s12136_s11 + $0x1b28] ss:$16 sps:$4 sm:$0xff]  }
 0x404   : > { %7214 = vmatpush1.bf16.msra.mxu0 %v11257_v59  ;;  %7902 = vmatpush1.bf16.msra.mxu1 %v11260_v60  ;;  %v11349_v59 = vld [vmem:[%s12136_s11 + $0x1b44] ss:$16 sps:$4 sm:$0xff]   ;;  %v11352_v60 = vld [vmem:[%s12136_s11 + $0x1b4c] ss:$16 sps:$4 sm:$0xff]  }
 0x405   : > { %7215 = vmatprep.subr.bf16.mxu0 %v11265_v61  ;;  %7903 = vmatprep.subr.bf16.mxu1 %v11268_v62  ;;  %v11347_v61 = vld [vmem:[%s12136_s11 + $0x1b40] ss:$16 sps:$4 sm:$0xff]   ;;  %v11350_v62 = vld [vmem:[%s12136_s11 + $0x1b48] ss:$16 sps:$4 sm:$0xff]  }
 0x408   : > { %7216 = vmatpush1.bf16.msra.mxu0 %v11263_v63  ;;  %7904 = vmatpush1.bf16.msra.mxu1 %v11266_v0  ;;  %v11355_v63 = vld [vmem:[%s12136_s11 + $0x1b64] ss:$16 sps:$4 sm:$0xff]   ;;  %v11358_v0 = vld [vmem:[%s12136_s11 + $0x1b6c] ss:$16 sps:$4 sm:$0xff]  }
 0x409   : > { %7217 = vmatprep.subr.bf16.mxu0 %v11271_v1  ;;  %7905 = vmatprep.subr.bf16.mxu1 %v11274_v2  ;;  %v11353_v1 = vld [vmem:[%s12136_s11 + $0x1b60] ss:$16 sps:$4 sm:$0xff]   ;;  %v11356_v2 = vld [vmem:[%s12136_s11 + $0x1b68] ss:$16 sps:$4 sm:$0xff]  }
 0x40c   : > { %7218 = vmatpush1.bf16.msra.mxu0 %v11269_v3  ;;  %7906 = vmatpush1.bf16.msra.mxu1 %v11272_v4  ;;  %v11361_v3 = vld [vmem:[%s12136_s11 + $0x1b84] ss:$16 sps:$4 sm:$0xff]   ;;  %v11364_v4 = vld [vmem:[%s12136_s11 + $0x1b8c] ss:$16 sps:$4 sm:$0xff]  }
 0x40d   : > { %7219 = vmatprep.subr.bf16.mxu0 %v11277_v5  ;;  %7907 = vmatprep.subr.bf16.mxu1 %v11280_v6  ;;  %v11359_v5 = vld [vmem:[%s12136_s11 + $0x1b80] ss:$16 sps:$4 sm:$0xff]   ;;  %v11362_v6 = vld [vmem:[%s12136_s11 + $0x1b88] ss:$16 sps:$4 sm:$0xff]  }
 0x410   : > { %7220 = vmatpush1.bf16.msra.mxu0 %v11275_v7  ;;  %7908 = vmatpush1.bf16.msra.mxu1 %v11278_v8  ;;  %v11367_v7 = vld [vmem:[%s12136_s11 + $0x1ba4] ss:$16 sps:$4 sm:$0xff]   ;;  %v11370_v8 = vld [vmem:[%s12136_s11 + $0x1bac] ss:$16 sps:$4 sm:$0xff]  }
 0x411   : > { %7221 = vmatprep.subr.bf16.mxu0 %v11283_v9  ;;  %7909 = vmatprep.subr.bf16.mxu1 %v11286_v10  ;;  %v11365_v9 = vld [vmem:[%s12136_s11 + $0x1ba0] ss:$16 sps:$4 sm:$0xff]   ;;  %v11368_v10 = vld [vmem:[%s12136_s11 + $0x1ba8] ss:$16 sps:$4 sm:$0xff]  }
 0x414   : > { %7222 = vmatpush1.bf16.msra.mxu0 %v11281_v11  ;;  %7910 = vmatpush1.bf16.msra.mxu1 %v11284_v12  ;;  %v11373_v11 = vld [vmem:[%s12136_s11 + $0x1bc4] ss:$16 sps:$4 sm:$0xff]   ;;  %v11376_v12 = vld [vmem:[%s12136_s11 + $0x1bcc] ss:$16 sps:$4 sm:$0xff]  }
 0x415   : > { %7234 = vmatprep.subr.bf16.mxu0 %v11289_v15  ;;  %7922 = vmatprep.subr.bf16.mxu1 %v11292_v16  ;;  %v11379_v15 = vld [vmem:[%s12136_s11 + $0x1be4] ss:$16 sps:$4 sm:$0xff]   ;;  %v11382_v16 = vld [vmem:[%s12136_s11 + $0x1bec] ss:$16 sps:$4 sm:$0xff]  }
 0x417   : > { %7224 = vmatmul.mubr.bf16.vlgmr.msra.gmra.mrb[0].mxu0 %v523_v17  ;;  %7912 = vmatmul.mubr.bf16.vlgmr.msra.gmra.mrb[0].mxu1 %v523_v17  ;;  %v11377_v17 = vld [vmem:[%s12136_s11 + $0x1be0] ss:$16 sps:$4 sm:$0xff]  }
 0x418   : > { %7235 = vmatpush1.bf16.msra.mxu0 %v11287_v20  ;;  %7923 = vmatpush1.bf16.msra.mxu1 %v11290_v21  ;;  %v493_v20 = vld [vmem:[%s12128_s16 + $0x1d0] sm:$0xff] }
 0x419   : > { %7236 = vmatprep.subr.bf16.mxu0 %v11295_v22  ;;  %7924 = vmatprep.subr.bf16.mxu1 %v11298_v23  ;;  %v11385_v21 = vld [vmem:[%s12136_s11 + $0x1c04] ss:$16 sps:$4 sm:$0xff]   ;;  %v11388_v22 = vld [vmem:[%s12136_s11 + $0x1c0c] ss:$16 sps:$4 sm:$0xff]   ;;  %v525_v23 = vpack.c.bf16 %v493_v20, %v461_v19  ;;  %v11467_v19 = vld [vmem:[%s12136_s11 + $0x1dc0] ss:$16 sps:$4 sm:$0xff]  }
 0x41a   : > { %7266 = vmatprep.mubr.bf16.mxu0 %v526_v24  ;;  %7954 = vmatprep.mubr.bf16.mxu1 %v526_v24  ;;  %v464_v24 = vld [vmem:[%s12128_s16 + $0xe8] sm:$0xff] }
 0x41b   : > { %v11470_v20 = vld [vmem:[%s12136_s11 + $0x1dc8] ss:$16 sps:$4 sm:$0xff]  }
 0x41c   : > { %7237 = vmatpush1.bf16.msra.mxu0 %v11293_v25  ;;  %7925 = vmatpush1.bf16.msra.mxu1 %v11296_v26  ;;  %v496_v25 = vld [vmem:[%s12128_s16 + $0x1e8] sm:$0xff]  ;;  %v11383_v26 = vld [vmem:[%s12136_s11 + $0x1c00] ss:$16 sps:$4 sm:$0xff]  }
 0x41d   : > { %7238 = vmatprep.subr.bf16.mxu0 %v11301_v27  ;;  %7926 = vmatprep.subr.bf16.mxu1 %v11304_v28  ;;  %v11386_v27 = vld [vmem:[%s12136_s11 + $0x1c08] ss:$16 sps:$4 sm:$0xff]   ;;  %v11391_v28 = vld [vmem:[%s12136_s11 + $0x1c24] ss:$16 sps:$4 sm:$0xff]  }
 0x420   : > { %7239 = vmatpush1.bf16.msra.mxu0 %v11299_v29  ;;  %7927 = vmatpush1.bf16.msra.mxu1 %v11302_v30  ;;  %v11394_v29 = vld [vmem:[%s12136_s11 + $0x1c2c] ss:$16 sps:$4 sm:$0xff]   ;;  %v528_v30 = vpack.c.bf16 %v496_v25, %v464_v24  ;;  %v11476_v24 = vld [vmem:[%s12136_s11 + $0x1de8] ss:$16 sps:$4 sm:$0xff]   ;;  %v463_v25 = vld [vmem:[%s12128_s16 + $0xe0] sm:$0xff] }
 0x421   : > { %7240 = vmatprep.subr.bf16.mxu0 %v11307_v31  ;;  %7928 = vmatprep.subr.bf16.mxu1 %v11310_v32  ;;  %v11389_v31 = vld [vmem:[%s12136_s11 + $0x1c20] ss:$16 sps:$4 sm:$0xff]   ;;  %v11392_v32 = vld [vmem:[%s12136_s11 + $0x1c28] ss:$16 sps:$4 sm:$0xff]  }
 0x424   : > { %7241 = vmatpush1.bf16.msra.mxu0 %v11305_v33  ;;  %7929 = vmatpush1.bf16.msra.mxu1 %v11308_v34  ;;  %v11397_v33 = vld [vmem:[%s12136_s11 + $0x1c44] ss:$16 sps:$4 sm:$0xff]   ;;  %v11400_v34 = vld [vmem:[%s12136_s11 + $0x1c4c] ss:$16 sps:$4 sm:$0xff]  }
 0x425   : > { %7242 = vmatprep.subr.bf16.mxu0 %v11313_v35  ;;  %7930 = vmatprep.subr.bf16.mxu1 %v11316_v36  ;;  %v11395_v35 = vld [vmem:[%s12136_s11 + $0x1c40] ss:$16 sps:$4 sm:$0xff]   ;;  %v11398_v36 = vld [vmem:[%s12136_s11 + $0x1c48] ss:$16 sps:$4 sm:$0xff]  }
 0x428   : > { %7243 = vmatpush1.bf16.msra.mxu0 %v11311_v37  ;;  %7931 = vmatpush1.bf16.msra.mxu1 %v11314_v38  ;;  %v11403_v37 = vld [vmem:[%s12136_s11 + $0x1c64] ss:$16 sps:$4 sm:$0xff]   ;;  %v11406_v38 = vld [vmem:[%s12136_s11 + $0x1c6c] ss:$16 sps:$4 sm:$0xff]  }
 0x429   : > { %7244 = vmatprep.subr.bf16.mxu0 %v11319_v39  ;;  %7932 = vmatprep.subr.bf16.mxu1 %v11322_v40  ;;  %v11401_v39 = vld [vmem:[%s12136_s11 + $0x1c60] ss:$16 sps:$4 sm:$0xff]   ;;  %v11404_v40 = vld [vmem:[%s12136_s11 + $0x1c68] ss:$16 sps:$4 sm:$0xff]  }
 0x42c   : > { %7245 = vmatpush1.bf16.msra.mxu0 %v11317_v41  ;;  %7933 = vmatpush1.bf16.msra.mxu1 %v11320_v42  ;;  %v11409_v41 = vld [vmem:[%s12136_s11 + $0x1c84] ss:$16 sps:$4 sm:$0xff]   ;;  %v11412_v42 = vld [vmem:[%s12136_s11 + $0x1c8c] ss:$16 sps:$4 sm:$0xff]  }
 0x42d   : > { %7246 = vmatprep.subr.bf16.mxu0 %v11325_v43  ;;  %7934 = vmatprep.subr.bf16.mxu1 %v11328_v44  ;;  %v11407_v43 = vld [vmem:[%s12136_s11 + $0x1c80] ss:$16 sps:$4 sm:$0xff]   ;;  %v11410_v44 = vld [vmem:[%s12136_s11 + $0x1c88] ss:$16 sps:$4 sm:$0xff]  }
 0x430   : > { %7247 = vmatpush1.bf16.msra.mxu0 %v11323_v45  ;;  %7935 = vmatpush1.bf16.msra.mxu1 %v11326_v46  ;;  %v11415_v45 = vld [vmem:[%s12136_s11 + $0x1ca4] ss:$16 sps:$4 sm:$0xff]   ;;  %v11418_v46 = vld [vmem:[%s12136_s11 + $0x1cac] ss:$16 sps:$4 sm:$0xff]  }
 0x431   : > { %7248 = vmatprep.subr.bf16.mxu0 %v11331_v47  ;;  %7936 = vmatprep.subr.bf16.mxu1 %v11334_v48  ;;  %v11413_v47 = vld [vmem:[%s12136_s11 + $0x1ca0] ss:$16 sps:$4 sm:$0xff]   ;;  %v11416_v48 = vld [vmem:[%s12136_s11 + $0x1ca8] ss:$16 sps:$4 sm:$0xff]  }
 0x434   : > { %7249 = vmatpush1.bf16.msra.mxu0 %v11329_v49  ;;  %7937 = vmatpush1.bf16.msra.mxu1 %v11332_v50  ;;  %v11421_v49 = vld [vmem:[%s12136_s11 + $0x1cc4] ss:$16 sps:$4 sm:$0xff]   ;;  %v11424_v50 = vld [vmem:[%s12136_s11 + $0x1ccc] ss:$16 sps:$4 sm:$0xff]  }
 0x435   : > { %7250 = vmatprep.subr.bf16.mxu0 %v11337_v51  ;;  %7938 = vmatprep.subr.bf16.mxu1 %v11340_v52  ;;  %v11419_v51 = vld [vmem:[%s12136_s11 + $0x1cc0] ss:$16 sps:$4 sm:$0xff]   ;;  %v11422_v52 = vld [vmem:[%s12136_s11 + $0x1cc8] ss:$16 sps:$4 sm:$0xff]  }
 0x438   : > { %7251 = vmatpush1.bf16.msra.mxu0 %v11335_v53  ;;  %7939 = vmatpush1.bf16.msra.mxu1 %v11338_v54  ;;  %v11427_v53 = vld [vmem:[%s12136_s11 + $0x1ce4] ss:$16 sps:$4 sm:$0xff]   ;;  %v11430_v54 = vld [vmem:[%s12136_s11 + $0x1cec] ss:$16 sps:$4 sm:$0xff]  }
 0x439   : > { %7252 = vmatprep.subr.bf16.mxu0 %v11343_v55  ;;  %7940 = vmatprep.subr.bf16.mxu1 %v11346_v56  ;;  %v11425_v55 = vld [vmem:[%s12136_s11 + $0x1ce0] ss:$16 sps:$4 sm:$0xff]   ;;  %v11428_v56 = vld [vmem:[%s12136_s11 + $0x1ce8] ss:$16 sps:$4 sm:$0xff]  }
 0x43c   : > { %7253 = vmatpush1.bf16.msra.mxu0 %v11341_v57  ;;  %7941 = vmatpush1.bf16.msra.mxu1 %v11344_v58  ;;  %v11433_v57 = vld [vmem:[%s12136_s11 + $0x1d04] ss:$16 sps:$4 sm:$0xff]   ;;  %v11436_v58 = vld [vmem:[%s12136_s11 + $0x1d0c] ss:$16 sps:$4 sm:$0xff]  }
 0x43d   : > { %7254 = vmatprep.subr.bf16.mxu0 %v11349_v59  ;;  %7942 = vmatprep.subr.bf16.mxu1 %v11352_v60  ;;  %v11431_v59 = vld [vmem:[%s12136_s11 + $0x1d00] ss:$16 sps:$4 sm:$0xff]   ;;  %v11434_v60 = vld [vmem:[%s12136_s11 + $0x1d08] ss:$16 sps:$4 sm:$0xff]  }
 0x440   : > { %7255 = vmatpush1.bf16.msra.mxu0 %v11347_v61  ;;  %7943 = vmatpush1.bf16.msra.mxu1 %v11350_v62  ;;  %v11439_v61 = vld [vmem:[%s12136_s11 + $0x1d24] ss:$16 sps:$4 sm:$0xff]   ;;  %v11442_v62 = vld [vmem:[%s12136_s11 + $0x1d2c] ss:$16 sps:$4 sm:$0xff]  }
 0x441   : > { %7256 = vmatprep.subr.bf16.mxu0 %v11355_v63  ;;  %7944 = vmatprep.subr.bf16.mxu1 %v11358_v0  ;;  %v11437_v63 = vld [vmem:[%s12136_s11 + $0x1d20] ss:$16 sps:$4 sm:$0xff]   ;;  %v11440_v0 = vld [vmem:[%s12136_s11 + $0x1d28] ss:$16 sps:$4 sm:$0xff]  }
 0x444   : > { %7257 = vmatpush1.bf16.msra.mxu0 %v11353_v1  ;;  %7945 = vmatpush1.bf16.msra.mxu1 %v11356_v2  ;;  %v11445_v1 = vld [vmem:[%s12136_s11 + $0x1d44] ss:$16 sps:$4 sm:$0xff]   ;;  %v11448_v2 = vld [vmem:[%s12136_s11 + $0x1d4c] ss:$16 sps:$4 sm:$0xff]  }
 0x445   : > { %7258 = vmatprep.subr.bf16.mxu0 %v11361_v3  ;;  %7946 = vmatprep.subr.bf16.mxu1 %v11364_v4  ;;  %v11443_v3 = vld [vmem:[%s12136_s11 + $0x1d40] ss:$16 sps:$4 sm:$0xff]   ;;  %v11446_v4 = vld [vmem:[%s12136_s11 + $0x1d48] ss:$16 sps:$4 sm:$0xff]  }
 0x448   : > { %7259 = vmatpush1.bf16.msra.mxu0 %v11359_v5  ;;  %7947 = vmatpush1.bf16.msra.mxu1 %v11362_v6  ;;  %v11451_v5 = vld [vmem:[%s12136_s11 + $0x1d64] ss:$16 sps:$4 sm:$0xff]   ;;  %v11454_v6 = vld [vmem:[%s12136_s11 + $0x1d6c] ss:$16 sps:$4 sm:$0xff]  }
 0x449   : > { %7260 = vmatprep.subr.bf16.mxu0 %v11367_v7  ;;  %7948 = vmatprep.subr.bf16.mxu1 %v11370_v8  ;;  %v11449_v7 = vld [vmem:[%s12136_s11 + $0x1d60] ss:$16 sps:$4 sm:$0xff]   ;;  %v11452_v8 = vld [vmem:[%s12136_s11 + $0x1d68] ss:$16 sps:$4 sm:$0xff]  }
 0x44c   : > { %7261 = vmatpush1.bf16.msra.mxu0 %v11365_v9  ;;  %7949 = vmatpush1.bf16.msra.mxu1 %v11368_v10  ;;  %v11457_v9 = vld [vmem:[%s12136_s11 + $0x1d84] ss:$16 sps:$4 sm:$0xff]   ;;  %v11460_v10 = vld [vmem:[%s12136_s11 + $0x1d8c] ss:$16 sps:$4 sm:$0xff]  }
 0x44d   : > { %7262 = vmatprep.subr.bf16.mxu0 %v11373_v11  ;;  %7950 = vmatprep.subr.bf16.mxu1 %v11376_v12  ;;  %v11455_v11 = vld [vmem:[%s12136_s11 + $0x1d80] ss:$16 sps:$4 sm:$0xff]   ;;  %v11458_v12 = vld [vmem:[%s12136_s11 + $0x1d88] ss:$16 sps:$4 sm:$0xff]  }
 0x450   : > { %7263 = vmatpush1.bf16.msra.mxu0 %v11371_v13  ;;  %7951 = vmatpush1.bf16.msra.mxu1 %v11374_v14  ;;  %v11463_v13 = vld [vmem:[%s12136_s11 + $0x1da4] ss:$16 sps:$4 sm:$0xff]   ;;  %v11466_v14 = vld [vmem:[%s12136_s11 + $0x1dac] ss:$16 sps:$4 sm:$0xff]  }
 0x451   : > { %7264 = vmatprep.subr.bf16.mxu0 %v11379_v15  ;;  %7952 = vmatprep.subr.bf16.mxu1 %v11382_v16  ;;  %v11461_v15 = vld [vmem:[%s12136_s11 + $0x1da0] ss:$16 sps:$4 sm:$0xff]   ;;  %v11464_v16 = vld [vmem:[%s12136_s11 + $0x1da8] ss:$16 sps:$4 sm:$0xff]  }
 0x454   : > { %7265 = vmatpush1.bf16.msra.mxu0 %v11377_v17  ;;  %7953 = vmatpush1.bf16.msra.mxu1 %v11380_v18  ;;  %v11469_v17 = vld [vmem:[%s12136_s11 + $0x1dc4] ss:$16 sps:$4 sm:$0xff]   ;;  %v11472_v18 = vld [vmem:[%s12136_s11 + $0x1dcc] ss:$16 sps:$4 sm:$0xff]  }
 0x455   : > { %7277 = vmatprep.subr.bf16.mxu0 %v11385_v21  ;;  %7965 = vmatprep.subr.bf16.mxu1 %v11388_v22  ;;  %v11475_v21 = vld [vmem:[%s12136_s11 + $0x1de4] ss:$16 sps:$4 sm:$0xff]   ;;  %v11478_v22 = vld [vmem:[%s12136_s11 + $0x1dec] ss:$16 sps:$4 sm:$0xff]  }
 0x457   : > { %7267 = vmatmul.mubr.bf16.vlgmr.msra.gmra.mrb[0].mxu0 %v525_v23  ;;  %7955 = vmatmul.mubr.bf16.vlgmr.msra.gmra.mrb[0].mxu1 %v525_v23  ;;  %v11473_v23 = vld [vmem:[%s12136_s11 + $0x1de0] ss:$16 sps:$4 sm:$0xff]  }
 0x458   : > { %7278 = vmatpush1.bf16.msra.mxu0 %v11383_v26  ;;  %7966 = vmatpush1.bf16.msra.mxu1 %v11386_v27  ;;  %v495_v26 = vld [vmem:[%s12128_s16 + $0x1e0] sm:$0xff] }
 0x459   : > { %7279 = vmatprep.subr.bf16.mxu0 %v11391_v28  ;;  %7967 = vmatprep.subr.bf16.mxu1 %v11394_v29  ;;  %v11481_v27 = vld [vmem:[%s12136_s11 + $0x1e04] ss:$16 sps:$4 sm:$0xff]   ;;  %v11484_v28 = vld [vmem:[%s12136_s11 + $0x1e0c] ss:$16 sps:$4 sm:$0xff]   ;;  %v527_v29 = vpack.c.bf16 %v495_v26, %v463_v25  ;;  %v11563_v25 = vld [vmem:[%s12136_s11 + $0x1fc0] ss:$16 sps:$4 sm:$0xff]  }
 0x45a   : > { %7309 = vmatprep.mubr.bf16.mxu0 %v528_v30  ;;  %7997 = vmatprep.mubr.bf16.mxu1 %v528_v30  ;;  %v466_v30 = vld [vmem:[%s12128_s16 + $0xf8] sm:$0xff] }
 0x45b   : > { %v11566_v26 = vld [vmem:[%s12136_s11 + $0x1fc8] ss:$16 sps:$4 sm:$0xff]  }
 0x45c   : > { %7280 = vmatpush1.bf16.msra.mxu0 %v11389_v31  ;;  %7968 = vmatpush1.bf16.msra.mxu1 %v11392_v32  ;;  %v498_v31 = vld [vmem:[%s12128_s16 + $0x1f8] sm:$0xff]  ;;  %v11479_v32 = vld [vmem:[%s12136_s11 + $0x1e00] ss:$16 sps:$4 sm:$0xff]  }
 0x45d   : > { %7281 = vmatprep.subr.bf16.mxu0 %v11397_v33  ;;  %7969 = vmatprep.subr.bf16.mxu1 %v11400_v34  ;;  %v11482_v33 = vld [vmem:[%s12136_s11 + $0x1e08] ss:$16 sps:$4 sm:$0xff]   ;;  %v11487_v34 = vld [vmem:[%s12136_s11 + $0x1e24] ss:$16 sps:$4 sm:$0xff]  }
 0x460   : > { %7282 = vmatpush1.bf16.msra.mxu0 %v11395_v35  ;;  %7970 = vmatpush1.bf16.msra.mxu1 %v11398_v36  ;;  %v11490_v35 = vld [vmem:[%s12136_s11 + $0x1e2c] ss:$16 sps:$4 sm:$0xff]   ;;  %v530_v36 = vpack.c.bf16 %v498_v31, %v466_v30  ;;  %v11572_v30 = vld [vmem:[%s12136_s11 + $0x1fe8] ss:$16 sps:$4 sm:$0xff]   ;;  %v465_v31 = vld [vmem:[%s12128_s16 + $0xf0] sm:$0xff] }
 0x461   : > { %7283 = vmatprep.subr.bf16.mxu0 %v11403_v37  ;;  %7971 = vmatprep.subr.bf16.mxu1 %v11406_v38  ;;  %v11485_v37 = vld [vmem:[%s12136_s11 + $0x1e20] ss:$16 sps:$4 sm:$0xff]   ;;  %v11488_v38 = vld [vmem:[%s12136_s11 + $0x1e28] ss:$16 sps:$4 sm:$0xff]  }
 0x464   : > { %7284 = vmatpush1.bf16.msra.mxu0 %v11401_v39  ;;  %7972 = vmatpush1.bf16.msra.mxu1 %v11404_v40  ;;  %v11493_v39 = vld [vmem:[%s12136_s11 + $0x1e44] ss:$16 sps:$4 sm:$0xff]   ;;  %v11496_v40 = vld [vmem:[%s12136_s11 + $0x1e4c] ss:$16 sps:$4 sm:$0xff]  }
 0x465   : > { %7285 = vmatprep.subr.bf16.mxu0 %v11409_v41  ;;  %7973 = vmatprep.subr.bf16.mxu1 %v11412_v42  ;;  %v11491_v41 = vld [vmem:[%s12136_s11 + $0x1e40] ss:$16 sps:$4 sm:$0xff]   ;;  %v11494_v42 = vld [vmem:[%s12136_s11 + $0x1e48] ss:$16 sps:$4 sm:$0xff]  }
 0x468   : > { %7286 = vmatpush1.bf16.msra.mxu0 %v11407_v43  ;;  %7974 = vmatpush1.bf16.msra.mxu1 %v11410_v44  ;;  %v11499_v43 = vld [vmem:[%s12136_s11 + $0x1e64] ss:$16 sps:$4 sm:$0xff]   ;;  %v11502_v44 = vld [vmem:[%s12136_s11 + $0x1e6c] ss:$16 sps:$4 sm:$0xff]  }
 0x469   : > { %7287 = vmatprep.subr.bf16.mxu0 %v11415_v45  ;;  %7975 = vmatprep.subr.bf16.mxu1 %v11418_v46  ;;  %v11497_v45 = vld [vmem:[%s12136_s11 + $0x1e60] ss:$16 sps:$4 sm:$0xff]   ;;  %v11500_v46 = vld [vmem:[%s12136_s11 + $0x1e68] ss:$16 sps:$4 sm:$0xff]  }
 0x46c   : > { %7288 = vmatpush1.bf16.msra.mxu0 %v11413_v47  ;;  %7976 = vmatpush1.bf16.msra.mxu1 %v11416_v48  ;;  %v11505_v47 = vld [vmem:[%s12136_s11 + $0x1e84] ss:$16 sps:$4 sm:$0xff]   ;;  %v11508_v48 = vld [vmem:[%s12136_s11 + $0x1e8c] ss:$16 sps:$4 sm:$0xff]  }
 0x46d   : > { %7289 = vmatprep.subr.bf16.mxu0 %v11421_v49  ;;  %7977 = vmatprep.subr.bf16.mxu1 %v11424_v50  ;;  %v11503_v49 = vld [vmem:[%s12136_s11 + $0x1e80] ss:$16 sps:$4 sm:$0xff]   ;;  %v11506_v50 = vld [vmem:[%s12136_s11 + $0x1e88] ss:$16 sps:$4 sm:$0xff]  }
 0x470   : > { %7290 = vmatpush1.bf16.msra.mxu0 %v11419_v51  ;;  %7978 = vmatpush1.bf16.msra.mxu1 %v11422_v52  ;;  %v11511_v51 = vld [vmem:[%s12136_s11 + $0x1ea4] ss:$16 sps:$4 sm:$0xff]   ;;  %v11514_v52 = vld [vmem:[%s12136_s11 + $0x1eac] ss:$16 sps:$4 sm:$0xff]  }
 0x471   : > { %7291 = vmatprep.subr.bf16.mxu0 %v11427_v53  ;;  %7979 = vmatprep.subr.bf16.mxu1 %v11430_v54  ;;  %v11509_v53 = vld [vmem:[%s12136_s11 + $0x1ea0] ss:$16 sps:$4 sm:$0xff]   ;;  %v11512_v54 = vld [vmem:[%s12136_s11 + $0x1ea8] ss:$16 sps:$4 sm:$0xff]  }
 0x474   : > { %7292 = vmatpush1.bf16.msra.mxu0 %v11425_v55  ;;  %7980 = vmatpush1.bf16.msra.mxu1 %v11428_v56  ;;  %v11517_v55 = vld [vmem:[%s12136_s11 + $0x1ec4] ss:$16 sps:$4 sm:$0xff]   ;;  %v11520_v56 = vld [vmem:[%s12136_s11 + $0x1ecc] ss:$16 sps:$4 sm:$0xff]  }
 0x475   : > { %7293 = vmatprep.subr.bf16.mxu0 %v11433_v57  ;;  %7981 = vmatprep.subr.bf16.mxu1 %v11436_v58  ;;  %v11515_v57 = vld [vmem:[%s12136_s11 + $0x1ec0] ss:$16 sps:$4 sm:$0xff]   ;;  %v11518_v58 = vld [vmem:[%s12136_s11 + $0x1ec8] ss:$16 sps:$4 sm:$0xff]  }
 0x478   : > { %7294 = vmatpush1.bf16.msra.mxu0 %v11431_v59  ;;  %7982 = vmatpush1.bf16.msra.mxu1 %v11434_v60  ;;  %v11523_v59 = vld [vmem:[%s12136_s11 + $0x1ee4] ss:$16 sps:$4 sm:$0xff]   ;;  %v11526_v60 = vld [vmem:[%s12136_s11 + $0x1eec] ss:$16 sps:$4 sm:$0xff]  }
 0x479   : > { %7295 = vmatprep.subr.bf16.mxu0 %v11439_v61  ;;  %7983 = vmatprep.subr.bf16.mxu1 %v11442_v62  ;;  %v11521_v61 = vld [vmem:[%s12136_s11 + $0x1ee0] ss:$16 sps:$4 sm:$0xff]   ;;  %v11524_v62 = vld [vmem:[%s12136_s11 + $0x1ee8] ss:$16 sps:$4 sm:$0xff]  }
 0x47c   : > { %7296 = vmatpush1.bf16.msra.mxu0 %v11437_v63  ;;  %7984 = vmatpush1.bf16.msra.mxu1 %v11440_v0  ;;  %v11529_v63 = vld [vmem:[%s12136_s11 + $0x1f04] ss:$16 sps:$4 sm:$0xff]   ;;  %v11532_v0 = vld [vmem:[%s12136_s11 + $0x1f0c] ss:$16 sps:$4 sm:$0xff]  }
 0x47d   : > { %7297 = vmatprep.subr.bf16.mxu0 %v11445_v1  ;;  %7985 = vmatprep.subr.bf16.mxu1 %v11448_v2  ;;  %v11527_v1 = vld [vmem:[%s12136_s11 + $0x1f00] ss:$16 sps:$4 sm:$0xff]   ;;  %v11530_v2 = vld [vmem:[%s12136_s11 + $0x1f08] ss:$16 sps:$4 sm:$0xff]  }
 0x480   : > { %7298 = vmatpush1.bf16.msra.mxu0 %v11443_v3  ;;  %7986 = vmatpush1.bf16.msra.mxu1 %v11446_v4  ;;  %v11535_v3 = vld [vmem:[%s12136_s11 + $0x1f24] ss:$16 sps:$4 sm:$0xff]   ;;  %v11538_v4 = vld [vmem:[%s12136_s11 + $0x1f2c] ss:$16 sps:$4 sm:$0xff]  }
 0x481   : > { %7299 = vmatprep.subr.bf16.mxu0 %v11451_v5  ;;  %7987 = vmatprep.subr.bf16.mxu1 %v11454_v6  ;;  %v11533_v5 = vld [vmem:[%s12136_s11 + $0x1f20] ss:$16 sps:$4 sm:$0xff]   ;;  %v11536_v6 = vld [vmem:[%s12136_s11 + $0x1f28] ss:$16 sps:$4 sm:$0xff]  }
 0x484   : > { %7300 = vmatpush1.bf16.msra.mxu0 %v11449_v7  ;;  %7988 = vmatpush1.bf16.msra.mxu1 %v11452_v8  ;;  %v11541_v7 = vld [vmem:[%s12136_s11 + $0x1f44] ss:$16 sps:$4 sm:$0xff]   ;;  %v11544_v8 = vld [vmem:[%s12136_s11 + $0x1f4c] ss:$16 sps:$4 sm:$0xff]  }
 0x485   : > { %7301 = vmatprep.subr.bf16.mxu0 %v11457_v9  ;;  %7989 = vmatprep.subr.bf16.mxu1 %v11460_v10  ;;  %v11539_v9 = vld [vmem:[%s12136_s11 + $0x1f40] ss:$16 sps:$4 sm:$0xff]   ;;  %v11542_v10 = vld [vmem:[%s12136_s11 + $0x1f48] ss:$16 sps:$4 sm:$0xff]  }
 0x488   : > { %7302 = vmatpush1.bf16.msra.mxu0 %v11455_v11  ;;  %7990 = vmatpush1.bf16.msra.mxu1 %v11458_v12  ;;  %v11547_v11 = vld [vmem:[%s12136_s11 + $0x1f64] ss:$16 sps:$4 sm:$0xff]   ;;  %v11550_v12 = vld [vmem:[%s12136_s11 + $0x1f6c] ss:$16 sps:$4 sm:$0xff]  }
 0x489   : > { %7303 = vmatprep.subr.bf16.mxu0 %v11463_v13  ;;  %7991 = vmatprep.subr.bf16.mxu1 %v11466_v14  ;;  %v11545_v13 = vld [vmem:[%s12136_s11 + $0x1f60] ss:$16 sps:$4 sm:$0xff]   ;;  %v11548_v14 = vld [vmem:[%s12136_s11 + $0x1f68] ss:$16 sps:$4 sm:$0xff]  }
 0x48c   : > { %7304 = vmatpush1.bf16.msra.mxu0 %v11461_v15  ;;  %7992 = vmatpush1.bf16.msra.mxu1 %v11464_v16  ;;  %v11553_v15 = vld [vmem:[%s12136_s11 + $0x1f84] ss:$16 sps:$4 sm:$0xff]   ;;  %v11556_v16 = vld [vmem:[%s12136_s11 + $0x1f8c] ss:$16 sps:$4 sm:$0xff]  }
 0x48d   : > { %7305 = vmatprep.subr.bf16.mxu0 %v11469_v17  ;;  %7993 = vmatprep.subr.bf16.mxu1 %v11472_v18  ;;  %v11551_v17 = vld [vmem:[%s12136_s11 + $0x1f80] ss:$16 sps:$4 sm:$0xff]   ;;  %v11554_v18 = vld [vmem:[%s12136_s11 + $0x1f88] ss:$16 sps:$4 sm:$0xff]  }
 0x490   : > { %7306 = vmatpush1.bf16.msra.mxu0 %v11467_v19  ;;  %7994 = vmatpush1.bf16.msra.mxu1 %v11470_v20  ;;  %v11559_v19 = vld [vmem:[%s12136_s11 + $0x1fa4] ss:$16 sps:$4 sm:$0xff]   ;;  %v11562_v20 = vld [vmem:[%s12136_s11 + $0x1fac] ss:$16 sps:$4 sm:$0xff]  }
 0x491   : > { %7307 = vmatprep.subr.bf16.mxu0 %v11475_v21  ;;  %7995 = vmatprep.subr.bf16.mxu1 %v11478_v22  ;;  %v11557_v21 = vld [vmem:[%s12136_s11 + $0x1fa0] ss:$16 sps:$4 sm:$0xff]   ;;  %v11560_v22 = vld [vmem:[%s12136_s11 + $0x1fa8] ss:$16 sps:$4 sm:$0xff]  }
 0x494   : > { %7308 = vmatpush1.bf16.msra.mxu0 %v11473_v23  ;;  %7996 = vmatpush1.bf16.msra.mxu1 %v11476_v24  ;;  %v11565_v23 = vld [vmem:[%s12136_s11 + $0x1fc4] ss:$16 sps:$4 sm:$0xff]   ;;  %v11568_v24 = vld [vmem:[%s12136_s11 + $0x1fcc] ss:$16 sps:$4 sm:$0xff]  }
 0x495   : > { %7320 = vmatprep.subr.bf16.mxu0 %v11481_v27  ;;  %8008 = vmatprep.subr.bf16.mxu1 %v11484_v28  ;;  %v11571_v27 = vld [vmem:[%s12136_s11 + $0x1fe4] ss:$16 sps:$4 sm:$0xff]   ;;  %v11574_v28 = vld [vmem:[%s12136_s11 + $0x1fec] ss:$16 sps:$4 sm:$0xff]  }
 0x497   : > { %7310 = vmatmul.mubr.bf16.vlgmr.msra.gmra.mrb[0].mxu0 %v527_v29  ;;  %7998 = vmatmul.mubr.bf16.vlgmr.msra.gmra.mrb[0].mxu1 %v527_v29  ;;  %v11569_v29 = vld [vmem:[%s12136_s11 + $0x1fe0] ss:$16 sps:$4 sm:$0xff]  }
 0x498   : > { %7321 = vmatpush1.bf16.msra.mxu0 %v11479_v32  ;;  %8009 = vmatpush1.bf16.msra.mxu1 %v11482_v33  ;;  %v497_v32 = vld [vmem:[%s12128_s16 + $0x1f0] sm:$0xff] }
 0x499   : > { %7322 = vmatprep.subr.bf16.mxu0 %v11487_v34  ;;  %8010 = vmatprep.subr.bf16.mxu1 %v11490_v35  ;;  %v529_v33 = vpack.c.bf16 %v497_v32, %v465_v31  ;;  %v427_v34 = vld [vmem:[#allocation2] sm:$0xff]  ;;  %v429_v35 = vld [vmem:[#allocation2 + $0x10] sm:$0xff] }
 0x49a   : > { %7352 = vmatprep.mubr.bf16.mxu0 %v530_v36  ;;  %8040 = vmatprep.mubr.bf16.mxu1 %v530_v36  ;;  %v428_v36 = vld [vmem:[#allocation2 + $0x8] sm:$0xff] }
 0x49b   : > { %v8145_v31 = vld [vmem:[#allocation9 + $0x60] sm:$0xff] (!%p9668_p4) }
 0x49c   : > { %7323 = vmatpush1.bf16.msra.mxu0 %v11485_v37  ;;  %8011 = vmatpush1.bf16.msra.mxu1 %v11488_v38  ;;  %v430_v37 = vld [vmem:[#allocation2 + $0x18] sm:$0xff] }
 0x49d   : > { %7324 = vmatprep.subr.bf16.mxu0 %v11493_v39  ;;  %8012 = vmatprep.subr.bf16.mxu1 %v11496_v40  ;;  %v431_v40 = vld [vmem:[#allocation2 + $0x20] sm:$0xff] }
 0x4a0   : > { %7325 = vmatpush1.bf16.msra.mxu0 %v11491_v41  ;;  %8013 = vmatpush1.bf16.msra.mxu1 %v11494_v42  ;;  %v433_v41 = vld [vmem:[#allocation2 + $0x30] sm:$0xff] }
 0x4a1   : > { %7326 = vmatprep.subr.bf16.mxu0 %v11499_v43  ;;  %8014 = vmatprep.subr.bf16.mxu1 %v11502_v44 }
 0x4a4   : > { %7327 = vmatpush1.bf16.msra.mxu0 %v11497_v45  ;;  %8015 = vmatpush1.bf16.msra.mxu1 %v11500_v46  ;;  %v432_v46 = vld [vmem:[#allocation2 + $0x28] sm:$0xff] }
 0x4a5   : > { %7328 = vmatprep.subr.bf16.mxu0 %v11505_v47  ;;  %8016 = vmatprep.subr.bf16.mxu1 %v11508_v48  ;;  %v434_v47 = vld [vmem:[#allocation2 + $0x38] sm:$0xff] }
 0x4a8   : > { %7329 = vmatpush1.bf16.msra.mxu0 %v11503_v49  ;;  %8017 = vmatpush1.bf16.msra.mxu1 %v11506_v50 }
 0x4a9   : > { %7330 = vmatprep.subr.bf16.mxu0 %v11511_v51  ;;  %8018 = vmatprep.subr.bf16.mxu1 %v11514_v52 }
 0x4ac   : > { %7331 = vmatpush1.bf16.msra.mxu0 %v11509_v53  ;;  %8019 = vmatpush1.bf16.msra.mxu1 %v11512_v54 }
 0x4ad   : > { %7332 = vmatprep.subr.bf16.mxu0 %v11517_v55  ;;  %8020 = vmatprep.subr.bf16.mxu1 %v11520_v56 }
 0x4b0   : > { %7333 = vmatpush1.bf16.msra.mxu0 %v11515_v57  ;;  %8021 = vmatpush1.bf16.msra.mxu1 %v11518_v58  ;;  %v8134_v58 = vld [vmem:[#allocation9 + $0x8] sm:$0xff] (!%p9668_p4) }
 0x4b1   : > { %7334 = vmatprep.subr.bf16.mxu0 %v11523_v59  ;;  %8022 = vmatprep.subr.bf16.mxu1 %v11526_v60  ;;  %v8136_v59 = vld [vmem:[#allocation9 + $0x18] sm:$0xff] (!%p9668_p4)  ;;  %v8133_v60 = vld [vmem:[#allocation9] sm:$0xff] (!%p9668_p4) }
 0x4b4   : > { %7335 = vmatpush1.bf16.msra.mxu0 %v11521_v61  ;;  %8023 = vmatpush1.bf16.msra.mxu1 %v11524_v62  ;;  %v9677_v61 = vpack.c.bf16 (!%p9668_p4), %v8136_v59, %v8134_v58  ;;  %v8135_v62 = vld [vmem:[#allocation9 + $0x10] sm:$0xff] (!%p9668_p4)  ;;  %v8153_v59 = vld [vmem:[#allocation9 + $0xa0] sm:$0xff] (!%p9668_p4) }
 0x4b5   : > { %7336 = vmatprep.subr.bf16.mxu0 %v11529_v63  ;;  %8024 = vmatprep.subr.bf16.mxu1 %v11532_v0  ;;  %v8198_v63 = vld [vmem:[#allocation9 + $0x208] sm:$0xff] (!%p9668_p4)  ;;  %v8200_v0 = vld [vmem:[#allocation9 + $0x218] sm:$0xff] (!%p9668_p4) }
 0x4b8   : > { %7337 = vmatpush1.bf16.msra.mxu0 %v11527_v1  ;;  %8025 = vmatpush1.bf16.msra.mxu1 %v11530_v2  ;;  %v9679_v1 = vpack.c.bf16 (!%p9668_p4), %v8135_v62, %v8133_v60  ;;  %v9741_v2 = vpack.c.bf16 (!%p9668_p4), %v8200_v0, %v8198_v63  ;;  %v8155_v60 = vld [vmem:[#allocation9 + $0xb0] sm:$0xff] (!%p9668_p4)  ;;  %v8158_v0 = vld [vmem:[#allocation9 + $0xc8] sm:$0xff] (!%p9668_p4) }
 0x4b9   : > { %7338 = vmatprep.subr.bf16.mxu0 %v11535_v3  ;;  %8026 = vmatprep.subr.bf16.mxu1 %v11538_v4  ;;  %v8197_v3 = vld [vmem:[#allocation9 + $0x200] sm:$0xff] (!%p9668_p4)  ;;  %v8199_v4 = vld [vmem:[#allocation9 + $0x210] sm:$0xff] (!%p9668_p4) }
 0x4ba   : > { %v8219_v63 = vld [vmem:[#allocation9 + $0x2b0] sm:$0xff] (!%p9668_p4) }
 0x4bc   : > { %7339 = vmatpush1.bf16.msra.mxu0 %v11533_v5  ;;  %8027 = vmatpush1.bf16.msra.mxu1 %v11536_v6  ;;  %v8138_v5 = vld [vmem:[#allocation9 + $0x28] sm:$0xff] (!%p9668_p4)  ;;  %v9743_v6 = vpack.c.bf16 (!%p9668_p4), %v8199_v4, %v8197_v3  ;;  %v8224_v3 = vld [vmem:[#allocation9 + $0x2d8] sm:$0xff] (!%p9668_p4)  ;;  %v9699_v4 = vpack.c.bf16 (!%p9668_p4), %v8155_v60, %v8153_v59  ;;  %v8237_v59 = vld [vmem:[#allocation9 + $0x340] sm:$0xff] (!%p9668_p4) }
 0x4bd   : > { %7340 = vmatprep.subr.bf16.mxu0 %v11541_v7  ;;  %8028 = vmatprep.subr.bf16.mxu1 %v11544_v8  ;;  %v8140_v7 = vld [vmem:[#allocation9 + $0x38] sm:$0xff] (!%p9668_p4)  ;;  %v8137_v8 = vld [vmem:[#allocation9 + $0x20] sm:$0xff] (!%p9668_p4) }
 0x4c0   : > { %7341 = vmatpush1.bf16.msra.mxu0 %v11539_v9  ;;  %8029 = vmatpush1.bf16.msra.mxu1 %v11542_v10  ;;  %v8139_v9 = vld [vmem:[#allocation9 + $0x30] sm:$0xff] (!%p9668_p4)  ;;  %v9681_v10 = vpack.c.bf16 (!%p9668_p4), %v8140_v7, %v8138_v5  ;;  %v8157_v7 = vld [vmem:[#allocation9 + $0xc0] sm:$0xff] (!%p9668_p4) }
 0x4c1   : > { %7342 = vmatprep.subr.bf16.mxu0 %v11547_v11  ;;  %8030 = vmatprep.subr.bf16.mxu1 %v11550_v12  ;;  %v9683_v11 = vpack.c.bf16 (!%p9668_p4), %v8139_v9, %v8137_v8  ;;  %v8202_v12 = vld [vmem:[#allocation9 + $0x228] sm:$0xff] (!%p9668_p4)  ;;  %v8159_v8 = vld [vmem:[#allocation9 + $0xd0] sm:$0xff] (!%p9668_p4)  ;;  %v8221_v9 = vld [vmem:[#allocation9 + $0x2c0] sm:$0xff] (!%p9668_p4) }
 0x4c4   : > { %7343 = vmatpush1.bf16.msra.mxu0 %v11545_v13  ;;  %8031 = vmatpush1.bf16.msra.mxu1 %v11548_v14  ;;  %v8204_v13 = vld [vmem:[#allocation9 + $0x238] sm:$0xff] (!%p9668_p4)  ;;  %v8201_v14 = vld [vmem:[#allocation9 + $0x220] sm:$0xff] (!%p9668_p4) }
 0x4c5   : > { %7344 = vmatprep.subr.bf16.mxu0 %v11553_v15  ;;  %8032 = vmatprep.subr.bf16.mxu1 %v11556_v16  ;;  %v9745_v15 = vpack.c.bf16 (!%p9668_p4), %v8204_v13, %v8202_v12  ;;  %v8203_v16 = vld [vmem:[#allocation9 + $0x230] sm:$0xff] (!%p9668_p4)  ;;  %v8162_v12 = vld [vmem:[#allocation9 + $0xe8] sm:$0xff] (!%p9668_p4)  ;;  %v8164_v13 = vld [vmem:[#allocation9 + $0xf8] sm:$0xff] (!%p9668_p4) }
 0x4c8   : > { %7345 = vmatpush1.bf16.msra.mxu0 %v11551_v17  ;;  %8033 = vmatpush1.bf16.msra.mxu1 %v11554_v18  ;;  %v8142_v17 = vld [vmem:[#allocation9 + $0x48] sm:$0xff] (!%p9668_p4)  ;;  %v8144_v18 = vld [vmem:[#allocation9 + $0x58] sm:$0xff] (!%p9668_p4) }
 0x4c9   : > { %7346 = vmatprep.subr.bf16.mxu0 %v11559_v19  ;;  %8034 = vmatprep.subr.bf16.mxu1 %v11562_v20  ;;  %v9747_v19 = vpack.c.bf16 (!%p9668_p4), %v8203_v16, %v8201_v14  ;;  %v9685_v20 = vpack.c.bf16 (!%p9668_p4), %v8144_v18, %v8142_v17  ;;  %v8226_v14 = vld [vmem:[#allocation9 + $0x2e8] sm:$0xff] (!%p9668_p4)  ;;  %v9703_v16 = vpack.c.bf16 (!%p9668_p4), %v8159_v8, %v8157_v7 }
 0x4ca   : > { %v9705_v18 = vpack.c.bf16 (!%p9668_p4), %v8164_v13, %v8162_v12  ;;  %v8184_v13 = vld [vmem:[#allocation9 + $0x198] sm:$0xff] (!%p9668_p4) }
 0x4cc   : > { %7347 = vmatpush1.bf16.msra.mxu0 %v11557_v21  ;;  %8035 = vmatpush1.bf16.msra.mxu1 %v11560_v22  ;;  %v8141_v21 = vld [vmem:[#allocation9 + $0x40] sm:$0xff] (!%p9668_p4)  ;;  %v8143_v22 = vld [vmem:[#allocation9 + $0x50] sm:$0xff] (!%p9668_p4) }
 0x4cd   : > { %7348 = vmatprep.subr.bf16.mxu0 %v11565_v23  ;;  %8036 = vmatprep.subr.bf16.mxu1 %v11568_v24  ;;  %v8206_v23 = vld [vmem:[#allocation9 + $0x248] sm:$0xff] (!%p9668_p4)  ;;  %v8208_v24 = vld [vmem:[#allocation9 + $0x258] sm:$0xff] (!%p9668_p4) }
 0x4d0   : > { %7349 = vmatpush1.bf16.msra.mxu0 %v11563_v25  ;;  %8037 = vmatpush1.bf16.msra.mxu1 %v11566_v26  ;;  %v8205_v25 = vld [vmem:[#allocation9 + $0x240] sm:$0xff] (!%p9668_p4)  ;;  %v8207_v26 = vld [vmem:[#allocation9 + $0x250] sm:$0xff] (!%p9668_p4) }
 0x4d1   : > { %7350 = vmatprep.subr.bf16.mxu0 %v11571_v27  ;;  %8038 = vmatprep.subr.bf16.mxu1 %v11574_v28  ;;  %v9687_v27 = vpack.c.bf16 (!%p9668_p4), %v8143_v22, %v8141_v21  ;;  %v9749_v28 = vpack.c.bf16 (!%p9668_p4), %v8208_v24, %v8206_v23  ;;  %v9751_v32 = vpack.c.bf16 (!%p9668_p4), %v8207_v26, %v8205_v25  ;;  %v8225_v21 = vld [vmem:[#allocation9 + $0x2e0] sm:$0xff] (!%p9668_p4)  ;;  %v8227_v23 = vld [vmem:[#allocation9 + $0x2f0] sm:$0xff] (!%p9668_p4)  ;;  %v8166_v24 = vld [vmem:[#allocation9 + $0x108] sm:$0xff] (!%p9668_p4) }
 0x4d2   : > { %v8168_v25 = vld [vmem:[#allocation9 + $0x118] sm:$0xff] (!%p9668_p4)  ;;  %v8230_v26 = vld [vmem:[#allocation9 + $0x308] sm:$0xff] (!%p9668_p4) }
 0x4d4   : > { %7351 = vmatpush1.bf16.msra.mxu0 %v11569_v29  ;;  %8039 = vmatpush1.bf16.msra.mxu1 %v11572_v30  ;;  %v8146_v29 = vld [vmem:[#allocation9 + $0x68] sm:$0xff] (!%p9668_p4)  ;;  %v8148_v30 = vld [vmem:[#allocation9 + $0x78] sm:$0xff] (!%p9668_p4) }
 0x4d5   : > { %9678 = vmatprep.subr.bf16.mxu1 (!%p9668_p4), %v9677_v61  ;;  %9742 = vmatprep.subr.bf16.mxu0 (!%p9668_p4), %v9741_v2  ;;  %v8217_v61 = vld [vmem:[#allocation9 + $0x2a0] sm:$0xff] (!%p9668_p4)  ;;  %v8222_v2 = vld [vmem:[#allocation9 + $0x2c8] sm:$0xff] (!%p9668_p4) }
 0x4d6   : > { %v9763_v5 = vpack.c.bf16 (!%p9668_p4), %v8219_v63, %v8217_v61  ;;  %v8239_v61 = vld [vmem:[#allocation9 + $0x350] sm:$0xff] (!%p9668_p4)  ;;  %v8180_v63 = vld [vmem:[#allocation9 + $0x178] sm:$0xff] (!%p9668_p4) }
 0x4d7   : > { %7353 = vmatmul.mubr.bf16.vlgmr.msra.gmra.mrb[0].mxu0 %v529_v33  ;;  %8041 = vmatmul.mubr.bf16.vlgmr.msra.gmra.mrb[0].mxu1 %v529_v33  ;;  %v9689_v33 = vpack.c.bf16 (!%p9668_p4), %v8148_v30, %v8146_v29  ;;  %v9771_v29 = vpack.c.bf16 (!%p9668_p4), %v8227_v23, %v8225_v21  ;;  %v9709_v30 = vpack.c.bf16 (!%p9668_p4), %v8168_v25, %v8166_v24  ;;  %v8181_v24 = vld [vmem:[#allocation9 + $0x180] sm:$0xff] (!%p9668_p4)  ;;  %v8183_v25 = vld [vmem:[#allocation9 + $0x190] sm:$0xff] (!%p9668_p4) }
 0x4d8   : > { %9680 = vmatpush1.bf16.msra.mxu1 (!%p9668_p4), %v9679_v1  ;;  %9744 = vmatpush1.bf16.msra.mxu0 (!%p9668_p4), %v9743_v6  ;;  %v8160_v1 = vld [vmem:[#allocation9 + $0xd8] sm:$0xff] (!%p9668_p4)  ;;  %v9783_v7 = vpack.c.bf16 (!%p9668_p4), %v8239_v61, %v8237_v59  ;;  %v8194_v61 = vld [vmem:[#allocation9 + $0x1e8] sm:$0xff] (!%p9668_p4) }
 0x4d9   : > { %9682 = vmatprep.subr.bf16.mxu1 (!%p9668_p4), %v9681_v10  ;;  %9746 = vmatprep.subr.bf16.mxu0 (!%p9668_p4), %v9745_v15  ;;  %v9701_v6 = vpack.c.bf16 (!%p9668_p4), %v8160_v1, %v8158_v0  ;;  %v9765_v10 = vpack.c.bf16 (!%p9668_p4), %v8224_v3, %v8222_v2  ;;  %v8228_v15 = vld [vmem:[#allocation9 + $0x2f8] sm:$0xff] (!%p9668_p4)  ;;  %v8242_v0 = vld [vmem:[#allocation9 + $0x368] sm:$0xff] (!%p9668_p4)  ;;  %v8177_v3 = vld [vmem:[#allocation9 + $0x160] sm:$0xff] (!%p9668_p4) }
 0x4da   : > { %v9769_v22 = vpack.c.bf16 (!%p9668_p4), %v8228_v15, %v8226_v14  ;;  %v8244_v1 = vld [vmem:[#allocation9 + $0x378] sm:$0xff] (!%p9668_p4)  ;;  %v8246_v14 = vld [vmem:[#allocation9 + $0x388] sm:$0xff] (!%p9668_p4) }
 0x4db   : > { %v9785_v12 = vpack.c.bf16 (!%p9668_p4), %v8244_v1, %v8242_v0  ;;  %v8248_v15 = vld [vmem:[#allocation9 + $0x398] sm:$0xff] (!%p9668_p4) }
 0x4dc   : > { %9684 = vmatpush1.bf16.msra.mxu1 (!%p9668_p4), %v9683_v11  ;;  %9748 = vmatpush1.bf16.msra.mxu0 (!%p9668_p4), %v9747_v19  ;;  %v8223_v11 = vld [vmem:[#allocation9 + $0x2d0] sm:$0xff] (!%p9668_p4)  ;;  %v8161_v19 = vld [vmem:[#allocation9 + $0xe0] sm:$0xff] (!%p9668_p4)  ;;  %v8196_v1 = vld [vmem:[#allocation9 + $0x1f8] sm:$0xff] (!%p9668_p4) }
 0x4dd   : > { %9686 = vmatprep.subr.bf16.mxu1 (!%p9668_p4), %v9685_v20  ;;  %9750 = vmatprep.subr.bf16.mxu0 (!%p9668_p4), %v9749_v28  ;;  %v9767_v17 = vpack.c.bf16 (!%p9668_p4), %v8223_v11, %v8221_v9  ;;  %v8163_v20 = vld [vmem:[#allocation9 + $0xf0] sm:$0xff] (!%p9668_p4)  ;;  %v8241_v9 = vld [vmem:[#allocation9 + $0x360] sm:$0xff] (!%p9668_p4)  ;;  %v8182_v11 = vld [vmem:[#allocation9 + $0x188] sm:$0xff] (!%p9668_p4) }
 0x4de   : > { %v9707_v28 = vpack.c.bf16 (!%p9668_p4), %v8163_v20, %v8161_v19  ;;  %v9725_v23 = vpack.c.bf16 (!%p9668_p4), %v8184_v13, %v8182_v11  ;;  %v8195_v11 = vld [vmem:[#allocation9 + $0x1f0] sm:$0xff] (!%p9668_p4)  ;;  %v9737_v13 = vpack.c.bf16 (!%p9668_p4), %v8196_v1, %v8194_v61 }
 0x4e0   : > { %9688 = vmatpush1.bf16.msra.mxu1 (!%p9668_p4), %v9687_v27  ;;  %9752 = vmatpush1.bf16.msra.mxu0 (!%p9668_p4), %v9751_v32  ;;  %v8232_v27 = vld [vmem:[#allocation9 + $0x318] sm:$0xff] (!%p9668_p4)  ;;  %v8167_v32 = vld [vmem:[#allocation9 + $0x110] sm:$0xff] (!%p9668_p4) }
 0x4e1   : > { %9690 = vmatprep.subr.bf16.mxu1 (!%p9668_p4), %v9689_v33  ;;  %v8229_v33 = vld [vmem:[#allocation9 + $0x300] sm:$0xff] (!%p9668_p4) }
 0x5aa   : > { %v7354_v38 = vpop.f32.mrb[0].mxu0  ;;  %v8042_v39 = vpop.f32.mrb[0].mxu1  ;;  %8070 = sbr.rel (%p9668_p4) target bundleno = 1908 (0x774), region = 80 }
 0x5ab   : > { %v8051_v42 = vadd.f32 %v7354_v38, %v427_v34  ;;  %v8053_v43 = vadd.f32 %v8042_v39, %v429_v35  ;;  %v7356_v44 = vpop.f32.mrb[1].mxu0  ;;  %v8044_v45 = vpop.f32.mrb[1].mxu1  ;;  %v8147_v34 = vld [vmem:[#allocation9 + $0x70] sm:$0xff] (!%p9668_p4)  ;;  %v8210_v35 = vld [vmem:[#allocation9 + $0x268] sm:$0xff] (!%p9668_p4)  ;;  %v8209_v38 = vld [vmem:[#allocation9 + $0x260] sm:$0xff] (!%p9668_p4) }
 0x5ac   : > { %v8052_v48 = vadd.f32 %v7356_v44, %v428_v36  ;;  %v8054_v49 = vadd.f32 %v8044_v45, %v430_v37  ;;  %v7358_v50 = vpop.f32.mrb[2].mxu0  ;;  %v8046_v51 = vpop.f32.mrb[2].mxu1  ;;  %v8212_v36 = vld [vmem:[#allocation9 + $0x278] sm:$0xff] (!%p9668_p4)  ;;  %v8211_v39 = vld [vmem:[#allocation9 + $0x270] sm:$0xff] (!%p9668_p4) }
 0x5ad   : > { %8059 = vst [vmem:[#allocation2] sm:$0xff] %v8051_v42  ;;  %8061 = vst [vmem:[#allocation2 + $0x10] sm:$0xff] %v8053_v43  ;;  %v8055_v52 = vadd.f32 %v7358_v50, %v431_v40  ;;  %v8057_v53 = vadd.f32 %v8046_v51, %v433_v41  ;;  %v7360_v54 = vpop.f32.mrb[3].mxu0  ;;  %v8048_v55 = vpop.f32.mrb[3].mxu1  ;;  %v9753_v37 = vpack.c.bf16 (!%p9668_p4), %v8212_v36, %v8210_v35  ;;  %v8150_v40 = vld [vmem:[#allocation9 + $0x88] sm:$0xff] (!%p9668_p4)  ;;  %v8152_v41 = vld [vmem:[#allocation9 + $0x98] sm:$0xff] (!%p9668_p4) }
 0x5ae   : > { %8060 = vst [vmem:[#allocation2 + $0x8] sm:$0xff] %v8052_v48  ;;  %8062 = vst [vmem:[#allocation2 + $0x18] sm:$0xff] %v8054_v49  ;;  %v8056_v56 = vadd.f32 %v7360_v54, %v432_v46  ;;  %v8058_v57 = vadd.f32 %v8048_v55, %v434_v47  ;;  %v9691_v42 = vpack.c.bf16 (!%p9668_p4), %v8147_v34, %v8145_v31  ;;  %v8214_v43 = vld [vmem:[#allocation9 + $0x288] sm:$0xff] (!%p9668_p4)  ;;  %v8216_v44 = vld [vmem:[#allocation9 + $0x298] sm:$0xff] (!%p9668_p4) }
 0x5af   : > { %8063 = vst [vmem:[#allocation2 + $0x20] sm:$0xff] %v8055_v52  ;;  %8065 = vst [vmem:[#allocation2 + $0x30] sm:$0xff] %v8057_v53  ;;  %v9755_v45 = vpack.c.bf16 (!%p9668_p4), %v8211_v39, %v8209_v38  ;;  %v9693_v46 = vpack.c.bf16 (!%p9668_p4), %v8152_v41, %v8150_v40  ;;  %v8149_v47 = vld [vmem:[#allocation9 + $0x80] sm:$0xff] (!%p9668_p4)  ;;  %v8151_v48 = vld [vmem:[#allocation9 + $0x90] sm:$0xff] (!%p9668_p4)  ;;  %9754 = vmatprep.subr.bf16.mxu0 (!%p9668_p4), %v9753_v37  ;;  %v9757_v50 = vpack.c.bf16 (!%p9668_p4), %v8216_v44, %v8214_v43  ;;  %v8081_v41 = vlaneseq (!%p9668_p4) }
 0x5b0   : > { %8064 = vst [vmem:[#allocation2 + $0x28] sm:$0xff] %v8056_v56  ;;  %8066 = vst [vmem:[#allocation2 + $0x38] sm:$0xff] %v8058_v57  ;;  %v8213_v49 = vld [vmem:[#allocation9 + $0x280] sm:$0xff] (!%p9668_p4)  ;;  %v8215_v51 = vld [vmem:[#allocation9 + $0x290] sm:$0xff] (!%p9668_p4)  ;;  %9692 = vmatpush1.bf16.msra.mxu1 (!%p9668_p4), %v9691_v42  ;;  %v9695_v56 = vpack.c.bf16 (!%p9668_p4), %v8151_v48, %v8149_v47  ;;  %v9773_v34 = vpack.c.bf16 (!%p9668_p4), %v8232_v27, %v8230_v26  ;;  %v9789_v27 = vpack.c.bf16 (!%p9668_p4), %v8248_v15, %v8246_v14 }
 0x5b1   : > { %v8154_v52 = vld [vmem:[#allocation9 + $0xa8] sm:$0xff]  ;;  %v8156_v53 = vld [vmem:[#allocation9 + $0xb8] sm:$0xff]  ;;  %9756 = vmatpush1.bf16.msra.mxu0 %v9755_v45  ;;  %9694 = vmatprep.subr.bf16.mxu1 %v9693_v46  ;;  %v9759_v57 = vpack.c.bf16 %v8215_v51, %v8213_v49  ;;  %v8165_v31 = vld [vmem:[#allocation9 + $0x100] sm:$0xff] }
 0x5b2   : > { %v8218_v54 = vld [vmem:[#allocation9 + $0x2a8] sm:$0xff]  ;;  %v8220_v55 = vld [vmem:[#allocation9 + $0x2b8] sm:$0xff]  ;;  %v9697_v58 = vpack.c.bf16 %v8156_v53, %v8154_v52  ;;  %9758 = vmatprep.subr.bf16.mxu0 %v9757_v50  ;;  %v8231_v35 = vld [vmem:[#allocation9 + $0x310] sm:$0xff]  ;;  %v9711_v40 = vpack.c.bf16 %v8167_v32, %v8165_v31 }
 0x5b3   : > { %v9761_v62 = vpack.c.bf16 %v8220_v55, %v8218_v54  ;;  %v8170_v36 = vld [vmem:[#allocation9 + $0x128] sm:$0xff]  ;;  %v8172_v37 = vld [vmem:[#allocation9 + $0x138] sm:$0xff]  ;;  %v9775_v42 = vpack.c.bf16 %v8231_v35, %v8229_v33  ;;  %v8169_v44 = vld [vmem:[#allocation9 + $0x120] sm:$0xff]  ;;  %v13244_v54 = vshrl.u32 %v8081_v41, 7 }
 0x5b4   : > { %9696 = vmatpush1.bf16.msra.mxu1 %v9695_v56  ;;  %v8234_v38 = vld [vmem:[#allocation9 + $0x328] sm:$0xff]  ;;  %v8236_v39 = vld [vmem:[#allocation9 + $0x338] sm:$0xff]  ;;  %v9713_v43 = vpack.c.bf16 %v8172_v37, %v8170_v36  ;;  %v8171_v45 = vld [vmem:[#allocation9 + $0x130] sm:$0xff]  ;;  %v9727_v36 = vpack.c.bf16 %v8183_v25, %v8181_v24 }
 0x5b5   : > { %9760 = vmatpush1.bf16.msra.mxu0 %v9759_v57  ;;  %9698 = vmatprep.subr.bf16.mxu1 %v9697_v58  ;;  %v8233_v46 = vld [vmem:[#allocation9 + $0x320] sm:$0xff]  ;;  %v9777_v47 = vpack.c.bf16 %v8236_v39, %v8234_v38  ;;  %v8235_v48 = vld [vmem:[#allocation9 + $0x330] sm:$0xff]  ;;  %v8174_v49 = vld [vmem:[#allocation9 + $0x148] sm:$0xff]  ;;  %v9715_v53 = vpack.c.bf16 %v8171_v45, %v8169_v44  ;;  %v13258_v35 = vsub.s32 0, %v13244_v54  ;;  %v8091_v38 = vsub.s32 2, %v13244_v54 }
 0x5b6   : > { %9762 = vmatprep.subr.bf16.mxu0 %v9761_v62  ;;  %v8176_v50 = vld [vmem:[#allocation9 + $0x158] sm:$0xff]  ;;  %v8238_v51 = vld [vmem:[#allocation9 + $0x348] sm:$0xff]  ;;  %v9779_v55 = vpack.c.bf16 %v8235_v48, %v8233_v46  ;;  %v8173_v57 = vld [vmem:[#allocation9 + $0x140] sm:$0xff] }
 0x5b7   : > { %v8240_v52 = vld [vmem:[#allocation9 + $0x358] sm:$0xff]  ;;  %v9717_v56 = vpack.c.bf16 %v8176_v50, %v8174_v49  ;;  %v8175_v58 = vld [vmem:[#allocation9 + $0x150] sm:$0xff]  ;;  %v8178_v62 = vld [vmem:[#allocation9 + $0x168] sm:$0xff] }
 0x5b8   : > { %9700 = vmatpush1.bf16.msra.mxu1 %v9699_v4  ;;  %v9781_v60 = vpack.c.bf16 %v8240_v52, %v8238_v51  ;;  %v9719_v2 = vpack.c.bf16 %v8175_v58, %v8173_v57  ;;  %v8179_v4 = vld [vmem:[#allocation9 + $0x170] sm:$0xff]  ;;  %v9721_v8 = vpack.c.bf16 %v8180_v63, %v8178_v62  ;;  %v8245_v26 = vld [vmem:[#allocation9 + $0x380] sm:$0xff]  ;;  %v8250_v33 = vld [vmem:[#allocation9 + $0x3a8] sm:$0xff] }
 0x5b9   : > { %9764 = vmatpush1.bf16.msra.mxu0 %v9763_v5  ;;  %9702 = vmatprep.subr.bf16.mxu1 %v9701_v6  ;;  %v13247_v5 = vsub.s32 1, %v13244_v54  ;;  %v8095_v6 = vsub.s32 3, %v13244_v54  ;;  %v9723_v19 = vpack.c.bf16 %v8179_v4, %v8177_v3  ;;  %v8185_v41 = vld [vmem:[#allocation9 + $0x1a0] sm:$0xff]  ;;  %v8251_v46 = vld [vmem:[#allocation9 + $0x3b0] sm:$0xff]  ;;  %v8192_v48 = vld [vmem:[#allocation9 + $0x1d8] sm:$0xff] }
 0x5ba   : > { %9766 = vmatprep.subr.bf16.mxu0 %v9765_v10  ;;  %v8243_v10 = vld [vmem:[#allocation9 + $0x370] sm:$0xff]  ;;  %v8254_v50 = vld [vmem:[#allocation9 + $0x3c8] sm:$0xff]  ;;  %v8256_v51 = vld [vmem:[#allocation9 + $0x3d8] sm:$0xff] }
 0x5bb   : > { %v8189_v54 = vld [vmem:[#allocation9 + $0x1c0] sm:$0xff]  ;;  %v9797_v0 = vpack.c.bf16 %v8256_v51, %v8254_v50  ;;  %v8258_v4 = vld [vmem:[#allocation9 + $0x3e8] sm:$0xff]  ;;  %v8259_v15 = vld [vmem:[#allocation9 + $0x3f0] sm:$0xff] }
 0x5bc   : > { %9704 = vmatpush1.bf16.msra.mxu1 %v9703_v16  ;;  %v8072_v16 = vld [vmem:[#allocation2 + $0x8] sm:$0xff]  ;;  %v8071_v62 = vld [vmem:[#allocation2] sm:$0xff] }
 0x5bd   : > { %9768 = vmatpush1.bf16.msra.mxu0 %v9767_v17  ;;  %9706 = vmatprep.subr.bf16.mxu1 %v9705_v18  ;;  %v8079_v17 = vld [vmem:[#allocation8] sm:$0xf]  ;;  %v8074_v18 = vld [vmem:[#allocation2 + $0x18] sm:$0xff]  ;;  %v8076_v3 = vld [vmem:[#allocation2 + $0x28] sm:$0xff] }
 0x5be   : > { %9770 = vmatprep.subr.bf16.mxu0 %v9769_v22  ;;  %v13251_v20 = vrot.slane %v8079_v17, %v13247_v5  ;;  %v13253_v21 = vrot.slane %v8079_v17, %v8095_v6  ;;  %v9787_v22 = vpack.c.bf16 %v8243_v10, %v8241_v9  ;;  %v8084_v57 = vrot.slane %v8079_v17, %v13258_v35  ;;  %v8260_v6 = vld [vmem:[#allocation9 + $0x3f8] sm:$0xff]  ;;  %v8193_v10 = vld [vmem:[#allocation9 + $0x1e0] sm:$0xff] }
 0x5bf   : > { %v8092_v63 = vrot.slane %v8079_v17, %v8091_v38  ;;  %v8257_v14 = vld [vmem:[#allocation9 + $0x3e0] sm:$0xff]  ;;  %v9739_v24 = vpack.c.bf16 %v8195_v11, %v8193_v10  ;;  %v9669_v10 = vld [vmem:[#allocation3] ss:$0 sm:$0xff] }
 0x5c0   : > { %9708 = vmatpush1.bf16.msra.mxu1 %v9707_v28  ;;  %v8247_v28 = vld [vmem:[#allocation9 + $0x390] sm:$0xff]  ;;  %v8102_v31 = vadd.f32 %v13251_v20, %v8072_v16  ;;  %v8104_v32 = vadd.f32 %v13253_v21, %v8074_v18  ;;  %v8106_v17 = vadd.f32 %v13251_v20, %v8076_v3  ;;  %v8075_v18 = vld [vmem:[#allocation2 + $0x20] sm:$0xff]  ;;  %v9803_v25 = vpack.c.bf16 %v8259_v15, %v8257_v14 }
 0x5c1   : > { %9772 = vmatpush1.bf16.msra.mxu0 %v9771_v29  ;;  %9710 = vmatprep.subr.bf16.mxu1 %v9709_v30  ;;  %v8186_v29 = vld [vmem:[#allocation9 + $0x1a8] sm:$0xff]  ;;  %v8188_v30 = vld [vmem:[#allocation9 + $0x1b8] sm:$0xff]  ;;  %v9791_v39 = vpack.c.bf16 %v8247_v28, %v8245_v26 }
 0x5c2   : > { %9774 = vmatprep.subr.bf16.mxu0 %v9773_v34  ;;  %v8252_v34 = vld [vmem:[#allocation9 + $0x3b8] sm:$0xff]  ;;  %vm8110_vm0 = vcmp.gt.f32.partialorder %v8102_v31, 0.0  ;;  %v8118_v37 = vmul.f32 0.2, %v8102_v31  ;;  %vm8112_vm1 = vcmp.gt.f32.partialorder %v8104_v32, 0.0  ;;  %vm8114_vm4 = vcmp.gt.f32.partialorder %v8106_v17, 0.0 }
 0x5c3   : > { %v8120_v44 = vmul.f32 0.2, %v8104_v32  ;;  %v9793_v45 = vpack.c.bf16 %v8252_v34, %v8250_v33 }
 0x5c4   : > { %9712 = vmatpush1.bf16.msra.mxu1 %v9711_v40  ;;  %v9729_v40 = vpack.c.bf16 %v8188_v30, %v8186_v29  ;;  %v8126_v49 = vsel %vm8110_vm0, %v8102_v31, %v8118_v37  ;;  %v8122_v29 = vmul.f32 0.2, %v8106_v17 }
 0x5c5   : > { %9776 = vmatpush1.bf16.msra.mxu0 %v9775_v42  ;;  %9714 = vmatprep.subr.bf16.mxu1 %v9713_v43  ;;  %v8187_v42 = vld [vmem:[#allocation9 + $0x1b0] sm:$0xff]  ;;  %v8249_v43 = vld [vmem:[#allocation9 + $0x3a0] sm:$0xff]  ;;  %v8128_v52 = vsel %vm8112_vm1, %v8104_v32, %v8120_v44 }
 0x5c6   : > { %9778 = vmatprep.subr.bf16.mxu0 %v9777_v47  ;;  %v8190_v47 = vld [vmem:[#allocation9 + $0x1c8] sm:$0xff]  ;;  %8337 = vmatprep.mubr.f32.mxu1 %v8126_v49  ;;  %v9795_v58 = vpack.c.bf16 %v8251_v46, %v8249_v43  ;;  %v8130_v33 = vsel %vm8114_vm4, %v8106_v17, %v8122_v29  ;;  %v8439_v46 = vld [vmem:[#allocation12] sm:$0x3] }
 0x5c7   : > { %8414 = vmatprep.mubr.f32.mxu0 %v8128_v52  ;;  %v9733_v59 = vpack.c.bf16 %v8192_v48, %v8190_v47  ;;  %v8444_v52 = vrot.slane %v8439_v46, %v13258_v35 }
 0x5c8   : > { %9716 = vmatpush1.bf16.msra.mxu1 %v9715_v53  ;;  %v9731_v53 = vpack.c.bf16 %v8187_v42, %v8185_v41 }
 0x5c9   : > { %9780 = vmatpush1.bf16.msra.mxu0 %v9779_v55  ;;  %9718 = vmatprep.subr.bf16.mxu1 %v9717_v56  ;;  %v8191_v55 = vld [vmem:[#allocation9 + $0x1d0] sm:$0xff]  ;;  %v8253_v56 = vld [vmem:[#allocation9 + $0x3c0] sm:$0xff] }
 0x5ca   : > { %9782 = vmatprep.subr.bf16.mxu0 %v9781_v60  ;;  %v8255_v60 = vld [vmem:[#allocation9 + $0x3d0] sm:$0xff] }
 0x5cb   : > { %v9799_v9 = vpack.c.bf16 %v8255_v60, %v8253_v56 }
 0x5cc   : > { %9720 = vmatpush1.bf16.msra.mxu1 %v9719_v2  ;;  %v8073_v2 = vld [vmem:[#allocation2 + $0x10] sm:$0xff] }
 0x5cd   : > { %9784 = vmatpush1.bf16.msra.mxu0 %v9783_v7  ;;  %9722 = vmatprep.subr.bf16.mxu1 %v9721_v8  ;;  %v8078_v7 = vld [vmem:[#allocation2 + $0x38] sm:$0xff]  ;;  %v9735_v8 = vpack.c.bf16 %v8191_v55, %v8189_v54  ;;  %v8103_v16 = vadd.f32 %v8092_v63, %v8073_v2 }
 0x5ce   : > { %9786 = vmatprep.subr.bf16.mxu0 %v9785_v12  ;;  %v8101_v12 = vadd.f32 %v8084_v57, %v8071_v62 }
 0x5cf   : > { %v8119_v28 = vmul.f32 0.2, %v8103_v16  ;;  %vm8111_vm3 = vcmp.gt.f32.partialorder %v8103_v16, 0.0 }
 0x5d0   : > { %9724 = vmatpush1.bf16.msra.mxu1 %v9723_v19  ;;  %v9801_v19 = vpack.c.bf16 %v8260_v6, %v8258_v4  ;;  %v8117_v26 = vmul.f32 0.2, %v8101_v12  ;;  %vm8109_vm2 = vcmp.gt.f32.partialorder %v8101_v12, 0.0 }
 0x5d1   : > { %9788 = vmatpush1.bf16.msra.mxu0 %v9787_v22  ;;  %9726 = vmatprep.subr.bf16.mxu1 %v9725_v23  ;;  %v8108_v22 = vadd.f32 %v13253_v21, %v8078_v7  ;;  %v8077_v23 = vld [vmem:[#allocation2 + $0x30] sm:$0xff]  ;;  %v8127_v32 = vsel %vm8111_vm3, %v8103_v16, %v8119_v28 }
 0x5d2   : > { %9790 = vmatprep.subr.bf16.mxu0 %v9789_v27  ;;  %v8105_v27 = vadd.f32 %v8084_v57, %v8075_v18  ;;  %v8107_v30 = vadd.f32 %v8092_v63, %v8077_v23  ;;  %v8125_v31 = vsel %vm8109_vm2, %v8101_v12, %v8117_v26  ;;  %v8448_v57 = vrot.slane %v8439_v46, %v13247_v5 }
 0x5d3   : > { %v8124_v20 = vmul.f32 0.2, %v8108_v22  ;;  %vm8116_vm5 = vcmp.gt.f32.partialorder %v8108_v22, 0.0 }
 0x5d4   : > { %9728 = vmatpush1.bf16.msra.mxu1 %v9727_v36  ;;  %v8121_v21 = vmul.f32 0.2, %v8105_v27  ;;  %vm8113_vm6 = vcmp.gt.f32.partialorder %v8105_v27, 0.0  ;;  %v8123_v34 = vmul.f32 0.2, %v8107_v30  ;;  %vm8115_vm7 = vcmp.gt.f32.partialorder %v8107_v30, 0.0 }
 0x5d5   : > { %9792 = vmatpush1.bf16.msra.mxu0 %v9791_v39  ;;  %9730 = vmatprep.subr.bf16.mxu1 %v9729_v40  ;;  %v8132_v36 = vsel %vm8116_vm5, %v8108_v22, %v8124_v20  ;;  %v8261_v39 = vld [vmem:[#allocation11] sm:$0x3] }
 0x5d6   : > { %9794 = vmatprep.subr.bf16.mxu0 %v9793_v45  ;;  %v8129_v37 = vsel %vm8113_vm6, %v8105_v27, %v8121_v21  ;;  %v8131_v38 = vsel %vm8115_vm7, %v8107_v30, %v8123_v34  ;;  %v8266_v40 = vrot.slane %v8261_v39, %v13258_v35  ;;  %v8270_v41 = vrot.slane %v8261_v39, %v13247_v5 }
 0x5d8   : > { %9732 = vmatpush1.bf16.msra.mxu1 %v9731_v53 }
 0x5d9   : > { %9796 = vmatpush1.bf16.msra.mxu0 %v9795_v58  ;;  %9734 = vmatprep.subr.bf16.mxu1 %v9733_v59 }
 0x5da   : > { %9798 = vmatprep.subr.bf16.mxu0 %v9797_v0 }
 0x5dc   : > { %9736 = vmatpush1.bf16.msra.mxu1 %v9735_v8 }
 0x5dd   : > { %9800 = vmatpush1.bf16.msra.mxu0 %v9799_v9  ;;  %9738 = vmatprep.subr.bf16.mxu1 %v9737_v13 }
 0x5de   : > { %9802 = vmatprep.subr.bf16.mxu0 %v9801_v19 }
 0x5e0   : > { %9740 = vmatpush1.bf16.msra.mxu1 %v9739_v24 }
 0x5e1   : > { %9804 = vmatpush1.bf16.msra.mxu0 %v9803_v25 }
 0x5e3   : > { %8338 = vmatmul.mubr.f32.vlgmr.msra.gmra.mrb[0].mxu1 %v8125_v31 }
 0x5e4   : > { %8415 = vmatmul.mubr.f32.vlgmr.msra.gmra.mrb[0].mxu0 %v8127_v32  ;;  %8343 = vmatprep.mubr.f32.mxu1 %v8130_v33 }
 0x5e5   : > { %8420 = vmatprep.mubr.f32.mxu0 %v8132_v36 }
 0x5e7   : > { %8344 = vmatmul.mubr.f32.gmra.mrb[2].mxu1 %v8129_v37 }
 0x5e8   : > { %8421 = vmatmul.mubr.f32.gmra.mrb[2].mxu0 %v8131_v38 }
 0x6b6   : > { %v8339_v42 = vpop.f32.mrb[0].mxu1 }
 0x6b7   : > { %v8340_v43 = vadd.f32 %v8339_v42, %v8266_v40  ;;  %v8341_v44 = vpop.f32.mrb[1].mxu1  ;;  %v8416_v45 = vpop.f32.mrb[0].mxu0 }
 0x6b8   : > { %v8342_v47 = vadd.f32 %v8341_v44, %v8270_v41  ;;  %v8418_v48 = vpop.f32.mrb[1].mxu0 }
 0x6b9   : > { %v8417_v49 = vadd.f32 %v8416_v45, %v8340_v43 }
 0x6ba   : > { %v8419_v50 = vadd.f32 %v8418_v48, %v8342_v47  ;;  %v8345_v51 = vpop.f32.mrb[2].mxu1 }
 0x6bb   : > { %vm8427_vm8 = vcmp.gt.f32.partialorder %v8417_v49, 0.0  ;;  %v8431_v53 = vmul.f32 0.2, %v8417_v49  ;;  %v8346_v54 = vadd.f32 %v8345_v51, %v8266_v40  ;;  %v8347_v55 = vpop.f32.mrb[3].mxu1  ;;  %v8422_v56 = vpop.f32.mrb[2].mxu0 }
 0x6bc   : > { %vm8428_vm9 = vcmp.gt.f32.partialorder %v8419_v50, 0.0  ;;  %v8432_v58 = vmul.f32 0.2, %v8419_v50  ;;  %v8348_v59 = vadd.f32 %v8347_v55, %v8270_v41  ;;  %v8424_v60 = vpop.f32.mrb[3].mxu0 }
 0x6bd   : > { %v8423_v61 = vadd.f32 %v8422_v56, %v8346_v54  ;;  %v8435_v62 = vsel %vm8427_vm8, %v8417_v49, %v8431_v53 }
 0x6be   : > { %v8425_v63 = vadd.f32 %v8424_v60, %v8348_v59  ;;  %v8436_v0 = vsel %vm8428_vm9, %v8419_v50, %v8432_v58  ;;  %v8451_v1 = vmul.f32 %v8444_v52, %v8435_v62 }
 0x6bf   : > { %vm8429_vm10 = vcmp.gt.f32.partialorder %v8423_v61, 0.0  ;;  %v8433_v2 = vmul.f32 0.2, %v8423_v61  ;;  %v8452_v3 = vmul.f32 %v8448_v57, %v8436_v0 }
 0x6c0   : > { %vm8430_vm11 = vcmp.gt.f32.partialorder %v8425_v63, 0.0  ;;  %v8434_v35 = vmul.f32 0.2, %v8425_v63 }
 0x6c1   : > { %v8455_v4 = vadd.f32 %v8452_v3, %v8451_v1  ;;  %v8437_v6 = vsel %vm8429_vm10, %v8423_v61, %v8433_v2 }
 0x6c2   : > { %v8438_v7 = vsel %vm8430_vm11, %v8425_v63, %v8434_v35  ;;  %v8453_v8 = vmul.f32 %v8444_v52, %v8437_v6 }
 0x6c3   : > { %8456 = vadd.xlane.f32.xlu0 %v8455_v4  ;;  %v8454_v5 = vmul.f32 %v8448_v57, %v8438_v7 }
 0x6c5   : > { %v8458_v9 = vadd.f32 %v8454_v5, %v8453_v8 }
 0x6c7   : > { %8459 = vadd.xlane.f32.xlu0 %v8458_v9 }
 0x750   : > { %v8457_v11 = vpop.xlane.xlu0 %8456 }
 0x751   : > { %v8468_v12 = vadd.f32 %v9669_v10, %v8457_v11 }
 0x753   : > { %v8470_v13 = vsub.f32 0.0, %v8468_v12 }
 0x754   : > { %v8460_v14 = vpop.xlane.xlu0 %8459 }
 0x755   : > { %v8472_v15 = vmul.f32 1.442695, %v8470_v13  ;;  %v8469_v16 = vadd.f32 %v9669_v10, %v8460_v14 }
 0x757   : > { %11575 = vpow2.f32 %v8472_v15  ;;  %v8471_v17 = vsub.f32 0.0, %v8469_v16 }
 0x759   : > { %v8474_v18 = vmul.f32 1.442695, %v8471_v17 }
 0x75b   : > { %11577 = vpow2.f32 %v8474_v18 }
 0x761   : > { %v11576_v19 = vpop.eup %11575 }
 0x762   : > { %v8476_v22 = vadd.f32 1.0, %v11576_v19 }
 0x764   : > { %11579 = vrcp.f32 %v8476_v22 }
 0x765   : > { %v11578_v23 = vpop.eup %11577 }
 0x766   : > { %v8477_v24 = vadd.f32 1.0, %v11578_v23 }
 0x768   : > { %11581 = vrcp.f32 %v8477_v24 }
 0x76e   : > { %v11580_v25 = vpop.eup %11579 }
 0x76f   : > { %8483 = vst.msk [vmem:[%s13300_s7] sm:$0xff] %vm8482_vm12, %v11580_v25 }
 0x772   : > { %v11582_v26 = vpop.eup %11581 }
 0x773   : > { %8484 = vst.msk [vmem:[%s13300_s7 + $0x8] sm:$0xff] %vm8482_vm12, %v11582_v26 }
 0x774 PF: > { %s27_s8 = sadd.s32 1, %s11821_s8   ;;  %s13327_s26 = smov %s11805_s27 }
 0x775   : > { %p24_p5 = scmp.ge.s32.totalorder %s27_s8, 5   ;;  %s13328_s27 = smov %s11809_s28 }
 0x776   : > { %s13329_s28 = smov %s12040_s23  ;;  %s13330_s29 = smov %s11817_s30 }
 0x777   : > { %s13331_s30 = smov %s13333_s6  ;;  %26 = sbr.rel (!%p24_p5) target bundleno = 13 (0xd), region = 125 }
 0x77e   :  { %8507 = vsyncpa [#allocation5], 1 }
 0x77f   :  { %8509 = vsyncpa [#allocation5 + $0x1], 1 }
 0x780   :  { %8510 = vsyncpa [#allocation7], 1 }
 0x781   :  { %8512 = vsyncpa [#allocation7 + $0x1], 1 }
 0x782   :  { %8513 = vsyncpa [#allocation10], 1 }
 0x783   :  { %8514 = vsyncpa [#allocation13], 1 }

</bundles_post_ra>
